<compile_context>
chip_gen: v5e
topology: v5e:2x2
jax: 0.10.0
libtpu: 0.0.40
codegen_flags: <defaults>
</compile_context>

<pallas_src>
import functools

import jax
import jax.numpy as jnp
from jax.experimental import pallas as pl
from jax.experimental.pallas import tpu as pltpu


C1 = 32   # encoder stage-1 channels
C2 = 64   # encoder stage-2 channels
C3 = 32   # decoder stage-1 channels


# ----------------------------------------------------------------------------
# Fused Pallas kernel: enc1 -> pool -> enc2 -> pool -> dec1 -> dec2
# Processes B images per grid step.
# ----------------------------------------------------------------------------
def _fused_autoencoder_kernel(
    x_ref,        # (B, H, W, 1)          input images (NHWC, C=1)
    w1_ref,       # (9, C1)      f32      enc1 3x3 weights, rows = (kh, kw)
    b1_ref,       # (1, C1)      f32
    w2_ref,       # (9*C1, C2)   bf16     enc2 weights, rows = (tap, ci)
    b2_ref,       # (1, C2)      f32
    wd1_ref,      # (C2, 4*C3)   bf16     dec1 weights, cols = (i, j, co)
    bd1_ref,      # (1, 4*C3)    f32
    wd2_ref,      # (4*C3, 16)   bf16     dec2 folded; out cols = (i, i', j, j')
    bd2_ref,      # (1, 16)      f32
    out_ref,      # (B*H4*W4, 16) f32     packed sub-pixel output
    xpb_ref,      # VMEM (B, H+2, W+2, C1)        padded, channel-broadcast input
    y1_ref,       # VMEM (B, H, W, C1)            enc1 accumulator
    hp1_ref,      # VMEM (B, H2, W, C1)           H-pooled enc1 activations
    xp2_ref,      # VMEM (B, H2+2, W2+2, C1)      padded enc2 input
    col_ref,      # VMEM (B, H2, W2, 9*C1)        enc2 im2col
    hp2_ref,      # VMEM (B*H4*W2, C2)            H-pooled enc2 activations
    *, B, H, W,
):
  f32 = jnp.float32
  bf16 = jnp.bfloat16
  H2, W2 = H // 2, W // 2
  H4, W4 = H // 4, W // 4

  # ---------------- encoder stage 1: conv3x3(1->C1) + ReLU (VPU, f32) -------
  # Broadcast the zero-padded input once into channel-last layout so every tap
  # load / FMA below is lane-dense (C1=32 lanes) instead of 1/128 occupied.
  xpb_ref[...] = jnp.zeros_like(xpb_ref)
  xpb_ref[:, 1:H + 1, 1:W + 1, :] = jnp.broadcast_to(x_ref[...], (B, H, W, C1))

  y1_ref[...] = jnp.broadcast_to(b1_ref[...], (B, H, W, C1))   # init with bias
  for kh in range(3):
    for kw in range(3):
      t = kh * 3 + kw
      y1_ref[...] += xpb_ref[:, kh:kh + H, kw:kw + W, :] * w1_ref[t:t + 1, :]
  y1 = jnp.maximum(y1_ref[...], 0.0)                           # (B, H, W, C1)

  # ---------------- 2x2 max-pool #1 (whole-tensor, no MXU) ------------------
  y1p = y1.reshape(B, H2, 2, W, C1)                 # outer-dim split: layout free
  hp1_ref[...] = jnp.maximum(y1p[:, :, 0], y1p[:, :, 1])       # (B, H2, W, C1)
  p1 = jnp.maximum(hp1_ref[:, :, pl.ds(0, W2, stride=2), :],
                   hp1_ref[:, :, pl.ds(1, W2, stride=2), :])   # (B, H2, W2, C1)

  # ---------------- encoder stage 2: conv3x3(C1->C2) as ONE matmul ----------
  xp2_ref[...] = jnp.zeros_like(xp2_ref)
  xp2_ref[:, 1:H2 + 1, 1:W2 + 1, :] = p1
  for kh in range(3):
    for kw in range(3):
      t = kh * 3 + kw
      col_ref[:, :, :, t * C1:(t + 1) * C1] = (
          xp2_ref[:, kh:kh + H2, kw:kw + W2, :])
  lhs2 = col_ref[...].reshape(B * H2 * W2, 9 * C1).astype(bf16)
  acc2 = jnp.dot(lhs2, w2_ref[...], preferred_element_type=f32)
  y2 = jnp.maximum(acc2 + b2_ref[...], 0.0)                    # (B*H2*W2, C2)

  # ---------------- 2x2 max-pool #2 ------------------------------------------
  y2p = y2.reshape(B, H4, 2, W2, C2)
  hm2 = jnp.maximum(y2p[:, :, 0], y2p[:, :, 1])                # (B, H4, W2, C2)
  hp2_ref[...] = hm2.reshape(B * H4 * W2, C2)
  M = B * H4 * W4
  x4 = jnp.maximum(hp2_ref[pl.ds(0, M, stride=2), :],
                   hp2_ref[pl.ds(1, M, stride=2), :])          # (M, C2)

  # ------- decoder: both ConvTranspose2d layers as two batched matmuls ------
  #   d1[m, (i,j,co)]    = ReLU(x4[m,:] @ Wd1 + b1)   == dec1 output
  #   dp[m, (i,i',j,j')] = d1[m,:]  @ Wd2 + b2        == dec2 output (packed)
  d1 = jnp.maximum(
      jnp.dot(x4.astype(bf16), wd1_ref[...], preferred_element_type=f32)
      + bd1_ref[...], 0.0)                                     # (M, 4*C3)
  dp = (jnp.dot(d1.astype(bf16), wd2_ref[...], preferred_element_type=f32)
        + bd2_ref[...])                                        # (M, 16)
  out_ref[...] = dp                                            # single-shot store


# ----------------------------------------------------------------------------
# Weight repacking (one-time, trace-level glue)
# ----------------------------------------------------------------------------
def _pack_params(p):
  f32, bf16 = jnp.float32, jnp.bfloat16
  w1 = jnp.transpose(p["enc1_w"], (2, 3, 1, 0)).reshape(9, C1).astype(f32)
  b1 = p["enc1_b"].reshape(1, C1).astype(f32)
  # enc2: (co, ci, kh, kw) -> rows ordered (tap, ci) to match the im2col lanes
  w2 = jnp.transpose(p["enc2_w"], (2, 3, 1, 0)).reshape(9 * C1, C2).astype(bf16)
  b2 = p["enc2_b"].reshape(1, C2).astype(f32)
  # dec1: (ci, co, i, j) -> (ci, (i, j, co))
  wd1 = jnp.transpose(p["dec1_w"], (0, 2, 3, 1)).reshape(C2, 4 * C3).astype(bf16)
  bd1 = jnp.tile(p["dec1_b"], 4).reshape(1, 4 * C3).astype(f32)
  # dec2 folded onto dec1's packed columns: block-diagonal over (i, j),
  # output columns ordered (i, i', j, j').
  w2d = p["dec2_w"][:, 0]                              # (C3, 2, 2) = (c, i', j')
  wd2 = jnp.zeros((2, 2, C3, 2, 2, 2, 2), jnp.float32)
  for i in range(2):
    for j in range(2):
      wd2 = wd2.at[i, j, :, i, :, j, :].set(w2d)
  wd2 = wd2.reshape(4 * C3, 16).astype(bf16)
  bd2 = jnp.broadcast_to(p["dec2_b"].reshape(1, 1), (1, 16)).astype(f32)
  return (w1, b1, w2, b2, wd1, bd1, wd2, bd2)


def _pick_batch_block(n):
  # Several images per grid step to fill the MXU M dimension and amortize the
  # ~0.35us/step pipeline overhead, while keeping >= 2 grid steps when the
  # batch allows it (v7x has two TensorCores).
  for b in (8, 4, 2):
    if n % b == 0 and n // b >= 2:
      return b
  return 1


# ----------------------------------------------------------------------------
# Forward pass (PyTorch-facing NCHW API)
# ----------------------------------------------------------------------------
@jax.jit
def cnn_autoencoder_forward(x_nchw, params):
  N, cin, H, W = x_nchw.shape
  assert cin == 1 and H % 4 == 0 and W % 4 == 0
  x = jnp.transpose(x_nchw, (0, 2, 3, 1)).astype(jnp.float32)       # -> NHWC
  w1, b1, w2, b2, wd1, bd1, wd2, bd2 = _pack_params(params)

  B = _pick_batch_block(N)
  H2, W2, H4, W4 = H // 2, W // 2, H // 4, W // 4

  kernel = functools.partial(_fused_autoencoder_kernel, B=B, H=H, W=W)
  grid_spec = pltpu.PrefetchScalarGridSpec(
      num_scalar_prefetch=0,
      grid=(N // B,),
      in_specs=[
          pl.BlockSpec((B, H, W, 1), lambda n: (n, 0, 0, 0)),   # x
          pl.BlockSpec((9, C1), lambda n: (0, 0)),              # w1
          pl.BlockSpec((1, C1), lambda n: (0, 0)),              # b1
          pl.BlockSpec((9 * C1, C2), lambda n: (0, 0)),         # w2
          pl.BlockSpec((1, C2), lambda n: (0, 0)),              # b2
          pl.BlockSpec((C2, 4 * C3), lambda n: (0, 0)),         # wd1
          pl.BlockSpec((1, 4 * C3), lambda n: (0, 0)),          # bd1
          pl.BlockSpec((4 * C3, 16), lambda n: (0, 0)),         # wd2
          pl.BlockSpec((1, 16), lambda n: (0, 0)),              # bd2
      ],
      out_specs=pl.BlockSpec((B * H4 * W4, 16), lambda n: (n, 0)),
      scratch_shapes=[
          pltpu.VMEM((B, H + 2, W + 2, C1), jnp.float32),       # padded input
          pltpu.VMEM((B, H, W, C1), jnp.float32),               # enc1 accumulator
          pltpu.VMEM((B, H2, W, C1), jnp.float32),              # H-pooled enc1
          pltpu.VMEM((B, H2 + 2, W2 + 2, C1), jnp.float32),     # padded enc2 input
          pltpu.VMEM((B, H2, W2, 9 * C1), jnp.float32),         # enc2 im2col
          pltpu.VMEM((B * H4 * W2, C2), jnp.float32),           # H-pooled enc2
      ],
  )
  out_pack = pl.pallas_call(
      kernel,
      out_shape=jax.ShapeDtypeStruct((N * H4 * W4, 16), jnp.float32),
      grid_spec=grid_spec,
      compiler_params=pltpu.CompilerParams(
          dimension_semantics=("parallel",)),
  )(x, w1, b1, w2, b2, wd1, bd1, wd2, bd2)

  # Tiny depth-to-space of the packed output:
  # (nb, h4, w4, (i, i', j, j')) -> (nb, 1, 4*h4+2i+i', 4*w4+2j+j')
  op = out_pack.reshape(N, H4, W4, 2, 2, 2, 2)
  op = jnp.transpose(op, (0, 1, 3, 4, 2, 5, 6)).reshape(N, H, W)
  return op[:, None, :, :]                                          # -> NCHW


# ----------------------------------------------------------------------------
# Deterministic parameter init (PyTorch weight layouts, PyTorch-style uniform)
# ----------------------------------------------------------------------------
def init_params(key):
  ks = jax.random.split(key, 8)

  def u(k, shape, fan_in):
    bound = 1.0 / jnp.sqrt(float(fan_in))
    return jax.random.uniform(k, shape, jnp.float32, -bound, bound)

  return {
      "enc1_w": u(ks[0], (32, 1, 3, 3), 1 * 9),
      "enc1_b": u(ks[1], (32,), 1 * 9),
      "enc2_w": u(ks[2], (64, 32, 3, 3), 32 * 9),
      "enc2_b": u(ks[3], (64,), 32 * 9),
      "dec1_w": u(ks[4], (64, 32, 2, 2), 64 * 4),
      "dec1_b": u(ks[5], (32,), 64 * 4),
      "dec2_w": u(ks[6], (32, 1, 2, 2), 32 * 4),
      "dec2_b": u(ks[7], (1,), 32 * 4),
  }


# ----------------------------------------------------------------------------
# Pure-JAX reference (correctness check against the Pallas path)
# ----------------------------------------------------------------------------
def reference_forward(x_nchw, p):
  x = jnp.transpose(x_nchw, (0, 2, 3, 1)).astype(jnp.float32)

  def conv(x, w, b):
    w_hwio = jnp.transpose(w, (2, 3, 1, 0))
    y = jax.lax.conv_general_dilated(
        x, w_hwio, (1, 1), "SAME",
        dimension_numbers=("NHWC", "HWIO", "NHWC"))
    return jax.nn.relu(y + b)

  def pool(x):
    N, H, W, C = x.shape
    return x.reshape(N, H // 2, 2, W // 2, 2, C).max(axis=(2, 4))

  def convt(x, w, b, relu):
    y = jnp.einsum("nhwc,coij->nhiwjo", x, w)
    N, H, _, W, _, Co = y.shape
    y = y.reshape(N, 2 * H, 2 * W, Co) + b
    return jax.nn.relu(y) if relu else y

  h = conv(x, p["enc1_w"], p["enc1_b"])
  h = pool(h)
  h = conv(h, p["enc2_w"], p["enc2_b"])
  h = pool(h)
  h = convt(h, p["dec1_w"], p["dec1_b"], True)
  h = convt(h, p["dec2_w"], p["dec2_b"], False)
  return jnp.transpose(h, (0, 3, 1, 2))


if __name__ == "__main__":
  key = jax.random.PRNGKey(0)
  k_x, k_p = jax.random.split(key)
  # MNIST-like but small: batch=2, 1 channel, 16x16 spatial (must be /4).
  x = jax.random.normal(k_x, (2, 1, 16, 16), dtype=jnp.float32)
  params = init_params(k_p)

  out = jax.block_until_ready(cnn_autoencoder_forward(x, params))
  ref = jax.block_until_ready(reference_forward(x, params))

  assert out.shape == (2, 1, 16, 16), out.shape
  # bf16 MXU inputs (kernel) vs. default-precision XLA convs (reference):
  # observed/expected differences are well below 1e-3 at these scales.
  max_err = float(jnp.max(jnp.abs(out - ref)))
  assert max_err < 2e-3, f"max_err={max_err}"
  print("KERNEL_OK")
</pallas_src>

<mosaic_0001>
module attributes {stable_mosaic.version = 11 : i64} {
  func.func @_fused_autoencoder_kernel(%arg0: i32, %arg1: memref<1x16x16x1xf32, #tpu.memory_space<vmem>>, %arg2: memref<9x32xf32, #tpu.memory_space<vmem>>, %arg3: memref<1x32xf32, #tpu.memory_space<vmem>>, %arg4: memref<288x64xbf16, #tpu.memory_space<vmem>>, %arg5: memref<1x64xf32, #tpu.memory_space<vmem>>, %arg6: memref<64x128xbf16, #tpu.memory_space<vmem>>, %arg7: memref<1x128xf32, #tpu.memory_space<vmem>>, %arg8: memref<128x16xbf16, #tpu.memory_space<vmem>>, %arg9: memref<1x16xf32, #tpu.memory_space<vmem>>, %arg10: memref<16x16xf32, #tpu.memory_space<vmem>>, %arg11: memref<1x18x18x32xf32, #tpu.memory_space<vmem>>, %arg12: memref<1x16x16x32xf32, #tpu.memory_space<vmem>>, %arg13: memref<1x8x16x32xf32, #tpu.memory_space<vmem>>, %arg14: memref<1x10x10x32xf32, #tpu.memory_space<vmem>>, %arg15: memref<1x8x8x288xf32, #tpu.memory_space<vmem>>, %arg16: memref<32x64xf32, #tpu.memory_space<vmem>>) attributes {dimension_semantics = [#tpu.dimension_semantics<parallel>], iteration_bounds = array<i64: 2>, scalar_prefetch = 0 : i64, scratch_operands = 6 : i64, tpu.core_type = #tpu.core_type<tc>, window_params = [{transform_indices = @transform_0, window_bounds = array<i64: 1, 16, 16, 1>}, {pipeline_mode = #tpu.pipeline_mode<synchronous>, transform_indices = @transform_1, window_bounds = array<i64: 9, 32>}, {pipeline_mode = #tpu.pipeline_mode<synchronous>, transform_indices = @transform_2, window_bounds = array<i64: 1, 32>}, {pipeline_mode = #tpu.pipeline_mode<synchronous>, transform_indices = @transform_3, window_bounds = array<i64: 288, 64>}, {pipeline_mode = #tpu.pipeline_mode<synchronous>, transform_indices = @transform_4, window_bounds = array<i64: 1, 64>}, {pipeline_mode = #tpu.pipeline_mode<synchronous>, transform_indices = @transform_5, window_bounds = array<i64: 64, 128>}, {pipeline_mode = #tpu.pipeline_mode<synchronous>, transform_indices = @transform_6, window_bounds = array<i64: 1, 128>}, {pipeline_mode = #tpu.pipeline_mode<synchronous>, transform_indices = @transform_7, window_bounds = array<i64: 128, 16>}, {pipeline_mode = #tpu.pipeline_mode<synchronous>, transform_indices = @transform_8, window_bounds = array<i64: 1, 16>}, {transform_indices = @transform_9, window_bounds = array<i64: 16, 16>}]} {
    %cst = arith.constant 0.000000e+00 : f32
    %0 = vector.broadcast %cst : f32 to vector<1x18x18x32xf32>
    %c0 = arith.constant 0 : index
    %c0_0 = arith.constant 0 : index
    %c0_1 = arith.constant 0 : index
    %c0_2 = arith.constant 0 : index
    %1 = vector.load %arg11[%c0, %c0_0, %c0_1, %c0_2] : memref<1x18x18x32xf32, #tpu.memory_space<vmem>>, vector<1x18x18x32xf32>
    tpu.vector_store %arg11[%c0, %c0_0, %c0_1, %c0_2], %0 {strides = array<i32>} : memref<1x18x18x32xf32, #tpu.memory_space<vmem>>, vector<1x18x18x32xf32>,
    %c0_3 = arith.constant 0 : index
    %c0_4 = arith.constant 0 : index
    %c0_5 = arith.constant 0 : index
    %c0_6 = arith.constant 0 : index
    %2 = vector.load %arg1[%c0_3, %c0_4, %c0_5, %c0_6] : memref<1x16x16x1xf32, #tpu.memory_space<vmem>>, vector<1x16x16x1xf32>
    %3 = vector.shape_cast %2 : vector<1x16x16x1xf32> to vector<1x16x16x1xf32>
    %4 = vector.broadcast %3 : vector<1x16x16x1xf32> to vector<1x16x16x32xf32>
    %c0_7 = arith.constant 0 : index
    %c1 = arith.constant 1 : index
    %c1_8 = arith.constant 1 : index
    %c0_9 = arith.constant 0 : index
    %5 = vector.load %arg11[%c0_7, %c1, %c1_8, %c0_9] : memref<1x18x18x32xf32, #tpu.memory_space<vmem>>, vector<1x16x16x32xf32>
    tpu.vector_store %arg11[%c0_7, %c1, %c1_8, %c0_9], %4 {strides = array<i32>} : memref<1x18x18x32xf32, #tpu.memory_space<vmem>>, vector<1x16x16x32xf32>,
    %c0_10 = arith.constant 0 : index
    %c0_11 = arith.constant 0 : index
    %6 = vector.load %arg3[%c0_10, %c0_11] : memref<1x32xf32, #tpu.memory_space<vmem>>, vector<1x32xf32>
    %7 = vector.shape_cast %6 : vector<1x32xf32> to vector<1x1x1x32xf32>
    %8 = vector.broadcast %7 : vector<1x1x1x32xf32> to vector<1x16x16x32xf32>
    %c0_12 = arith.constant 0 : index
    %c0_13 = arith.constant 0 : index
    %c0_14 = arith.constant 0 : index
    %c0_15 = arith.constant 0 : index
    %9 = vector.load %arg12[%c0_12, %c0_13, %c0_14, %c0_15] : memref<1x16x16x32xf32, #tpu.memory_space<vmem>>, vector<1x16x16x32xf32>
    tpu.vector_store %arg12[%c0_12, %c0_13, %c0_14, %c0_15], %8 {strides = array<i32>} : memref<1x16x16x32xf32, #tpu.memory_space<vmem>>, vector<1x16x16x32xf32>,
    %c0_16 = arith.constant 0 : index
    %c0_17 = arith.constant 0 : index
    %c0_18 = arith.constant 0 : index
    %c0_19 = arith.constant 0 : index
    %10 = vector.load %arg12[%c0_16, %c0_17, %c0_18, %c0_19] : memref<1x16x16x32xf32, #tpu.memory_space<vmem>>, vector<1x16x16x32xf32>
    %c0_20 = arith.constant 0 : index
    %c0_21 = arith.constant 0 : index
    %c0_22 = arith.constant 0 : index
    %c0_23 = arith.constant 0 : index
    %11 = vector.load %arg11[%c0_20, %c0_21, %c0_22, %c0_23] : memref<1x18x18x32xf32, #tpu.memory_space<vmem>>, vector<1x16x16x32xf32>
    %c0_24 = arith.constant 0 : index
    %c0_25 = arith.constant 0 : index
    %12 = vector.load %arg2[%c0_24, %c0_25] : memref<9x32xf32, #tpu.memory_space<vmem>>, vector<1x32xf32>
    %13 = vector.shape_cast %12 : vector<1x32xf32> to vector<1x1x1x32xf32>
    %14 = vector.broadcast %13 : vector<1x1x1x32xf32> to vector<1x16x16x32xf32>
    %15 = arith.mulf %11, %14 : vector<1x16x16x32xf32>
    %16 = arith.addf %10, %15 : vector<1x16x16x32xf32>
    %c0_26 = arith.constant 0 : index
    %c0_27 = arith.constant 0 : index
    %c0_28 = arith.constant 0 : index
    %c0_29 = arith.constant 0 : index
    %17 = vector.load %arg12[%c0_26, %c0_27, %c0_28, %c0_29] : memref<1x16x16x32xf32, #tpu.memory_space<vmem>>, vector<1x16x16x32xf32>
    tpu.vector_store %arg12[%c0_26, %c0_27, %c0_28, %c0_29], %16 {strides = array<i32>} : memref<1x16x16x32xf32, #tpu.memory_space<vmem>>, vector<1x16x16x32xf32>,
    %c0_30 = arith.constant 0 : index
    %c0_31 = arith.constant 0 : index
    %c0_32 = arith.constant 0 : index
    %c0_33 = arith.constant 0 : index
    %18 = vector.load %arg12[%c0_30, %c0_31, %c0_32, %c0_33] : memref<1x16x16x32xf32, #tpu.memory_space<vmem>>, vector<1x16x16x32xf32>
    %c0_34 = arith.constant 0 : index
    %c0_35 = arith.constant 0 : index
    %c1_36 = arith.constant 1 : index
    %c0_37 = arith.constant 0 : index
    %19 = vector.load %arg11[%c0_34, %c0_35, %c1_36, %c0_37] : memref<1x18x18x32xf32, #tpu.memory_space<vmem>>, vector<1x16x16x32xf32>
    %c1_38 = arith.constant 1 : index
    %c0_39 = arith.constant 0 : index
    %20 = vector.load %arg2[%c1_38, %c0_39] : memref<9x32xf32, #tpu.memory_space<vmem>>, vector<1x32xf32>
    %21 = vector.shape_cast %20 : vector<1x32xf32> to vector<1x1x1x32xf32>
    %22 = vector.broadcast %21 : vector<1x1x1x32xf32> to vector<1x16x16x32xf32>
    %23 = arith.mulf %19, %22 : vector<1x16x16x32xf32>
    %24 = arith.addf %18, %23 : vector<1x16x16x32xf32>
    %c0_40 = arith.constant 0 : index
    %c0_41 = arith.constant 0 : index
    %c0_42 = arith.constant 0 : index
    %c0_43 = arith.constant 0 : index
    %25 = vector.load %arg12[%c0_40, %c0_41, %c0_42, %c0_43] : memref<1x16x16x32xf32, #tpu.memory_space<vmem>>, vector<1x16x16x32xf32>
    tpu.vector_store %arg12[%c0_40, %c0_41, %c0_42, %c0_43], %24 {strides = array<i32>} : memref<1x16x16x32xf32, #tpu.memory_space<vmem>>, vector<1x16x16x32xf32>,
    %c0_44 = arith.constant 0 : index
    %c0_45 = arith.constant 0 : index
    %c0_46 = arith.constant 0 : index
    %c0_47 = arith.constant 0 : index
    %26 = vector.load %arg12[%c0_44, %c0_45, %c0_46, %c0_47] : memref<1x16x16x32xf32, #tpu.memory_space<vmem>>, vector<1x16x16x32xf32>
    %c0_48 = arith.constant 0 : index
    %c0_49 = arith.constant 0 : index
    %c2 = arith.constant 2 : index
    %c0_50 = arith.constant 0 : index
    %27 = vector.load %arg11[%c0_48, %c0_49, %c2, %c0_50] : memref<1x18x18x32xf32, #tpu.memory_space<vmem>>, vector<1x16x16x32xf32>
    %c2_51 = arith.constant 2 : index
    %c0_52 = arith.constant 0 : index
    %28 = vector.load %arg2[%c2_51, %c0_52] : memref<9x32xf32, #tpu.memory_space<vmem>>, vector<1x32xf32>
    %29 = vector.shape_cast %28 : vector<1x32xf32> to vector<1x1x1x32xf32>
    %30 = vector.broadcast %29 : vector<1x1x1x32xf32> to vector<1x16x16x32xf32>
    %31 = arith.mulf %27, %30 : vector<1x16x16x32xf32>
    %32 = arith.addf %26, %31 : vector<1x16x16x32xf32>
    %c0_53 = arith.constant 0 : index
    %c0_54 = arith.constant 0 : index
    %c0_55 = arith.constant 0 : index
    %c0_56 = arith.constant 0 : index
    %33 = vector.load %arg12[%c0_53, %c0_54, %c0_55, %c0_56] : memref<1x16x16x32xf32, #tpu.memory_space<vmem>>, vector<1x16x16x32xf32>
    tpu.vector_store %arg12[%c0_53, %c0_54, %c0_55, %c0_56], %32 {strides = array<i32>} : memref<1x16x16x32xf32, #tpu.memory_space<vmem>>, vector<1x16x16x32xf32>,
    %c0_57 = arith.constant 0 : index
    %c0_58 = arith.constant 0 : index
    %c0_59 = arith.constant 0 : index
    %c0_60 = arith.constant 0 : index
    %34 = vector.load %arg12[%c0_57, %c0_58, %c0_59, %c0_60] : memref<1x16x16x32xf32, #tpu.memory_space<vmem>>, vector<1x16x16x32xf32>
    %c0_61 = arith.constant 0 : index
    %c1_62 = arith.constant 1 : index
    %c0_63 = arith.constant 0 : index
    %c0_64 = arith.constant 0 : index
    %35 = vector.load %arg11[%c0_61, %c1_62, %c0_63, %c0_64] : memref<1x18x18x32xf32, #tpu.memory_space<vmem>>, vector<1x16x16x32xf32>
    %c3 = arith.constant 3 : index
    %c0_65 = arith.constant 0 : index
    %36 = vector.load %arg2[%c3, %c0_65] : memref<9x32xf32, #tpu.memory_space<vmem>>, vector<1x32xf32>
    %37 = vector.shape_cast %36 : vector<1x32xf32> to vector<1x1x1x32xf32>
    %38 = vector.broadcast %37 : vector<1x1x1x32xf32> to vector<1x16x16x32xf32>
    %39 = arith.mulf %35, %38 : vector<1x16x16x32xf32>
    %40 = arith.addf %34, %39 : vector<1x16x16x32xf32>
    %c0_66 = arith.constant 0 : index
    %c0_67 = arith.constant 0 : index
    %c0_68 = arith.constant 0 : index
    %c0_69 = arith.constant 0 : index
    %41 = vector.load %arg12[%c0_66, %c0_67, %c0_68, %c0_69] : memref<1x16x16x32xf32, #tpu.memory_space<vmem>>, vector<1x16x16x32xf32>
    tpu.vector_store %arg12[%c0_66, %c0_67, %c0_68, %c0_69], %40 {strides = array<i32>} : memref<1x16x16x32xf32, #tpu.memory_space<vmem>>, vector<1x16x16x32xf32>,
    %c0_70 = arith.constant 0 : index
    %c0_71 = arith.constant 0 : index
    %c0_72 = arith.constant 0 : index
    %c0_73 = arith.constant 0 : index
    %42 = vector.load %arg12[%c0_70, %c0_71, %c0_72, %c0_73] : memref<1x16x16x32xf32, #tpu.memory_space<vmem>>, vector<1x16x16x32xf32>
    %c0_74 = arith.constant 0 : index
    %c1_75 = arith.constant 1 : index
    %c1_76 = arith.constant 1 : index
    %c0_77 = arith.constant 0 : index
    %43 = vector.load %arg11[%c0_74, %c1_75, %c1_76, %c0_77] : memref<1x18x18x32xf32, #tpu.memory_space<vmem>>, vector<1x16x16x32xf32>
    %c4 = arith.constant 4 : index
    %c0_78 = arith.constant 0 : index
    %44 = vector.load %arg2[%c4, %c0_78] : memref<9x32xf32, #tpu.memory_space<vmem>>, vector<1x32xf32>
    %45 = vector.shape_cast %44 : vector<1x32xf32> to vector<1x1x1x32xf32>
    %46 = vector.broadcast %45 : vector<1x1x1x32xf32> to vector<1x16x16x32xf32>
    %47 = arith.mulf %43, %46 : vector<1x16x16x32xf32>
    %48 = arith.addf %42, %47 : vector<1x16x16x32xf32>
    %c0_79 = arith.constant 0 : index
    %c0_80 = arith.constant 0 : index
    %c0_81 = arith.constant 0 : index
    %c0_82 = arith.constant 0 : index
    %49 = vector.load %arg12[%c0_79, %c0_80, %c0_81, %c0_82] : memref<1x16x16x32xf32, #tpu.memory_space<vmem>>, vector<1x16x16x32xf32>
    tpu.vector_store %arg12[%c0_79, %c0_80, %c0_81, %c0_82], %48 {strides = array<i32>} : memref<1x16x16x32xf32, #tpu.memory_space<vmem>>, vector<1x16x16x32xf32>,
    %c0_83 = arith.constant 0 : index
    %c0_84 = arith.constant 0 : index
    %c0_85 = arith.constant 0 : index
    %c0_86 = arith.constant 0 : index
    %50 = vector.load %arg12[%c0_83, %c0_84, %c0_85, %c0_86] : memref<1x16x16x32xf32, #tpu.memory_space<vmem>>, vector<1x16x16x32xf32>
    %c0_87 = arith.constant 0 : index
    %c1_88 = arith.constant 1 : index
    %c2_89 = arith.constant 2 : index
    %c0_90 = arith.constant 0 : index
    %51 = vector.load %arg11[%c0_87, %c1_88, %c2_89, %c0_90] : memref<1x18x18x32xf32, #tpu.memory_space<vmem>>, vector<1x16x16x32xf32>
    %c5 = arith.constant 5 : index
    %c0_91 = arith.constant 0 : index
    %52 = vector.load %arg2[%c5, %c0_91] : memref<9x32xf32, #tpu.memory_space<vmem>>, vector<1x32xf32>
    %53 = vector.shape_cast %52 : vector<1x32xf32> to vector<1x1x1x32xf32>
    %54 = vector.broadcast %53 : vector<1x1x1x32xf32> to vector<1x16x16x32xf32>
    %55 = arith.mulf %51, %54 : vector<1x16x16x32xf32>
    %56 = arith.addf %50, %55 : vector<1x16x16x32xf32>
    %c0_92 = arith.constant 0 : index
    %c0_93 = arith.constant 0 : index
    %c0_94 = arith.constant 0 : index
    %c0_95 = arith.constant 0 : index
    %57 = vector.load %arg12[%c0_92, %c0_93, %c0_94, %c0_95] : memref<1x16x16x32xf32, #tpu.memory_space<vmem>>, vector<1x16x16x32xf32>
    tpu.vector_store %arg12[%c0_92, %c0_93, %c0_94, %c0_95], %56 {strides = array<i32>} : memref<1x16x16x32xf32, #tpu.memory_space<vmem>>, vector<1x16x16x32xf32>,
    %c0_96 = arith.constant 0 : index
    %c0_97 = arith.constant 0 : index
    %c0_98 = arith.constant 0 : index
    %c0_99 = arith.constant 0 : index
    %58 = vector.load %arg12[%c0_96, %c0_97, %c0_98, %c0_99] : memref<1x16x16x32xf32, #tpu.memory_space<vmem>>, vector<1x16x16x32xf32>
    %c0_100 = arith.constant 0 : index
    %c2_101 = arith.constant 2 : index
    %c0_102 = arith.constant 0 : index
    %c0_103 = arith.constant 0 : index
    %59 = vector.load %arg11[%c0_100, %c2_101, %c0_102, %c0_103] : memref<1x18x18x32xf32, #tpu.memory_space<vmem>>, vector<1x16x16x32xf32>
    %c6 = arith.constant 6 : index
    %c0_104 = arith.constant 0 : index
    %60 = vector.load %arg2[%c6, %c0_104] : memref<9x32xf32, #tpu.memory_space<vmem>>, vector<1x32xf32>
    %61 = vector.shape_cast %60 : vector<1x32xf32> to vector<1x1x1x32xf32>
    %62 = vector.broadcast %61 : vector<1x1x1x32xf32> to vector<1x16x16x32xf32>
    %63 = arith.mulf %59, %62 : vector<1x16x16x32xf32>
    %64 = arith.addf %58, %63 : vector<1x16x16x32xf32>
    %c0_105 = arith.constant 0 : index
    %c0_106 = arith.constant 0 : index
    %c0_107 = arith.constant 0 : index
    %c0_108 = arith.constant 0 : index
    %65 = vector.load %arg12[%c0_105, %c0_106, %c0_107, %c0_108] : memref<1x16x16x32xf32, #tpu.memory_space<vmem>>, vector<1x16x16x32xf32>
    tpu.vector_store %arg12[%c0_105, %c0_106, %c0_107, %c0_108], %64 {strides = array<i32>} : memref<1x16x16x32xf32, #tpu.memory_space<vmem>>, vector<1x16x16x32xf32>,
    %c0_109 = arith.constant 0 : index
    %c0_110 = arith.constant 0 : index
    %c0_111 = arith.constant 0 : index
    %c0_112 = arith.constant 0 : index
    %66 = vector.load %arg12[%c0_109, %c0_110, %c0_111, %c0_112] : memref<1x16x16x32xf32, #tpu.memory_space<vmem>>, vector<1x16x16x32xf32>
    %c0_113 = arith.constant 0 : index
    %c2_114 = arith.constant 2 : index
    %c1_115 = arith.constant 1 : index
    %c0_116 = arith.constant 0 : index
    %67 = vector.load %arg11[%c0_113, %c2_114, %c1_115, %c0_116] : memref<1x18x18x32xf32, #tpu.memory_space<vmem>>, vector<1x16x16x32xf32>
    %c7 = arith.constant 7 : index
    %c0_117 = arith.constant 0 : index
    %68 = vector.load %arg2[%c7, %c0_117] : memref<9x32xf32, #tpu.memory_space<vmem>>, vector<1x32xf32>
    %69 = vector.shape_cast %68 : vector<1x32xf32> to vector<1x1x1x32xf32>
    %70 = vector.broadcast %69 : vector<1x1x1x32xf32> to vector<1x16x16x32xf32>
    %71 = arith.mulf %67, %70 : vector<1x16x16x32xf32>
    %72 = arith.addf %66, %71 : vector<1x16x16x32xf32>
    %c0_118 = arith.constant 0 : index
    %c0_119 = arith.constant 0 : index
    %c0_120 = arith.constant 0 : index
    %c0_121 = arith.constant 0 : index
    %73 = vector.load %arg12[%c0_118, %c0_119, %c0_120, %c0_121] : memref<1x16x16x32xf32, #tpu.memory_space<vmem>>, vector<1x16x16x32xf32>
    tpu.vector_store %arg12[%c0_118, %c0_119, %c0_120, %c0_121], %72 {strides = array<i32>} : memref<1x16x16x32xf32, #tpu.memory_space<vmem>>, vector<1x16x16x32xf32>,
    %c0_122 = arith.constant 0 : index
    %c0_123 = arith.constant 0 : index
    %c0_124 = arith.constant 0 : index
    %c0_125 = arith.constant 0 : index
    %74 = vector.load %arg12[%c0_122, %c0_123, %c0_124, %c0_125] : memref<1x16x16x32xf32, #tpu.memory_space<vmem>>, vector<1x16x16x32xf32>
    %c0_126 = arith.constant 0 : index
    %c2_127 = arith.constant 2 : index
    %c2_128 = arith.constant 2 : index
    %c0_129 = arith.constant 0 : index
    %75 = vector.load %arg11[%c0_126, %c2_127, %c2_128, %c0_129] : memref<1x18x18x32xf32, #tpu.memory_space<vmem>>, vector<1x16x16x32xf32>
    %c8 = arith.constant 8 : index
    %c0_130 = arith.constant 0 : index
    %76 = vector.load %arg2[%c8, %c0_130] : memref<9x32xf32, #tpu.memory_space<vmem>>, vector<1x32xf32>
    %77 = vector.shape_cast %76 : vector<1x32xf32> to vector<1x1x1x32xf32>
    %78 = vector.broadcast %77 : vector<1x1x1x32xf32> to vector<1x16x16x32xf32>
    %79 = arith.mulf %75, %78 : vector<1x16x16x32xf32>
    %80 = arith.addf %74, %79 : vector<1x16x16x32xf32>
    %c0_131 = arith.constant 0 : index
    %c0_132 = arith.constant 0 : index
    %c0_133 = arith.constant 0 : index
    %c0_134 = arith.constant 0 : index
    %81 = vector.load %arg12[%c0_131, %c0_132, %c0_133, %c0_134] : memref<1x16x16x32xf32, #tpu.memory_space<vmem>>, vector<1x16x16x32xf32>
    tpu.vector_store %arg12[%c0_131, %c0_132, %c0_133, %c0_134], %80 {strides = array<i32>} : memref<1x16x16x32xf32, #tpu.memory_space<vmem>>, vector<1x16x16x32xf32>,
    %c0_135 = arith.constant 0 : index
    %c0_136 = arith.constant 0 : index
    %c0_137 = arith.constant 0 : index
    %c0_138 = arith.constant 0 : index
    %82 = vector.load %arg12[%c0_135, %c0_136, %c0_137, %c0_138] : memref<1x16x16x32xf32, #tpu.memory_space<vmem>>, vector<1x16x16x32xf32>
    %cst_139 = arith.constant 0.000000e+00 : f32
    %83 = vector.broadcast %cst_139 : f32 to vector<1x16x16x32xf32>
    %84 = arith.maximumf %82, %83 : vector<1x16x16x32xf32>
    %85 = vector.shape_cast %84 : vector<1x16x16x32xf32> to vector<1x8x2x16x32xf32>
    %86 = vector.extract_strided_slice %85 {offsets = [0, 0, 0, 0, 0], sizes = [1, 8, 1, 16, 32], strides = [1, 1, 1, 1, 1]} : vector<1x8x2x16x32xf32> to vector<1x8x1x16x32xf32>
    %87 = vector.shape_cast %86 : vector<1x8x1x16x32xf32> to vector<1x8x16x32xf32>
    %88 = vector.extract_strided_slice %85 {offsets = [0, 0, 1, 0, 0], sizes = [1, 8, 1, 16, 32], strides = [1, 1, 1, 1, 1]} : vector<1x8x2x16x32xf32> to vector<1x8x1x16x32xf32>
    %89 = vector.shape_cast %88 : vector<1x8x1x16x32xf32> to vector<1x8x16x32xf32>
    %90 = arith.maximumf %87, %89 : vector<1x8x16x32xf32>
    %c0_140 = arith.constant 0 : index
    %c0_141 = arith.constant 0 : index
    %c0_142 = arith.constant 0 : index
    %c0_143 = arith.constant 0 : index
    %91 = vector.load %arg13[%c0_140, %c0_141, %c0_142, %c0_143] : memref<1x8x16x32xf32, #tpu.memory_space<vmem>>, vector<1x8x16x32xf32>
    tpu.vector_store %arg13[%c0_140, %c0_141, %c0_142, %c0_143], %90 {strides = array<i32>} : memref<1x8x16x32xf32, #tpu.memory_space<vmem>>, vector<1x8x16x32xf32>,
    %c0_144 = arith.constant 0 : index
    %c0_145 = arith.constant 0 : index
    %c0_146 = arith.constant 0 : index
    %c0_147 = arith.constant 0 : index
    %92 = tpu.strided_load %arg13[%c0_144, %c0_145, %c0_146, %c0_147] {strides = array<i32: 1, 1, 2, 1>} : memref<1x8x16x32xf32, #tpu.memory_space<vmem>>, vector<1x8x8x32xf32>
    %c0_148 = arith.constant 0 : index
    %c0_149 = arith.constant 0 : index
    %c1_150 = arith.constant 1 : index
    %c0_151 = arith.constant 0 : index
    %93 = tpu.strided_load %arg13[%c0_148, %c0_149, %c1_150, %c0_151] {strides = array<i32: 1, 1, 2, 1>} : memref<1x8x16x32xf32, #tpu.memory_space<vmem>>, vector<1x8x8x32xf32>
    %94 = arith.maximumf %92, %93 : vector<1x8x8x32xf32>
    %cst_152 = arith.constant 0.000000e+00 : f32
    %95 = vector.broadcast %cst_152 : f32 to vector<1x10x10x32xf32>
    %c0_153 = arith.constant 0 : index
    %c0_154 = arith.constant 0 : index
    %c0_155 = arith.constant 0 : index
    %c0_156 = arith.constant 0 : index
    %96 = vector.load %arg14[%c0_153, %c0_154, %c0_155, %c0_156] : memref<1x10x10x32xf32, #tpu.memory_space<vmem>>, vector<1x10x10x32xf32>
    tpu.vector_store %arg14[%c0_153, %c0_154, %c0_155, %c0_156], %95 {strides = array<i32>} : memref<1x10x10x32xf32, #tpu.memory_space<vmem>>, vector<1x10x10x32xf32>,
    %c0_157 = arith.constant 0 : index
    %c1_158 = arith.constant 1 : index
    %c1_159 = arith.constant 1 : index
    %c0_160 = arith.constant 0 : index
    %97 = vector.load %arg14[%c0_157, %c1_158, %c1_159, %c0_160] : memref<1x10x10x32xf32, #tpu.memory_space<vmem>>, vector<1x8x8x32xf32>
    tpu.vector_store %arg14[%c0_157, %c1_158, %c1_159, %c0_160], %94 {strides = array<i32>} : memref<1x10x10x32xf32, #tpu.memory_space<vmem>>, vector<1x8x8x32xf32>,
    %c0_161 = arith.constant 0 : index
    %c0_162 = arith.constant 0 : index
    %c0_163 = arith.constant 0 : index
    %c0_164 = arith.constant 0 : index
    %98 = vector.load %arg14[%c0_161, %c0_162, %c0_163, %c0_164] : memref<1x10x10x32xf32, #tpu.memory_space<vmem>>, vector<1x8x8x32xf32>
    %c0_165 = arith.constant 0 : index
    %c0_166 = arith.constant 0 : index
    %c0_167 = arith.constant 0 : index
    %c0_168 = arith.constant 0 : index
    %99 = vector.load %arg15[%c0_165, %c0_166, %c0_167, %c0_168] : memref<1x8x8x288xf32, #tpu.memory_space<vmem>>, vector<1x8x8x32xf32>
    tpu.vector_store %arg15[%c0_165, %c0_166, %c0_167, %c0_168], %98 {strides = array<i32>} : memref<1x8x8x288xf32, #tpu.memory_space<vmem>>, vector<1x8x8x32xf32>,
    %c0_169 = arith.constant 0 : index
    %c0_170 = arith.constant 0 : index
    %c1_171 = arith.constant 1 : index
    %c0_172 = arith.constant 0 : index
    %100 = vector.load %arg14[%c0_169, %c0_170, %c1_171, %c0_172] : memref<1x10x10x32xf32, #tpu.memory_space<vmem>>, vector<1x8x8x32xf32>
    %c0_173 = arith.constant 0 : index
    %c0_174 = arith.constant 0 : index
    %c0_175 = arith.constant 0 : index
    %c32 = arith.constant 32 : index
    %101 = vector.load %arg15[%c0_173, %c0_174, %c0_175, %c32] : memref<1x8x8x288xf32, #tpu.memory_space<vmem>>, vector<1x8x8x32xf32>
    tpu.vector_store %arg15[%c0_173, %c0_174, %c0_175, %c32], %100 {strides = array<i32>} : memref<1x8x8x288xf32, #tpu.memory_space<vmem>>, vector<1x8x8x32xf32>,
    %c0_176 = arith.constant 0 : index
    %c0_177 = arith.constant 0 : index
    %c2_178 = arith.constant 2 : index
    %c0_179 = arith.constant 0 : index
    %102 = vector.load %arg14[%c0_176, %c0_177, %c2_178, %c0_179] : memref<1x10x10x32xf32, #tpu.memory_space<vmem>>, vector<1x8x8x32xf32>
    %c0_180 = arith.constant 0 : index
    %c0_181 = arith.constant 0 : index
    %c0_182 = arith.constant 0 : index
    %c64 = arith.constant 64 : index
    %103 = vector.load %arg15[%c0_180, %c0_181, %c0_182, %c64] : memref<1x8x8x288xf32, #tpu.memory_space<vmem>>, vector<1x8x8x32xf32>
    tpu.vector_store %arg15[%c0_180, %c0_181, %c0_182, %c64], %102 {strides = array<i32>} : memref<1x8x8x288xf32, #tpu.memory_space<vmem>>, vector<1x8x8x32xf32>,
    %c0_183 = arith.constant 0 : index
    %c1_184 = arith.constant 1 : index
    %c0_185 = arith.constant 0 : index
    %c0_186 = arith.constant 0 : index
    %104 = vector.load %arg14[%c0_183, %c1_184, %c0_185, %c0_186] : memref<1x10x10x32xf32, #tpu.memory_space<vmem>>, vector<1x8x8x32xf32>
    %c0_187 = arith.constant 0 : index
    %c0_188 = arith.constant 0 : index
    %c0_189 = arith.constant 0 : index
    %c96 = arith.constant 96 : index
    %105 = vector.load %arg15[%c0_187, %c0_188, %c0_189, %c96] : memref<1x8x8x288xf32, #tpu.memory_space<vmem>>, vector<1x8x8x32xf32>
    tpu.vector_store %arg15[%c0_187, %c0_188, %c0_189, %c96], %104 {strides = array<i32>} : memref<1x8x8x288xf32, #tpu.memory_space<vmem>>, vector<1x8x8x32xf32>,
    %c0_190 = arith.constant 0 : index
    %c1_191 = arith.constant 1 : index
    %c1_192 = arith.constant 1 : index
    %c0_193 = arith.constant 0 : index
    %106 = vector.load %arg14[%c0_190, %c1_191, %c1_192, %c0_193] : memref<1x10x10x32xf32, #tpu.memory_space<vmem>>, vector<1x8x8x32xf32>
    %c0_194 = arith.constant 0 : index
    %c0_195 = arith.constant 0 : index
    %c0_196 = arith.constant 0 : index
    %c128 = arith.constant 128 : index
    %107 = vector.load %arg15[%c0_194, %c0_195, %c0_196, %c128] : memref<1x8x8x288xf32, #tpu.memory_space<vmem>>, vector<1x8x8x32xf32>
    tpu.vector_store %arg15[%c0_194, %c0_195, %c0_196, %c128], %106 {strides = array<i32>} : memref<1x8x8x288xf32, #tpu.memory_space<vmem>>, vector<1x8x8x32xf32>,
    %c0_197 = arith.constant 0 : index
    %c1_198 = arith.constant 1 : index
    %c2_199 = arith.constant 2 : index
    %c0_200 = arith.constant 0 : index
    %108 = vector.load %arg14[%c0_197, %c1_198, %c2_199, %c0_200] : memref<1x10x10x32xf32, #tpu.memory_space<vmem>>, vector<1x8x8x32xf32>
    %c0_201 = arith.constant 0 : index
    %c0_202 = arith.constant 0 : index
    %c0_203 = arith.constant 0 : index
    %c160 = arith.constant 160 : index
    %109 = vector.load %arg15[%c0_201, %c0_202, %c0_203, %c160] : memref<1x8x8x288xf32, #tpu.memory_space<vmem>>, vector<1x8x8x32xf32>
    tpu.vector_store %arg15[%c0_201, %c0_202, %c0_203, %c160], %108 {strides = array<i32>} : memref<1x8x8x288xf32, #tpu.memory_space<vmem>>, vector<1x8x8x32xf32>,
    %c0_204 = arith.constant 0 : index
    %c2_205 = arith.constant 2 : index
    %c0_206 = arith.constant 0 : index
    %c0_207 = arith.constant 0 : index
    %110 = vector.load %arg14[%c0_204, %c2_205, %c0_206, %c0_207] : memref<1x10x10x32xf32, #tpu.memory_space<vmem>>, vector<1x8x8x32xf32>
    %c0_208 = arith.constant 0 : index
    %c0_209 = arith.constant 0 : index
    %c0_210 = arith.constant 0 : index
    %c192 = arith.constant 192 : index
    %111 = vector.load %arg15[%c0_208, %c0_209, %c0_210, %c192] : memref<1x8x8x288xf32, #tpu.memory_space<vmem>>, vector<1x8x8x32xf32>
    tpu.vector_store %arg15[%c0_208, %c0_209, %c0_210, %c192], %110 {strides = array<i32>} : memref<1x8x8x288xf32, #tpu.memory_space<vmem>>, vector<1x8x8x32xf32>,
    %c0_211 = arith.constant 0 : index
    %c2_212 = arith.constant 2 : index
    %c1_213 = arith.constant 1 : index
    %c0_214 = arith.constant 0 : index
    %112 = vector.load %arg14[%c0_211, %c2_212, %c1_213, %c0_214] : memref<1x10x10x32xf32, #tpu.memory_space<vmem>>, vector<1x8x8x32xf32>
    %c0_215 = arith.constant 0 : index
    %c0_216 = arith.constant 0 : index
    %c0_217 = arith.constant 0 : index
    %c224 = arith.constant 224 : index
    %113 = vector.load %arg15[%c0_215, %c0_216, %c0_217, %c224] : memref<1x8x8x288xf32, #tpu.memory_space<vmem>>, vector<1x8x8x32xf32>
    tpu.vector_store %arg15[%c0_215, %c0_216, %c0_217, %c224], %112 {strides = array<i32>} : memref<1x8x8x288xf32, #tpu.memory_space<vmem>>, vector<1x8x8x32xf32>,
    %c0_218 = arith.constant 0 : index
    %c2_219 = arith.constant 2 : index
    %c2_220 = arith.constant 2 : index
    %c0_221 = arith.constant 0 : index
    %114 = vector.load %arg14[%c0_218, %c2_219, %c2_220, %c0_221] : memref<1x10x10x32xf32, #tpu.memory_space<vmem>>, vector<1x8x8x32xf32>
    %c0_222 = arith.constant 0 : index
    %c0_223 = arith.constant 0 : index
    %c0_224 = arith.constant 0 : index
    %c256 = arith.constant 256 : index
    %115 = vector.load %arg15[%c0_222, %c0_223, %c0_224, %c256] : memref<1x8x8x288xf32, #tpu.memory_space<vmem>>, vector<1x8x8x32xf32>
    tpu.vector_store %arg15[%c0_222, %c0_223, %c0_224, %c256], %114 {strides = array<i32>} : memref<1x8x8x288xf32, #tpu.memory_space<vmem>>, vector<1x8x8x32xf32>,
    %c0_225 = arith.constant 0 : index
    %c0_226 = arith.constant 0 : index
    %c0_227 = arith.constant 0 : index
    %c0_228 = arith.constant 0 : index
    %116 = vector.load %arg15[%c0_225, %c0_226, %c0_227, %c0_228] : memref<1x8x8x288xf32, #tpu.memory_space<vmem>>, vector<1x8x8x288xf32>
    %117 = vector.shape_cast %116 : vector<1x8x8x288xf32> to vector<64x288xf32>
    %118 = arith.truncf %117 : vector<64x288xf32> to vector<64x288xbf16>
    %c0_229 = arith.constant 0 : index
    %c0_230 = arith.constant 0 : index
    %119 = vector.load %arg4[%c0_229, %c0_230] : memref<288x64xbf16, #tpu.memory_space<vmem>>, vector<288x64xbf16>
    %cst_231 = arith.constant dense<0.000000e+00> : vector<64x64xf32>
    %120 = tpu.matmul %118, %119, %cst_231 {dimension_numbers = #tpu.dot_dimension_numbers<[1], [0], [0], [1], [0, 0, 1, 1], [], []>} : vector<64x288xbf16>, vector<288x64xbf16>, vector<64x64xf32> -> vector<64x64xf32>
    %c0_232 = arith.constant 0 : index
    %c0_233 = arith.constant 0 : index
    %121 = vector.load %arg5[%c0_232, %c0_233] : memref<1x64xf32, #tpu.memory_space<vmem>>, vector<1x64xf32>
    %122 = vector.broadcast %121 : vector<1x64xf32> to vector<64x64xf32>
    %123 = arith.addf %120, %122 : vector<64x64xf32>
    %cst_234 = arith.constant 0.000000e+00 : f32
    %124 = vector.broadcast %cst_234 : f32 to vector<64x64xf32>
    %125 = arith.maximumf %123, %124 : vector<64x64xf32>
    %126 = vector.shape_cast %125 : vector<64x64xf32> to vector<1x4x2x8x64xf32>
    %127 = vector.extract_strided_slice %126 {offsets = [0, 0, 0, 0, 0], sizes = [1, 4, 1, 8, 64], strides = [1, 1, 1, 1, 1]} : vector<1x4x2x8x64xf32> to vector<1x4x1x8x64xf32>
    %128 = vector.shape_cast %127 : vector<1x4x1x8x64xf32> to vector<1x4x8x64xf32>
    %129 = vector.extract_strided_slice %126 {offsets = [0, 0, 1, 0, 0], sizes = [1, 4, 1, 8, 64], strides = [1, 1, 1, 1, 1]} : vector<1x4x2x8x64xf32> to vector<1x4x1x8x64xf32>
    %130 = vector.shape_cast %129 : vector<1x4x1x8x64xf32> to vector<1x4x8x64xf32>
    %131 = arith.maximumf %128, %130 : vector<1x4x8x64xf32>
    %132 = vector.shape_cast %131 : vector<1x4x8x64xf32> to vector<32x64xf32>
    %c0_235 = arith.constant 0 : index
    %c0_236 = arith.constant 0 : index
    %133 = vector.load %arg16[%c0_235, %c0_236] : memref<32x64xf32, #tpu.memory_space<vmem>>, vector<32x64xf32>
    tpu.vector_store %arg16[%c0_235, %c0_236], %132 {strides = array<i32>} : memref<32x64xf32, #tpu.memory_space<vmem>>, vector<32x64xf32>,
    %c0_237 = arith.constant 0 : index
    %c0_238 = arith.constant 0 : index
    %134 = tpu.strided_load %arg16[%c0_237, %c0_238] {strides = array<i32: 2, 1>} : memref<32x64xf32, #tpu.memory_space<vmem>>, vector<16x64xf32>
    %c1_239 = arith.constant 1 : index
    %c0_240 = arith.constant 0 : index
    %135 = tpu.strided_load %arg16[%c1_239, %c0_240] {strides = array<i32: 2, 1>} : memref<32x64xf32, #tpu.memory_space<vmem>>, vector<16x64xf32>
    %136 = arith.maximumf %134, %135 : vector<16x64xf32>
    %137 = arith.truncf %136 : vector<16x64xf32> to vector<16x64xbf16>
    %c0_241 = arith.constant 0 : index
    %c0_242 = arith.constant 0 : index
    %138 = vector.load %arg6[%c0_241, %c0_242] : memref<64x128xbf16, #tpu.memory_space<vmem>>, vector<64x128xbf16>
    %cst_243 = arith.constant dense<0.000000e+00> : vector<16x128xf32>
    %139 = tpu.matmul %137, %138, %cst_243 {dimension_numbers = #tpu.dot_dimension_numbers<[1], [0], [0], [1], [0, 0, 1, 1], [], []>} : vector<16x64xbf16>, vector<64x128xbf16>, vector<16x128xf32> -> vector<16x128xf32>
    %c0_244 = arith.constant 0 : index
    %c0_245 = arith.constant 0 : index
    %140 = vector.load %arg7[%c0_244, %c0_245] : memref<1x128xf32, #tpu.memory_space<vmem>>, vector<1x128xf32>
    %141 = vector.broadcast %140 : vector<1x128xf32> to vector<16x128xf32>
    %142 = arith.addf %139, %141 : vector<16x128xf32>
    %cst_246 = arith.constant 0.000000e+00 : f32
    %143 = vector.broadcast %cst_246 : f32 to vector<16x128xf32>
    %144 = arith.maximumf %142, %143 : vector<16x128xf32>
    %145 = arith.truncf %144 : vector<16x128xf32> to vector<16x128xbf16>
    %c0_247 = arith.constant 0 : index
    %c0_248 = arith.constant 0 : index
    %146 = vector.load %arg8[%c0_247, %c0_248] : memref<128x16xbf16, #tpu.memory_space<vmem>>, vector<128x16xbf16>
    %cst_249 = arith.constant dense<0.000000e+00> : vector<16x16xf32>
    %147 = tpu.matmul %145, %146, %cst_249 {dimension_numbers = #tpu.dot_dimension_numbers<[1], [0], [0], [1], [0, 0, 1, 1], [], []>} : vector<16x128xbf16>, vector<128x16xbf16>, vector<16x16xf32> -> vector<16x16xf32>
    %c0_250 = arith.constant 0 : index
    %c0_251 = arith.constant 0 : index
    %148 = vector.load %arg9[%c0_250, %c0_251] : memref<1x16xf32, #tpu.memory_space<vmem>>, vector<1x16xf32>
    %149 = vector.broadcast %148 : vector<1x16xf32> to vector<16x16xf32>
    %150 = arith.addf %147, %149 : vector<16x16xf32>
    %c0_252 = arith.constant 0 : index
    %c0_253 = arith.constant 0 : index
    %151 = vector.load %arg10[%c0_252, %c0_253] : memref<16x16xf32, #tpu.memory_space<vmem>>, vector<16x16xf32>
    tpu.vector_store %arg10[%c0_252, %c0_253], %150 {strides = array<i32>} : memref<16x16xf32, #tpu.memory_space<vmem>>, vector<16x16xf32>,
    return
  }
  func.func @transform_0(%arg0: i32) -> (i32, i32, i32, i32) {
    %c0_i32 = arith.constant 0 : i32
    %c0_i32_0 = arith.constant 0 : i32
    %c0_i32_1 = arith.constant 0 : i32
    %c0_i32_2 = arith.constant 0 : i32
    return %arg0, %c0_i32, %c0_i32_0, %c0_i32_1 : i32, i32, i32, i32
  }
  func.func @transform_1(%arg0: i32) -> (i32, i32) {
    %c0_i32 = arith.constant 0 : i32
    %c0_i32_0 = arith.constant 0 : i32
    %c0_i32_1 = arith.constant 0 : i32
    return %c0_i32, %c0_i32_0 : i32, i32
  }
  func.func @transform_2(%arg0: i32) -> (i32, i32) {
    %c0_i32 = arith.constant 0 : i32
    %c0_i32_0 = arith.constant 0 : i32
    %c0_i32_1 = arith.constant 0 : i32
    return %c0_i32, %c0_i32_0 : i32, i32
  }
  func.func @transform_3(%arg0: i32) -> (i32, i32) {
    %c0_i32 = arith.constant 0 : i32
    %c0_i32_0 = arith.constant 0 : i32
    %c0_i32_1 = arith.constant 0 : i32
    return %c0_i32, %c0_i32_0 : i32, i32
  }
  func.func @transform_4(%arg0: i32) -> (i32, i32) {
    %c0_i32 = arith.constant 0 : i32
    %c0_i32_0 = arith.constant 0 : i32
    %c0_i32_1 = arith.constant 0 : i32
    return %c0_i32, %c0_i32_0 : i32, i32
  }
  func.func @transform_5(%arg0: i32) -> (i32, i32) {
    %c0_i32 = arith.constant 0 : i32
    %c0_i32_0 = arith.constant 0 : i32
    %c0_i32_1 = arith.constant 0 : i32
    return %c0_i32, %c0_i32_0 : i32, i32
  }
  func.func @transform_6(%arg0: i32) -> (i32, i32) {
    %c0_i32 = arith.constant 0 : i32
    %c0_i32_0 = arith.constant 0 : i32
    %c0_i32_1 = arith.constant 0 : i32
    return %c0_i32, %c0_i32_0 : i32, i32
  }
  func.func @transform_7(%arg0: i32) -> (i32, i32) {
    %c0_i32 = arith.constant 0 : i32
    %c0_i32_0 = arith.constant 0 : i32
    %c0_i32_1 = arith.constant 0 : i32
    return %c0_i32, %c0_i32_0 : i32, i32
  }
  func.func @transform_8(%arg0: i32) -> (i32, i32) {
    %c0_i32 = arith.constant 0 : i32
    %c0_i32_0 = arith.constant 0 : i32
    %c0_i32_1 = arith.constant 0 : i32
    return %c0_i32, %c0_i32_0 : i32, i32
  }
  func.func @transform_9(%arg0: i32) -> (i32, i32) {
    %c0_i32 = arith.constant 0 : i32
    %c0_i32_0 = arith.constant 0 : i32
    return %arg0, %c0_i32 : i32, i32
  }
}

</mosaic_0001>

<bundles_post_ra>
// kernel: tile.8
= control target key start
LH: loop header
LB: loop body
LE: loop exit
PB: predicated region body
PF: predicated region fallthrough
CT: control target
= control target key end

     0   :  { %s22_s0 = inlined_call_operand.vmem [shape: f32[32], index: 0, kind: input, shape index: {}]   ;;  %s23_s1 = inlined_call_operand.vmem [shape: f32[4,32], index: 1, kind: output, shape index: {}]  }
   0x1   :  { %v4_v0 = vld [vmem:[%s22_s0] ss:$0 sm:$0xff] }
   0x2   :  { %5 = vst [vmem:[%s23_s1] sm:$0xf] %v4_v0 }

// kernel: tile.9
= control target key start
LH: loop header
LB: loop body
LE: loop exit
PB: predicated region body
PF: predicated region fallthrough
CT: control target
= control target key end

     0   :  { %s37_s8 = smov 32   ;;  %s38_s9 = smov 64   ;;  %vm7_vm0 = vcmask 261120   ;;  %vm13_vm1 = vcmask 1048320   ;;  %vm19_vm2 = vcmask 785920   ;;  %vm25_vm3 = vcmask 523520   ;;  %s55_s0 = inlined_call_operand.vmem [shape: f32[4,32], index: 0, kind: input, shape index: {}]   ;;  %s56_s1 = inlined_call_operand.vmem [shape: f32[1,128], index: 1, kind: output, shape index: {}]  }
   0x1   :  { %v4_v0 = vld [vmem:[%s55_s0] sm:$0xf]  ;;  %s36_s0 = smov 96  }
   0x2   :  { %5 = vst [vmem:[#allocation1] sm:$0xf] %v4_v0 }
   0x9   :  { %v10_v1 = vld [vmem:[#allocation1 + $0x3] sm:$0x1]   ;;  %v22_v2 = vld [vmem:[#allocation1 + $0x1] sm:$0x1]   ;;  %v16_v3 = vld [vmem:[#allocation1 + $0x2] sm:$0x1]  }
   0xa   :  { %11 = vrot.lane.b32.xlu0 %v10_v1, %s36_s0  ;;  %23 = vrot.lane.b32.xlu1 %v22_v2, %s37_s8  ;;  %v6_v4 = vld [vmem:[#allocation1] sm:$0x1]  }
   0xb   :  { %8 = vst.msk [vmem:[#allocation0] sm:$0x1] %vm7_vm0, %v6_v4  }
  0x12   :  { %17 = vrot.lane.b32.xlu0 %v16_v3, %s38_s9 }
  0x7c   :  { %v12_v5 = vpop.permute.xlu0 %11   ;;  %v24_v6 = vpop.permute.xlu1 %23  }
  0x7d   :  { %14 = vst.msk [vmem:[#allocation0] sm:$0x1] %vm13_vm1, %v12_v5  }
  0x84   :  { %v18_v7 = vpop.permute.xlu0 %17  }
  0x85   :  { %20 = vst.msk [vmem:[#allocation0] sm:$0x1] %vm19_vm2, %v18_v7  }
  0x86   :  { %26 = vst.msk [vmem:[#allocation0] sm:$0x1] %vm25_vm3, %v24_v6  }
  0x8d   :  { %v29_v8 = vld [vmem:[#allocation0] sm:$0x1] }
  0x8e   :  { %32 = vst [vmem:[%s56_s1] sm:$0x1] %v29_v8 }

// kernel: cnn_autoencoder_forward.1
= control target key start
LH: loop header
LB: loop body
LE: loop exit
PB: predicated region body
PF: predicated region fallthrough
CT: control target
= control target key end

     0   :  { %s3405_s30 = smov 0   ;;  %s5106_s0 = inlined_call_operand.vmem [shape: f32[2,16,16,1], index: 0, kind: input, shape index: {}]   ;;  %s5107_s1 = inlined_call_operand.vmem [shape: f32[9,32], index: 1, kind: input, shape index: {}]   ;;  %s5108_s2 = inlined_call_operand.vmem [shape: f32[1,32], index: 2, kind: input, shape index: {}]   ;;  %s5109_s3 = inlined_call_operand.vmem [shape: bf16[288,64], index: 3, kind: input, shape index: {}]   ;;  %s5110_s4 = inlined_call_operand.vmem [shape: f32[1,64], index: 4, kind: input, shape index: {}]   ;;  %s5111_s5 = inlined_call_operand.vmem [shape: bf16[64,128], index: 5, kind: input, shape index: {}]   ;;  %s5112_s6 = inlined_call_operand.vmem [shape: f32[1,128], index: 6, kind: input, shape index: {}]   ;;  %s5113_s7 = inlined_call_operand.vmem [shape: bf16[128,16], index: 7, kind: input, shape index: {}]   ;;  %s5114_s8 = inlined_call_operand.vmem [shape: f32[1,16], index: 8, kind: input, shape index: {}]   ;;  %s5115_s9 = inlined_call_operand.vmem [shape: f32[32,16], index: 9, kind: output, shape index: {}]  }
   0x1 LB: > { %s3411_s10 = sadd.s32 4294967295, %s3348_s30   ;;  %p3126_p0 = scmp.ge.s32.totalorder %s3348_s30, 1  ;;  %s3348_s30 = sphi %s3405_s30, %s19_s30  }
   0x2   : > { %p287_p1 = scmp.lt.s32.totalorder %s3348_s30, 3 }
   0x4   : > { %p288_p2 = pnand %p3126_p0, %p287_p1 }
   0x5   : > { %p323_p3 = scmp.lt.s32.totalorder (!%p288_p2), %s3411_s10, 1  ;;  %s3352_s24 = smov (!%p288_p2), 32  }
   0x6   : > { %291 = sbr.rel (%p288_p2) target bundleno = 1130 (0x46a), region = 56  ;;  %s3353_s25 = smov (!%p288_p2), 64  }
   0x7   : > { %s3354_s17 = smov (!%p288_p2), 96  }
   0xb   : > { %v3350_v0 = vmov 0   ;;  %s324_s11 = scalar_select %p323_p3, %s3411_s10, 1  ;;  %vm335_vm0 = vcmask 261120   ;;  %v3351_v22 = vmov 0.0   ;;  %v3448_v23 = vld [vmem:[%s5108_s2] ss:$0 sm:$0xff] }
   0xc   : > { %3304 = vset.pattern.permute.xlu2 %v3350_v0  ;;  %3303 = vset.pattern.permute.xlu1 %v3350_v0  ;;  %346 = vst.msk [vmem:[#allocation2 + $0x48] sm:$0xff] %vm335_vm0, %v3351_v22  ;;  %v3555_v36 = vld [vmem:[%s5107_s1] ss:$0 sm:$0xff]  ;;  %v3581_v42 = vld [vmem:[%s5107_s1 + $0x1] ss:$0 sm:$0xff]  ;;  %vm338_vm1 = vcmask 254976  }
   0xd   : > { %3302 = vset.pattern.permute.xlu0 %v3350_v0  ;;  %s3258_s12 = sshll.u32 %s324_s11, 8  ;;  %347 = vst.msk [vmem:[#allocation2 + $0x50] sm:$0xff] %vm335_vm0, %v3351_v22  ;;  %v3652_v48 = vld [vmem:[%s5107_s1 + $0x2] ss:$0 sm:$0xff]  ;;  %vm2331_vm2 = vcmask 523520   ;;  %vm2380_vm3 = vcmask 785920  }
   0xe   : > { %s3420_s15 = scalar_lea.vmem %s5106_s0, %s3258_s12  ;;  %626 = vst.msk [vmem:[#allocation3 + $0x30] sm:$0xff] %vm335_vm0, %v3448_v23  ;;  %vm2429_vm4 = vcmask 1048320   ;;  %vm2910_vm5 = vcmask 523264   ;;  %s3129_s11 = sshll.u32 %s3411_s10, 1  ;;  %vm3063_vm6 = vcmask 130048  }
   0xf   : > { %v395_v1 = vld [vmem:[%s3420_s15 + $0x20] sm:$0xff]  ;;  %v393_v2 = vld [vmem:[%s3420_s15 + $0x10] sm:$0xff]  ;;  %v396_v4 = vld [vmem:[%s3420_s15 + $0x28] sm:$0xff]  ;;  %336 = vst.msk [vmem:[#allocation2] sm:$0xff] %vm335_vm0, %v3351_v22  ;;  %p329_p4 = scmp.lt.s32.totalorder %s3129_s11, 3 }
  0x10   : > { %v391_v3 = vld [vmem:[%s3420_s15] sm:$0xff]  ;;  %445 = vperm.xlu2 %3304, %v395_v1   ;;  %435 = vperm.xlu1 %3303, %v393_v2   ;;  %v394_v5 = vld [vmem:[%s3420_s15 + $0x18] sm:$0xff]  ;;  %v392_v6 = vld [vmem:[%s3420_s15 + $0x8] sm:$0xff]  ;;  %337 = vst.msk [vmem:[#allocation2 + $0x8] sm:$0xff] %vm335_vm0, %v3351_v22 }
  0x11   : > { %425 = vperm.xlu0 %3302, %v391_v3   ;;  %v399_v7 = vld [vmem:[%s3420_s15 + $0x40] sm:$0xff]  ;;  %v398_v8 = vld [vmem:[%s3420_s15 + $0x38] sm:$0xff]  ;;  %v397_v9 = vld [vmem:[%s3420_s15 + $0x30] sm:$0xff]  ;;  %340 = vst.msk [vmem:[#allocation2 + $0x18] sm:$0xff] %vm335_vm0, %v3351_v22  ;;  %s5117_s11 = smov (!%p329_p4, %s3129_s11), 3 }
  0x12   : > { %v402_v10 = vld [vmem:[%s3420_s15 + $0x58] sm:$0xff]  ;;  %v401_v11 = vld [vmem:[%s3420_s15 + $0x50] sm:$0xff]  ;;  %v400_v12 = vld [vmem:[%s3420_s15 + $0x48] sm:$0xff]  ;;  %341 = vst.msk [vmem:[#allocation2 + $0x20] sm:$0xff] %vm335_vm0, %v3351_v22  ;;  %s3130_s12 = sshll.u32 %s5117_s11, 3 }
  0x13   : > { %v405_v13 = vld [vmem:[%s3420_s15 + $0x70] sm:$0xff]  ;;  %v404_v14 = vld [vmem:[%s3420_s15 + $0x68] sm:$0xff]  ;;  %v403_v15 = vld [vmem:[%s3420_s15 + $0x60] sm:$0xff]  ;;  %343 = vst.msk [vmem:[#allocation2 + $0x30] sm:$0xff] %vm335_vm0, %v3351_v22  ;;  %s332_s18 = scalar_lea.vmem %s5115_s9, %s3130_s12 }
  0x14   : > { %v408_v16 = vld [vmem:[%s3420_s15 + $0x88] sm:$0xff]  ;;  %v407_v17 = vld [vmem:[%s3420_s15 + $0x80] sm:$0xff]  ;;  %v406_v18 = vld [vmem:[%s3420_s15 + $0x78] sm:$0xff]  ;;  %344 = vst.msk [vmem:[#allocation2 + $0x38] sm:$0xff] %vm335_vm0, %v3351_v22 }
  0x15   : > { %v411_v19 = vld [vmem:[%s3420_s15 + $0xa0] sm:$0xff]  ;;  %v410_v20 = vld [vmem:[%s3420_s15 + $0x98] sm:$0xff]  ;;  %v409_v21 = vld [vmem:[%s3420_s15 + $0x90] sm:$0xff]  ;;  %349 = vst.msk [vmem:[#allocation2 + $0x60] sm:$0xff] %vm335_vm0, %v3351_v22 }
  0x16   : > { %v414_v24 = vld [vmem:[%s3420_s15 + $0xb8] sm:$0xff]  ;;  %v413_v25 = vld [vmem:[%s3420_s15 + $0xb0] sm:$0xff]  ;;  %v412_v26 = vld [vmem:[%s3420_s15 + $0xa8] sm:$0xff]  ;;  %350 = vst.msk [vmem:[#allocation2 + $0x68] sm:$0xff] %vm335_vm0, %v3351_v22 }
  0x17   : > { %v417_v27 = vld [vmem:[%s3420_s15 + $0xd0] sm:$0xff]  ;;  %v416_v28 = vld [vmem:[%s3420_s15 + $0xc8] sm:$0xff]  ;;  %352 = vst.msk [vmem:[#allocation2 + $0x78] sm:$0xff] %vm335_vm0, %v3351_v22  ;;  %v415_v29 = vld [vmem:[%s3420_s15 + $0xc0] sm:$0xff] }
  0x18   : > { %450 = vperm.xlu2 %3304, %v396_v4   ;;  %440 = vperm.xlu1 %3303, %v394_v5   ;;  %353 = vst.msk [vmem:[#allocation2 + $0x80] sm:$0xff] %vm335_vm0, %v3351_v22  ;;  %v420_v30 = vld [vmem:[%s3420_s15 + $0xe8] sm:$0xff]  ;;  %v419_v31 = vld [vmem:[%s3420_s15 + $0xe0] sm:$0xff]  ;;  %v418_v32 = vld [vmem:[%s3420_s15 + $0xd8] sm:$0xff] }
  0x19   : > { %430 = vperm.xlu0 %3302, %v392_v6   ;;  %355 = vst.msk [vmem:[#allocation2 + $0x90] sm:$0xff] %vm335_vm0, %v3351_v22  ;;  %v422_v33 = vld [vmem:[%s3420_s15 + $0xf8] sm:$0xff]  ;;  %v421_v34 = vld [vmem:[%s3420_s15 + $0xf0] sm:$0xff]  ;;  %v658_v37 = vld [vmem:[#allocation3 + $0x30] sm:$0xff] }
  0x1a   : > { %356 = vst.msk [vmem:[#allocation2 + $0x98] sm:$0xff] %vm335_vm0, %v3351_v22  ;;  %v684_v1 = vld [vmem:[#allocation2] sm:$0xff]  ;;  %v685_v5 = vld [vmem:[#allocation2 + $0x8] sm:$0xff] }
  0x1b   : > { %358 = vst.msk [vmem:[#allocation2 + $0xa8] sm:$0xff] %vm335_vm0, %v3351_v22  ;;  %v718_v3 = vmul.f32 %v3555_v36, %v684_v1 }
  0x1c   : > { %359 = vst.msk [vmem:[#allocation2 + $0xb0] sm:$0xff] %vm335_vm0, %v3351_v22 }
  0x1d   : > { %361 = vst.msk [vmem:[#allocation2 + $0xc0] sm:$0xff] %vm335_vm0, %v3351_v22 }
  0x1e   : > { %362 = vst.msk [vmem:[#allocation2 + $0xc8] sm:$0xff] %vm335_vm0, %v3351_v22 }
  0x1f   : > { %364 = vst.msk [vmem:[#allocation2 + $0xd8] sm:$0xff] %vm335_vm0, %v3351_v22 }
  0x20   : > { %465 = vperm.xlu2 %3304, %v399_v7   ;;  %460 = vperm.xlu1 %3303, %v398_v8   ;;  %365 = vst.msk [vmem:[#allocation2 + $0xe0] sm:$0xff] %vm335_vm0, %v3351_v22 }
  0x21   : > { %455 = vperm.xlu0 %3302, %v397_v9   ;;  %367 = vst.msk [vmem:[#allocation2 + $0xf0] sm:$0xff] %vm335_vm0, %v3351_v22 }
  0x22   : > { %368 = vst.msk [vmem:[#allocation2 + $0xf8] sm:$0xff] %vm335_vm0, %v3351_v22 }
  0x23   : > { %370 = vst.msk [vmem:[#allocation2 + $0x108] sm:$0xff] %vm335_vm0, %v3351_v22 }
  0x24   : > { %371 = vst.msk [vmem:[#allocation2 + $0x110] sm:$0xff] %vm335_vm0, %v3351_v22 }
  0x25   : > { %373 = vst.msk [vmem:[#allocation2 + $0x120] sm:$0xff] %vm335_vm0, %v3351_v22 }
  0x26   : > { %374 = vst.msk [vmem:[#allocation2 + $0x128] sm:$0xff] %vm335_vm0, %v3351_v22 }
  0x27   : > { %376 = vst.msk [vmem:[#allocation2 + $0x138] sm:$0xff] %vm335_vm0, %v3351_v22 }
  0x28   : > { %480 = vperm.xlu2 %3304, %v402_v10   ;;  %475 = vperm.xlu1 %3303, %v401_v11   ;;  %377 = vst.msk [vmem:[#allocation2 + $0x140] sm:$0xff] %vm335_vm0, %v3351_v22  ;;  %v719_v11 = vmul.f32 %v3555_v36, %v685_v5 }
  0x29   : > { %470 = vperm.xlu0 %3302, %v400_v12   ;;  %379 = vst.msk [vmem:[#allocation2 + $0x150] sm:$0xff] %vm335_vm0, %v3351_v22 }
  0x2a   : > { %380 = vst.msk [vmem:[#allocation2 + $0x158] sm:$0xff] %vm335_vm0, %v3351_v22 }
  0x2b   : > { %382 = vst.msk [vmem:[#allocation2 + $0x168] sm:$0xff] %vm335_vm0, %v3351_v22 }
  0x2c   : > { %383 = vst.msk [vmem:[#allocation2 + $0x170] sm:$0xff] %vm335_vm0, %v3351_v22 }
  0x2d   : > { %385 = vst.msk [vmem:[#allocation2 + $0x180] sm:$0xff] %vm335_vm0, %v3351_v22 }
  0x2e   : > { %386 = vst.msk [vmem:[#allocation2 + $0x188] sm:$0xff] %vm335_vm0, %v3351_v22 }
  0x2f   : > { %388 = vst.msk [vmem:[#allocation2 + $0x198] sm:$0xff] %vm335_vm0, %v3351_v22 }
  0x30   : > { %495 = vperm.xlu2 %3304, %v405_v13   ;;  %490 = vperm.xlu1 %3303, %v404_v14   ;;  %389 = vst.msk [vmem:[#allocation2 + $0x1a0] sm:$0xff] %vm335_vm0, %v3351_v22 }
  0x31   : > { %485 = vperm.xlu0 %3302, %v403_v15   ;;  %620 = vst.msk [vmem:[#allocation3] sm:$0xff] %vm335_vm0, %v3448_v23  ;;  %v846_v15 = vld [vmem:[#allocation2 + $0x1] sm:$0xff] }
  0x32   : > { %621 = vst.msk [vmem:[#allocation3 + $0x8] sm:$0xff] %vm335_vm0, %v3448_v23 }
  0x33   : > { %622 = vst.msk [vmem:[#allocation3 + $0x10] sm:$0xff] %vm335_vm0, %v3448_v23 }
  0x34   : > { %623 = vst.msk [vmem:[#allocation3 + $0x18] sm:$0xff] %vm335_vm0, %v3448_v23 }
  0x35   : > { %624 = vst.msk [vmem:[#allocation3 + $0x20] sm:$0xff] %vm335_vm0, %v3448_v23 }
  0x36   : > { %625 = vst.msk [vmem:[#allocation3 + $0x28] sm:$0xff] %vm335_vm0, %v3448_v23 }
  0x37   : > { %627 = vst.msk [vmem:[#allocation3 + $0x38] sm:$0xff] %vm335_vm0, %v3448_v23 }
  0x38   : > { %510 = vperm.xlu2 %3304, %v408_v16   ;;  %505 = vperm.xlu1 %3303, %v407_v17   ;;  %628 = vst.msk [vmem:[#allocation3 + $0x40] sm:$0xff] %vm335_vm0, %v3448_v23  ;;  %v652_v4 = vld [vmem:[#allocation3] sm:$0xff] }
  0x39   : > { %500 = vperm.xlu0 %3302, %v406_v18   ;;  %629 = vst.msk [vmem:[#allocation3 + $0x48] sm:$0xff] %vm335_vm0, %v3448_v23  ;;  %v750_v10 = vadd.f32 %v718_v3, %v652_v4  ;;  %v653_v13 = vld [vmem:[#allocation3 + $0x8] sm:$0xff] }
  0x3a   : > { %630 = vst.msk [vmem:[#allocation3 + $0x50] sm:$0xff] %vm335_vm0, %v3448_v23  ;;  %v751_v14 = vadd.f32 %v719_v11, %v653_v13 }
  0x3b   : > { %631 = vst.msk [vmem:[#allocation3 + $0x58] sm:$0xff] %vm335_vm0, %v3448_v23 }
  0x3c   : > { %632 = vst.msk [vmem:[#allocation3 + $0x60] sm:$0xff] %vm335_vm0, %v3448_v23 }
  0x3d   : > { %633 = vst.msk [vmem:[#allocation3 + $0x68] sm:$0xff] %vm335_vm0, %v3448_v23 }
  0x3e   : > { %634 = vst.msk [vmem:[#allocation3 + $0x70] sm:$0xff] %vm335_vm0, %v3448_v23  ;;  %v659_v47 = vld [vmem:[#allocation3 + $0x38] sm:$0xff] }
  0x3f   : > { %635 = vst.msk [vmem:[#allocation3 + $0x78] sm:$0xff] %vm335_vm0, %v3448_v23 }
  0x40   : > { %525 = vperm.xlu2 %3304, %v411_v19   ;;  %520 = vperm.xlu1 %3303, %v410_v20   ;;  %636 = vst.msk [vmem:[#allocation3 + $0x80] sm:$0xff] %vm335_vm0, %v3448_v23 }
  0x41   : > { %515 = vperm.xlu0 %3302, %v409_v21   ;;  %637 = vst.msk [vmem:[#allocation3 + $0x88] sm:$0xff] %vm335_vm0, %v3448_v23  ;;  %v662_v16 = vld [vmem:[#allocation3 + $0x50] sm:$0xff]  ;;  %v880_v21 = vmul.f32 %v3581_v42, %v846_v15 }
  0x42   : > { %638 = vst.msk [vmem:[#allocation3 + $0x90] sm:$0xff] %vm335_vm0, %v3448_v23 }
  0x43   : > { %639 = vst.msk [vmem:[#allocation3 + $0x98] sm:$0xff] %vm335_vm0, %v3448_v23 }
  0x44   : > { %640 = vst.msk [vmem:[#allocation3 + $0xa0] sm:$0xff] %vm335_vm0, %v3448_v23 }
  0x45   : > { %641 = vst.msk [vmem:[#allocation3 + $0xa8] sm:$0xff] %vm335_vm0, %v3448_v23 }
  0x46   : > { %642 = vst.msk [vmem:[#allocation3 + $0xb0] sm:$0xff] %vm335_vm0, %v3448_v23 }
  0x47   : > { %643 = vst.msk [vmem:[#allocation3 + $0xb8] sm:$0xff] %vm335_vm0, %v3448_v23 }
  0x48   : > { %540 = vperm.xlu2 %3304, %v414_v24   ;;  %535 = vperm.xlu1 %3303, %v413_v25   ;;  %644 = vst.msk [vmem:[#allocation3 + $0xc0] sm:$0xff] %vm335_vm0, %v3448_v23 }
  0x49   : > { %530 = vperm.xlu0 %3302, %v412_v26   ;;  %645 = vst.msk [vmem:[#allocation3 + $0xc8] sm:$0xff] %vm335_vm0, %v3448_v23 }
  0x4a   : > { %646 = vst.msk [vmem:[#allocation3 + $0xd0] sm:$0xff] %vm335_vm0, %v3448_v23 }
  0x4b   : > { %647 = vst.msk [vmem:[#allocation3 + $0xd8] sm:$0xff] %vm335_vm0, %v3448_v23 }
  0x4c   : > { %648 = vst.msk [vmem:[#allocation3 + $0xe0] sm:$0xff] %vm335_vm0, %v3448_v23 }
  0x4d   : > { %649 = vst.msk [vmem:[#allocation3 + $0xe8] sm:$0xff] %vm335_vm0, %v3448_v23 }
  0x4e   : > { %650 = vst.msk [vmem:[#allocation3 + $0xf0] sm:$0xff] %vm335_vm0, %v3448_v23 }
  0x4f   : > { %651 = vst.msk [vmem:[#allocation3 + $0xf8] sm:$0xff] %vm335_vm0, %v3448_v23  ;;  %v656_v23 = vld [vmem:[#allocation3 + $0x20] sm:$0xff] }
  0x50   : > { %555 = vperm.xlu2 %3304, %v417_v27   ;;  %550 = vperm.xlu1 %3303, %v416_v28   ;;  %2246 = vst.msk [vmem:[#allocation5] sm:$0xff] %vm335_vm0, %v3351_v22  ;;  %v654_v28 = vld [vmem:[#allocation3 + $0x10] sm:$0xff] }
  0x51   : > { %545 = vperm.xlu0 %3302, %v415_v29   ;;  %2248 = vst.msk [vmem:[#allocation5 + $0x10] sm:$0xff] %vm335_vm0, %v3351_v22 }
  0x52   : > { %2250 = vst.msk [vmem:[#allocation5 + $0x20] sm:$0xff] %vm335_vm0, %v3351_v22 }
  0x53   : > { %2252 = vst.msk [vmem:[#allocation5 + $0x30] sm:$0xff] %vm335_vm0, %v3351_v22 }
  0x54   : > { %2254 = vst.msk [vmem:[#allocation5 + $0x40] sm:$0xff] %vm335_vm0, %v3351_v22 }
  0x55   : > { %2256 = vst.msk [vmem:[#allocation5 + $0x50] sm:$0xff] %vm335_vm0, %v3351_v22 }
  0x56   : > { %2258 = vst.msk [vmem:[#allocation5 + $0x60] sm:$0xff] %vm335_vm0, %v3351_v22 }
  0x57   : > { %2260 = vst.msk [vmem:[#allocation5 + $0x70] sm:$0xff] %vm335_vm0, %v3351_v22 }
  0x58   : > { %570 = vperm.xlu2 %3304, %v420_v30   ;;  %565 = vperm.xlu1 %3303, %v419_v31   ;;  %2262 = vst.msk [vmem:[#allocation5 + $0x80] sm:$0xff] %vm335_vm0, %v3351_v22 }
  0x59   : > { %560 = vperm.xlu0 %3302, %v418_v32   ;;  %2264 = vst.msk [vmem:[#allocation5 + $0x90] sm:$0xff] %vm335_vm0, %v3351_v22 }
  0x5a   : > { %348 = vst.msk [vmem:[#allocation2 + $0x58] sm:$0x3] %vm338_vm1, %v3351_v22 }
  0x5b   : > { %339 = vst.msk [vmem:[#allocation2 + $0x10] sm:$0x3] %vm338_vm1, %v3351_v22 }
  0x5c   : > { %342 = vst.msk [vmem:[#allocation2 + $0x28] sm:$0x3] %vm338_vm1, %v3351_v22 }
  0x5d   : > { %345 = vst.msk [vmem:[#allocation2 + $0x40] sm:$0x3] %vm338_vm1, %v3351_v22 }
  0x5e   : > { %351 = vst.msk [vmem:[#allocation2 + $0x70] sm:$0x3] %vm338_vm1, %v3351_v22 }
  0x5f   : > { %354 = vst.msk [vmem:[#allocation2 + $0x88] sm:$0x3] %vm338_vm1, %v3351_v22 }
  0x60   : > { %580 = vperm.xlu1 %3303, %v422_v33   ;;  %357 = vst.msk [vmem:[#allocation2 + $0xa0] sm:$0x3] %vm338_vm1, %v3351_v22 }
  0x61   : > { %575 = vperm.xlu0 %3302, %v421_v34   ;;  %360 = vst.msk [vmem:[#allocation2 + $0xb8] sm:$0x3] %vm338_vm1, %v3351_v22 }
  0x62   : > { %363 = vst.msk [vmem:[#allocation2 + $0xd0] sm:$0x3] %vm338_vm1, %v3351_v22  ;;  %v847_v30 = vld [vmem:[#allocation2 + $0x9] sm:$0xff] }
  0x63   : > { %366 = vst.msk [vmem:[#allocation2 + $0xe8] sm:$0x3] %vm338_vm1, %v3351_v22 }
  0x64   : > { %369 = vst.msk [vmem:[#allocation2 + $0x100] sm:$0x3] %vm338_vm1, %v3351_v22 }
  0x65   : > { %372 = vst.msk [vmem:[#allocation2 + $0x118] sm:$0x3] %vm338_vm1, %v3351_v22 }
  0x66   : > { %375 = vst.msk [vmem:[#allocation2 + $0x130] sm:$0x3] %vm338_vm1, %v3351_v22 }
  0x67   : > { %378 = vst.msk [vmem:[#allocation2 + $0x148] sm:$0x3] %vm338_vm1, %v3351_v22 }
  0x68   : > { %381 = vst.msk [vmem:[#allocation2 + $0x160] sm:$0x3] %vm338_vm1, %v3351_v22 }
  0x69   : > { %384 = vst.msk [vmem:[#allocation2 + $0x178] sm:$0x3] %vm338_vm1, %v3351_v22 }
  0x6a   : > { %v446_v35 = vpop.permute.xlu2 %445  ;;  %387 = vst.msk [vmem:[#allocation2 + $0x190] sm:$0x3] %vm338_vm1, %v3351_v22 }
  0x6b   : > { %588 = vst.msk [vmem:[#allocation2 + $0x49] sm:$0xff] %vm335_vm0, %v446_v35  ;;  %v668_v35 = vld [vmem:[#allocation3 + $0x80] sm:$0xff] }
  0x6c   : > { %390 = vst.msk [vmem:[#allocation2 + $0x1a8] sm:$0x3] %vm338_vm1, %v3351_v22 }
  0x6d   : > { %2247 = vst.msk [vmem:[#allocation5 + $0x8] sm:$0x3] %vm338_vm1, %v3351_v22 }
  0x6e   : > { %2249 = vst.msk [vmem:[#allocation5 + $0x18] sm:$0x3] %vm338_vm1, %v3351_v22 }
  0x6f   : > { %2251 = vst.msk [vmem:[#allocation5 + $0x28] sm:$0x3] %vm338_vm1, %v3351_v22 }
  0x70   : > { %2253 = vst.msk [vmem:[#allocation5 + $0x38] sm:$0x3] %vm338_vm1, %v3351_v22 }
  0x71   : > { %2255 = vst.msk [vmem:[#allocation5 + $0x48] sm:$0x3] %vm338_vm1, %v3351_v22 }
  0x72   : > { %v3559_v38 = vld [vmem:[#allocation2 + $0x48] sm:$0xff]  ;;  %v451_v46 = vpop.permute.xlu2 %450  ;;  %2257 = vst.msk [vmem:[#allocation5 + $0x58] sm:$0x3] %vm338_vm1, %v3351_v22 }
  0x73   : > { %v724_v39 = vmul.f32 %v3555_v36, %v3559_v38  ;;  %v3574_v41 = vld [vmem:[#allocation2 + $0x49] sm:$0xff]  ;;  %589 = vst.msk [vmem:[#allocation2 + $0x51] sm:$0xff] %vm335_vm0, %v451_v46 }
  0x74   : > { %v886_v43 = vmul.f32 %v3581_v42, %v3574_v41  ;;  %2259 = vst.msk [vmem:[#allocation5 + $0x68] sm:$0x3] %vm338_vm1, %v3351_v22 }
  0x75   : > { %v756_v40 = vadd.f32 %v724_v39, %v658_v37  ;;  %2261 = vst.msk [vmem:[#allocation5 + $0x78] sm:$0x3] %vm338_vm1, %v3351_v22 }
  0x76   : > { %2263 = vst.msk [vmem:[#allocation5 + $0x88] sm:$0x3] %vm338_vm1, %v3351_v22 }
  0x77   : > { %788 = vst.msk [vmem:[#allocation3 + $0x30] sm:$0xff] %vm335_vm0, %v756_v40 }
  0x78   : > { %2265 = vst.msk [vmem:[#allocation5 + $0x98] sm:$0x3] %vm338_vm1, %v3351_v22 }
  0x79   : > { %782 = vst.msk [vmem:[#allocation3] sm:$0xff] %vm335_vm0, %v750_v10 }
  0x7a   : > { %v3656_v50 = vld [vmem:[#allocation2 + $0x50] sm:$0xff]  ;;  %v466_v56 = vpop.permute.xlu2 %465  ;;  %783 = vst.msk [vmem:[#allocation3 + $0x8] sm:$0xff] %vm335_vm0, %v751_v14 }
  0x7b   : > { %v3658_v51 = vld [vmem:[#allocation2 + $0x4a] sm:$0xff]  ;;  %v725_v52 = vmul.f32 %v3555_v36, %v3656_v50  ;;  %v3697_v0 = vld [vmem:[#allocation2 + $0x52] sm:$0xff]  ;;  %592 = vst.msk [vmem:[#allocation2 + $0x79] sm:$0xff] %vm335_vm0, %v466_v56 }
  0x7c   : > { %v1048_v53 = vmul.f32 %v3652_v48, %v3658_v51  ;;  %v3675_v57 = vld [vmem:[#allocation2 + $0x51] sm:$0xff]  ;;  %v1049_v2 = vmul.f32 %v3652_v48, %v3697_v0 }
  0x7d   : > { %v757_v54 = vadd.f32 %v725_v52, %v659_v47  ;;  %v887_v58 = vmul.f32 %v3581_v42, %v3675_v57 }
  0x7e   : > { %v820_v44 = vld [vmem:[#allocation3 + $0x30] sm:$0xff] }
  0x7f   : > { %v918_v45 = vadd.f32 %v886_v43, %v820_v44  ;;  %789 = vst.msk [vmem:[#allocation3 + $0x38] sm:$0xff] %vm335_vm0, %v757_v54  ;;  %v657_v44 = vld [vmem:[#allocation3 + $0x28] sm:$0xff] }
  0x80   : > { %v814_v27 = vld [vmem:[#allocation3] sm:$0xff] }
  0x81   : > { %950 = vst.msk [vmem:[#allocation3 + $0x30] sm:$0xff] %vm335_vm0, %v918_v45  ;;  %v912_v33 = vadd.f32 %v880_v21, %v814_v27  ;;  %v815_v54 = vld [vmem:[#allocation3 + $0x8] sm:$0xff]  ;;  %v660_v21 = vld [vmem:[#allocation3 + $0x40] sm:$0xff] }
  0x82   : > { %v481_v61 = vpop.permute.xlu2 %480  ;;  %v436_v62 = vpop.permute.xlu1 %435  ;;  %v3726_v17 = vld [vmem:[#allocation2 + $0x78] sm:$0xff] }
  0x83   : > { %v426_v63 = vpop.permute.xlu0 %425  ;;  %595 = vst.msk [vmem:[#allocation2 + $0x99] sm:$0xff] %vm335_vm0, %v481_v61  ;;  %v728_v19 = vmul.f32 %v3555_v36, %v3726_v17  ;;  %v3743_v31 = vld [vmem:[#allocation2 + $0x79] sm:$0xff]  ;;  %v655_v61 = vld [vmem:[#allocation3 + $0x18] sm:$0xff] }
  0x84   : > { %586 = vst.msk [vmem:[#allocation2 + $0x31] sm:$0xff] %vm335_vm0, %v436_v62  ;;  %v890_v45 = vmul.f32 %v3581_v42, %v3743_v31 }
  0x85   : > { %584 = vst.msk [vmem:[#allocation2 + $0x19] sm:$0xff] %vm335_vm0, %v426_v63  ;;  %v760_v22 = vadd.f32 %v728_v19, %v662_v16  ;;  %v1009_v16 = vld [vmem:[#allocation2 + $0xa] sm:$0xff] }
  0x86   : > { %v821_v59 = vld [vmem:[#allocation3 + $0x38] sm:$0xff]  ;;  %944 = vst.msk [vmem:[#allocation3] sm:$0xff] %vm335_vm0, %v912_v33 }
  0x87   : > { %v919_v60 = vadd.f32 %v887_v58, %v821_v59  ;;  %792 = vst.msk [vmem:[#allocation3 + $0x50] sm:$0xff] %vm335_vm0, %v760_v22  ;;  %v3790_v22 = vld [vmem:[%s5107_s1 + $0x3] ss:$0 sm:$0xff] }
  0x88   : > { %v982_v49 = vld [vmem:[#allocation3 + $0x30] sm:$0xff] }
  0x89   : > { %v1080_v55 = vadd.f32 %v1048_v53, %v982_v49  ;;  %951 = vst.msk [vmem:[#allocation3 + $0x38] sm:$0xff] %vm335_vm0, %v919_v60  ;;  %v881_v49 = vmul.f32 %v3581_v42, %v847_v30  ;;  %v1008_v53 = vld [vmem:[#allocation2 + $0x2] sm:$0xff] }
  0x8a   : > { %v496_v8 = vpop.permute.xlu2 %495  ;;  %v441_v9 = vpop.permute.xlu1 %440  ;;  %v1042_v63 = vmul.f32 %v3652_v48, %v1008_v53 }
  0x8b   : > { %1112 = vst.msk [vmem:[#allocation3 + $0x30] sm:$0xff] %vm335_vm0, %v1080_v55  ;;  %v431_v12 = vpop.permute.xlu0 %430  ;;  %v3734_v24 = vld [vmem:[#allocation2 + $0x30] sm:$0xff] }
  0x8c   : > { %598 = vst.msk [vmem:[#allocation2 + $0xc1] sm:$0xff] %vm335_vm0, %v496_v8  ;;  %v722_v26 = vmul.f32 %v3555_v36, %v3734_v24  ;;  %v3741_v29 = vld [vmem:[#allocation2 + $0x18] sm:$0xff] }
  0x8d   : > { %587 = vst.msk [vmem:[#allocation2 + $0x39] sm:$0xff] %vm335_vm0, %v441_v9  ;;  %v720_v34 = vmul.f32 %v3555_v36, %v3741_v29  ;;  %v3761_v56 = vld [vmem:[#allocation2 + $0x31] sm:$0xff]  ;;  %v3766_v1 = vld [vmem:[#allocation2 + $0x19] sm:$0xff] }
  0x8e   : > { %585 = vst.msk [vmem:[#allocation2 + $0x21] sm:$0xff] %vm335_vm0, %v431_v12  ;;  %v754_v32 = vadd.f32 %v722_v26, %v656_v23  ;;  %v824_v60 = vld [vmem:[#allocation3 + $0x50] sm:$0xff]  ;;  %v884_v4 = vmul.f32 %v3581_v42, %v3761_v56  ;;  %v976_v9 = vld [vmem:[#allocation3] sm:$0xff]  ;;  %v882_v10 = vmul.f32 %v3581_v42, %v3766_v1  ;;  %v661_v26 = vld [vmem:[#allocation3 + $0x48] sm:$0xff] }
  0x8f   : > { %v752_v43 = vadd.f32 %v720_v34, %v654_v28  ;;  %v922_v62 = vadd.f32 %v890_v45, %v824_v60  ;;  %v1074_v13 = vadd.f32 %v1042_v63, %v976_v9 }
  0x90   : > { %v983_v6 = vld [vmem:[#allocation3 + $0x38] sm:$0xff]  ;;  %786 = vst.msk [vmem:[#allocation3 + $0x20] sm:$0xff] %vm335_vm0, %v754_v32  ;;  %v1043_v32 = vmul.f32 %v3652_v48, %v1009_v16 }
  0x91   : > { %v1081_v7 = vadd.f32 %v1049_v2, %v983_v6  ;;  %784 = vst.msk [vmem:[#allocation3 + $0x10] sm:$0xff] %vm335_vm0, %v752_v43  ;;  %v913_v2 = vadd.f32 %v881_v49, %v815_v54 }
  0x92   : > { %v511_v18 = vpop.permute.xlu2 %510  ;;  %v461_v20 = vpop.permute.xlu1 %460  ;;  %954 = vst.msk [vmem:[#allocation3 + $0x50] sm:$0xff] %vm335_vm0, %v922_v62 }
  0x93   : > { %1113 = vst.msk [vmem:[#allocation3 + $0x38] sm:$0xff] %vm335_vm0, %v1081_v7  ;;  %v456_v25 = vpop.permute.xlu0 %455  ;;  %v700_v37 = vld [vmem:[#allocation2 + $0xc0] sm:$0xff] }
  0x94   : > { %601 = vst.msk [vmem:[#allocation2 + $0xe1] sm:$0xff] %vm335_vm0, %v511_v18  ;;  %v734_v39 = vmul.f32 %v3555_v36, %v700_v37  ;;  %v3749_v40 = vld [vmem:[#allocation2 + $0x38] sm:$0xff]  ;;  %v862_v5 = vld [vmem:[#allocation2 + $0xc1] sm:$0xff] }
  0x95   : > { %591 = vst.msk [vmem:[#allocation2 + $0x69] sm:$0xff] %vm335_vm0, %v461_v20  ;;  %v723_v47 = vmul.f32 %v3555_v36, %v3749_v40  ;;  %v3759_v55 = vld [vmem:[#allocation2 + $0x20] sm:$0xff]  ;;  %v896_v15 = vmul.f32 %v3581_v42, %v862_v5  ;;  %v3804_v37 = vld [vmem:[#allocation2 + $0x32] sm:$0xff] }
  0x96   : > { %590 = vst.msk [vmem:[#allocation2 + $0x61] sm:$0xff] %vm335_vm0, %v456_v25  ;;  %v766_v46 = vadd.f32 %v734_v39, %v668_v35  ;;  %v721_v3 = vmul.f32 %v3555_v36, %v3759_v55  ;;  %v3777_v11 = vld [vmem:[#allocation2 + $0x39] sm:$0xff]  ;;  %v3799_v33 = vld [vmem:[#allocation2 + $0x21] sm:$0xff]  ;;  %v1205_v16 = vmul.f32 %v3790_v22, %v3759_v55 }
  0x97   : > { %v755_v58 = vadd.f32 %v723_v47, %v657_v44  ;;  %v818_v6 = vld [vmem:[#allocation3 + $0x20] sm:$0xff]  ;;  %945 = vst.msk [vmem:[#allocation3 + $0x8] sm:$0xff] %vm335_vm0, %v913_v2  ;;  %v885_v25 = vmul.f32 %v3581_v42, %v3777_v11  ;;  %v1204_v44 = vmul.f32 %v3790_v22, %v3741_v29  ;;  %v3812_v47 = vld [vmem:[#allocation2 + $0x1a] sm:$0xff] }
  0x98   : > { %798 = vst.msk [vmem:[#allocation3 + $0x80] sm:$0xff] %vm335_vm0, %v766_v46  ;;  %v753_v7 = vadd.f32 %v721_v3, %v655_v61  ;;  %v916_v8 = vadd.f32 %v884_v4, %v818_v6  ;;  %v816_v14 = vld [vmem:[#allocation3 + $0x10] sm:$0xff]  ;;  %v883_v46 = vmul.f32 %v3581_v42, %v3799_v33  ;;  %v1044_v3 = vmul.f32 %v3652_v48, %v3812_v47 }
  0x99   : > { %787 = vst.msk [vmem:[#allocation3 + $0x28] sm:$0xff] %vm335_vm0, %v755_v58  ;;  %v914_v19 = vadd.f32 %v882_v10, %v816_v14  ;;  %v1144_v58 = vld [vmem:[#allocation3 + $0x30] sm:$0xff] }
  0x9a   : > { %v526_v52 = vpop.permute.xlu2 %525  ;;  %v476_v59 = vpop.permute.xlu1 %475  ;;  %785 = vst.msk [vmem:[#allocation3 + $0x18] sm:$0xff] %vm335_vm0, %v753_v7  ;;  %v1145_v61 = vld [vmem:[#allocation3 + $0x38] sm:$0xff]  ;;  %v3822_v63 = vld [vmem:[#allocation2 + $0x3a] sm:$0xff] }
  0x9b   : > { %604 = vst.msk [vmem:[#allocation2 + $0x109] sm:$0xff] %vm335_vm0, %v526_v52  ;;  %v471_v28 = vpop.permute.xlu0 %470  ;;  %v1046_v52 = vmul.f32 %v3652_v48, %v3804_v37 }
  0x9c   : > { %594 = vst.msk [vmem:[#allocation2 + $0x91] sm:$0xff] %vm335_vm0, %v476_v59  ;;  %v3831_v9 = vld [vmem:[#allocation2 + $0x69] sm:$0xff] }
  0x9d   : > { %v3780_v12 = vld [vmem:[#allocation2 + $0x60] sm:$0xff]  ;;  %v3784_v18 = vld [vmem:[#allocation2 + $0x68] sm:$0xff]  ;;  %948 = vst.msk [vmem:[#allocation3 + $0x20] sm:$0xff] %vm335_vm0, %v916_v8 }
  0x9e   : > { %1106 = vst.msk [vmem:[#allocation3] sm:$0xff] %vm335_vm0, %v1074_v13  ;;  %v726_v27 = vmul.f32 %v3555_v36, %v3780_v12  ;;  %v727_v34 = vmul.f32 %v3555_v36, %v3784_v18  ;;  %v977_v45 = vld [vmem:[#allocation3 + $0x8] sm:$0xff]  ;;  %v1210_v49 = vmul.f32 %v3790_v22, %v3780_v12  ;;  %v1211_v29 = vmul.f32 %v3790_v22, %v3784_v18  ;;  %v3828_v6 = vld [vmem:[#allocation2 + $0x61] sm:$0xff] }
  0x9f   : > { %v830_v20 = vld [vmem:[#allocation3 + $0x80] sm:$0xff]  ;;  %946 = vst.msk [vmem:[#allocation3 + $0x10] sm:$0xff] %vm335_vm0, %v914_v19  ;;  %v1075_v53 = vadd.f32 %v1043_v32, %v977_v45  ;;  %v1047_v13 = vmul.f32 %v3652_v48, %v3822_v63  ;;  %v888_v19 = vmul.f32 %v3581_v42, %v3828_v6  ;;  %v1208_v32 = vmul.f32 %v3790_v22, %v3559_v38 }
  0xa0   : > { %v928_v23 = vadd.f32 %v896_v15, %v830_v20  ;;  %v819_v30 = vld [vmem:[#allocation3 + $0x28] sm:$0xff]  ;;  %v758_v39 = vadd.f32 %v726_v27, %v660_v21  ;;  %v759_v43 = vadd.f32 %v727_v34, %v661_v26  ;;  %593 = vst.msk [vmem:[#allocation2 + $0x81] sm:$0xff] %vm335_vm0, %v471_v28  ;;  %v1242_v7 = vadd.f32 %v1210_v49, %v1144_v58  ;;  %v3836_v15 = vld [vmem:[#allocation2 + $0x22] sm:$0xff] }
  0xa1   : > { %v917_v35 = vadd.f32 %v885_v25, %v819_v30  ;;  %v817_v54 = vld [vmem:[#allocation3 + $0x18] sm:$0xff]  ;;  %1107 = vst.msk [vmem:[#allocation3 + $0x8] sm:$0xff] %vm335_vm0, %v1075_v53  ;;  %v1243_v10 = vadd.f32 %v1211_v29, %v1145_v61  ;;  %v3846_v20 = vld [vmem:[%s5107_s1 + $0x4] ss:$0 sm:$0xff]  ;;  %v1045_v28 = vmul.f32 %v3652_v48, %v3836_v15 }
  0xa2   : > { %960 = vst.msk [vmem:[#allocation3 + $0x80] sm:$0xff] %vm335_vm0, %v928_v23  ;;  %v915_v60 = vadd.f32 %v883_v46, %v817_v54  ;;  %v889_v23 = vmul.f32 %v3581_v42, %v3831_v9  ;;  %v1206_v46 = vmul.f32 %v3790_v22, %v3734_v24  ;;  %v3865_v58 = vld [vmem:[#allocation2 + $0x62] sm:$0xff] }
  0xa3   : > { %949 = vst.msk [vmem:[#allocation3 + $0x28] sm:$0xff] %vm335_vm0, %v917_v35 }
  0xa4   : > { %790 = vst.msk [vmem:[#allocation3 + $0x40] sm:$0xff] %vm335_vm0, %v758_v39  ;;  %v980_v59 = vld [vmem:[#allocation3 + $0x20] sm:$0xff]  ;;  %v706_v39 = vld [vmem:[#allocation2 + $0x108] sm:$0xff] }
  0xa5   : > { %791 = vst.msk [vmem:[#allocation3 + $0x48] sm:$0xff] %vm335_vm0, %v759_v43  ;;  %v1138_v62 = vld [vmem:[#allocation3] sm:$0xff]  ;;  %v1078_v2 = vadd.f32 %v1046_v52, %v980_v59  ;;  %v1366_v43 = vmul.f32 %v3846_v20, %v3766_v1  ;;  %v1372_v1 = vmul.f32 %v3846_v20, %v3828_v6  ;;  %v740_v29 = vmul.f32 %v3555_v36, %v706_v39 }
  0xa6   : > { %v1236_v4 = vadd.f32 %v1204_v44, %v1138_v62  ;;  %v978_v5 = vld [vmem:[#allocation3 + $0x10] sm:$0xff]  ;;  %947 = vst.msk [vmem:[#allocation3 + $0x18] sm:$0xff] %vm335_vm0, %v915_v60  ;;  %v1373_v60 = vmul.f32 %v3846_v20, %v3831_v9  ;;  %v1368_v39 = vmul.f32 %v3846_v20, %v3761_v56 }
  0xa7   : > { %1110 = vst.msk [vmem:[#allocation3 + $0x20] sm:$0xff] %vm335_vm0, %v1078_v2  ;;  %v1076_v8 = vadd.f32 %v1044_v3, %v978_v5  ;;  %v674_v62 = vld [vmem:[#allocation3 + $0xb0] sm:$0xff]  ;;  %v1209_v2 = vmul.f32 %v3790_v22, %v3656_v50 }
  0xa8   : > { %1268 = vst.msk [vmem:[#allocation3] sm:$0xff] %vm335_vm0, %v1236_v4  ;;  %v1139_v55 = vld [vmem:[#allocation3 + $0x8] sm:$0xff] }
  0xa9   : > { %1108 = vst.msk [vmem:[#allocation3 + $0x10] sm:$0xff] %vm335_vm0, %v1076_v8  ;;  %v1237_v35 = vadd.f32 %v1205_v16, %v1139_v55  ;;  %v772_v16 = vadd.f32 %v740_v29, %v674_v62 }
  0xaa   : > { %v981_v14 = vld [vmem:[#allocation3 + $0x28] sm:$0xff]  ;;  %1274 = vst.msk [vmem:[#allocation3 + $0x30] sm:$0xff] %vm335_vm0, %v1242_v7  ;;  %v1050_v7 = vmul.f32 %v3652_v48, %v3865_v58 }
  0xab   : > { %v1079_v21 = vadd.f32 %v1047_v13, %v981_v14  ;;  %v822_v25 = vld [vmem:[#allocation3 + $0x40] sm:$0xff]  ;;  %1275 = vst.msk [vmem:[#allocation3 + $0x38] sm:$0xff] %vm335_vm0, %v1243_v10  ;;  %v3882_v10 = vld [vmem:[%s5107_s1 + $0x5] ss:$0 sm:$0xff] }
  0xac   : > { %v823_v26 = vld [vmem:[#allocation3 + $0x48] sm:$0xff]  ;;  %v920_v27 = vadd.f32 %v888_v19, %v822_v25  ;;  %1269 = vst.msk [vmem:[#allocation3 + $0x8] sm:$0xff] %vm335_vm0, %v1237_v35  ;;  %v3885_v19 = vld [vmem:[#allocation2 + $0x90] sm:$0xff]  ;;  %v1207_v25 = vmul.f32 %v3790_v22, %v3749_v40 }
  0xad   : > { %1111 = vst.msk [vmem:[#allocation3 + $0x28] sm:$0xff] %vm335_vm0, %v1079_v21  ;;  %v921_v30 = vadd.f32 %v889_v23, %v823_v26  ;;  %v979_v34 = vld [vmem:[#allocation3 + $0x18] sm:$0xff]  ;;  %v1367_v21 = vmul.f32 %v3846_v20, %v3799_v33  ;;  %v664_v35 = vld [vmem:[#allocation3 + $0x60] sm:$0xff] }
  0xae   : > { %952 = vst.msk [vmem:[#allocation3 + $0x40] sm:$0xff] %vm335_vm0, %v920_v27  ;;  %v1142_v44 = vld [vmem:[#allocation3 + $0x20] sm:$0xff]  ;;  %v1077_v45 = vadd.f32 %v1045_v28, %v979_v34  ;;  %v1370_v27 = vmul.f32 %v3846_v20, %v3574_v41 }
  0xaf   : > { %953 = vst.msk [vmem:[#allocation3 + $0x48] sm:$0xff] %vm335_vm0, %v921_v30  ;;  %v1300_v49 = vld [vmem:[#allocation3] sm:$0xff]  ;;  %v1240_v52 = vadd.f32 %v1208_v32, %v1142_v44  ;;  %v730_v30 = vmul.f32 %v3555_v36, %v3885_v19  ;;  %v1528_v32 = vmul.f32 %v3882_v10, %v3812_v47 }
  0xb0   : > { %v1398_v53 = vadd.f32 %v1366_v43, %v1300_v49  ;;  %1109 = vst.msk [vmem:[#allocation3 + $0x18] sm:$0xff] %vm335_vm0, %v1077_v45  ;;  %v1140_v54 = vld [vmem:[#allocation3 + $0x10] sm:$0xff]  ;;  %v1534_v49 = vmul.f32 %v3882_v10, %v3865_v58 }
  0xb1   : > { %1272 = vst.msk [vmem:[#allocation3 + $0x20] sm:$0xff] %vm335_vm0, %v1240_v52  ;;  %v1238_v59 = vadd.f32 %v1206_v46, %v1140_v54  ;;  %v1306_v61 = vld [vmem:[#allocation3 + $0x30] sm:$0xff]  ;;  %v762_v54 = vadd.f32 %v730_v30, %v664_v35  ;;  %v3937_v30 = vld [vmem:[#allocation2 + $0x91] sm:$0xff] }
  0xb2   : > { %1430 = vst.msk [vmem:[#allocation3] sm:$0xff] %vm335_vm0, %v1398_v53  ;;  %v1307_v3 = vld [vmem:[#allocation3 + $0x38] sm:$0xff]  ;;  %v1404_v4 = vadd.f32 %v1372_v1, %v1306_v61  ;;  %v1371_v1 = vmul.f32 %v3846_v20, %v3675_v57  ;;  %v3917_v61 = vld [vmem:[%s5107_s1 + $0x6] ss:$0 sm:$0xff] }
  0xb3   : > { %1270 = vst.msk [vmem:[#allocation3 + $0x10] sm:$0xff] %vm335_vm0, %v1238_v59  ;;  %v1405_v8 = vadd.f32 %v1373_v60, %v1307_v3  ;;  %v1301_v26 = vld [vmem:[#allocation3 + $0x8] sm:$0xff]  ;;  %v868_v53 = vld [vmem:[#allocation2 + $0x109] sm:$0xff]  ;;  %v1212_v59 = vmul.f32 %v3790_v22, %v3726_v17 }
  0xb4   : > { %v1143_v5 = vld [vmem:[#allocation3 + $0x28] sm:$0xff]  ;;  %1436 = vst.msk [vmem:[#allocation3 + $0x30] sm:$0xff] %vm335_vm0, %v1404_v4  ;;  %v1399_v28 = vadd.f32 %v1367_v21, %v1301_v26  ;;  %v902_v3 = vmul.f32 %v3581_v42, %v868_v53  ;;  %v1532_v21 = vmul.f32 %v3882_v10, %v3658_v51  ;;  %v1691_v26 = vmul.f32 %v3917_v61, %v3734_v24 }
  0xb5   : > { %v1241_v13 = vadd.f32 %v1209_v2, %v1143_v5  ;;  %v984_v14 = vld [vmem:[#allocation3 + $0x40] sm:$0xff]  ;;  %1437 = vst.msk [vmem:[#allocation3 + $0x38] sm:$0xff] %vm335_vm0, %v1405_v8  ;;  %v3921_v4 = vld [vmem:[#allocation2 + $0x98] sm:$0xff]  ;;  %v1529_v5 = vmul.f32 %v3882_v10, %v3836_v15 }
  0xb6   : > { %v1082_v23 = vadd.f32 %v1050_v7, %v984_v14  ;;  %804 = vst.msk [vmem:[#allocation3 + $0xb0] sm:$0xff] %vm335_vm0, %v772_v16  ;;  %v731_v15 = vmul.f32 %v3555_v36, %v3921_v4 }
  0xb7   : > { %1273 = vst.msk [vmem:[#allocation3 + $0x28] sm:$0xff] %vm335_vm0, %v1241_v13  ;;  %v1141_v55 = vld [vmem:[#allocation3 + $0x18] sm:$0xff]  ;;  %v1369_v13 = vmul.f32 %v3846_v20, %v3777_v11 }
  0xb8   : > { %1114 = vst.msk [vmem:[#allocation3 + $0x40] sm:$0xff] %vm335_vm0, %v1082_v23  ;;  %v1239_v33 = vadd.f32 %v1207_v25, %v1141_v55  ;;  %v1304_v34 = vld [vmem:[#allocation3 + $0x20] sm:$0xff] }
  0xb9   : > { %v1462_v43 = vld [vmem:[#allocation3] sm:$0xff]  ;;  %1431 = vst.msk [vmem:[#allocation3 + $0x8] sm:$0xff] %vm335_vm0, %v1399_v28  ;;  %v1402_v44 = vadd.f32 %v1370_v27, %v1304_v34  ;;  %v665_v28 = vld [vmem:[#allocation3 + $0x68] sm:$0xff] }
  0xba   : > { %1271 = vst.msk [vmem:[#allocation3 + $0x18] sm:$0xff] %vm335_vm0, %v1239_v33  ;;  %v1302_v45 = vld [vmem:[#allocation3 + $0x10] sm:$0xff]  ;;  %v1560_v46 = vadd.f32 %v1528_v32, %v1462_v43  ;;  %v1530_v33 = vmul.f32 %v3882_v10, %v3804_v37  ;;  %v3942_v34 = vld [vmem:[#allocation2 + $0x6a] sm:$0xff] }
  0xbb   : > { %v1400_v52 = vadd.f32 %v1368_v39, %v1302_v45  ;;  %1434 = vst.msk [vmem:[#allocation3 + $0x20] sm:$0xff] %vm335_vm0, %v1402_v44  ;;  %v1468_v47 = vld [vmem:[#allocation3 + $0x30] sm:$0xff]  ;;  %v1697_v39 = vmul.f32 %v3917_v61, %v3726_v17  ;;  %v1051_v17 = vmul.f32 %v3652_v48, %v3942_v34 }
  0xbc   : > { %1592 = vst.msk [vmem:[#allocation3] sm:$0xff] %vm335_vm0, %v1560_v46  ;;  %v1566_v29 = vadd.f32 %v1534_v49, %v1468_v47  ;;  %v763_v46 = vadd.f32 %v731_v15, %v665_v28  ;;  %v892_v49 = vmul.f32 %v3581_v42, %v3937_v30  ;;  %v1533_v47 = vmul.f32 %v3882_v10, %v3697_v0  ;;  %v3982_v28 = vld [vmem:[#allocation2 + $0x92] sm:$0xff] }
  0xbd   : > { %1432 = vst.msk [vmem:[#allocation3 + $0x10] sm:$0xff] %vm335_vm0, %v1400_v52  ;;  %v836_v8 = vld [vmem:[#allocation3 + $0xb0] sm:$0xff]  ;;  %v985_v52 = vld [vmem:[#allocation3 + $0x48] sm:$0xff]  ;;  %v1693_v15 = vmul.f32 %v3917_v61, %v3559_v38  ;;  %v1535_v38 = vmul.f32 %v3882_v10, %v3942_v34 }
  0xbe   : > { %v1305_v60 = vld [vmem:[#allocation3 + $0x28] sm:$0xff]  ;;  %1598 = vst.msk [vmem:[#allocation3 + $0x30] sm:$0xff] %vm335_vm0, %v1566_v29  ;;  %v934_v16 = vadd.f32 %v902_v3, %v836_v8  ;;  %v1531_v3 = vmul.f32 %v3882_v10, %v3822_v63 }
  0xbf   : > { %v1403_v62 = vadd.f32 %v1371_v1, %v1305_v60  ;;  %v1146_v2 = vld [vmem:[#allocation3 + $0x40] sm:$0xff]  ;;  %794 = vst.msk [vmem:[#allocation3 + $0x60] sm:$0xff] %vm335_vm0, %v762_v54 }
  0xc0   : > { %v1244_v7 = vadd.f32 %v1212_v59, %v1146_v2  ;;  %v1463_v14 = vld [vmem:[#allocation3 + $0x8] sm:$0xff]  ;;  %966 = vst.msk [vmem:[#allocation3 + $0xb0] sm:$0xff] %vm335_vm0, %v934_v16  ;;  %v3959_v59 = vld [vmem:[%s5107_s1 + $0x7] ss:$0 sm:$0xff]  ;;  %v1692_v2 = vmul.f32 %v3917_v61, %v3749_v40  ;;  %v1374_v16 = vmul.f32 %v3846_v20, %v3743_v31 }
  0xc1   : > { %1435 = vst.msk [vmem:[#allocation3 + $0x28] sm:$0xff] %vm335_vm0, %v1403_v62  ;;  %v1303_v23 = vld [vmem:[#allocation3 + $0x18] sm:$0xff]  ;;  %v1561_v25 = vadd.f32 %v1529_v5, %v1463_v14  ;;  %v1083_v62 = vadd.f32 %v1051_v17, %v985_v52  ;;  %v3973_v40 = vld [vmem:[#allocation2 + $0x99] sm:$0xff] }
  0xc2   : > { %1276 = vst.msk [vmem:[#allocation3 + $0x40] sm:$0xff] %vm335_vm0, %v1244_v7  ;;  %v1401_v27 = vadd.f32 %v1369_v13, %v1303_v23  ;;  %v1466_v55 = vld [vmem:[#allocation3 + $0x20] sm:$0xff]  ;;  %v1695_v13 = vmul.f32 %v3917_v61, %v3780_v12  ;;  %v695_v17 = vld [vmem:[#allocation2 + $0x80] sm:$0xff] }
  0xc3   : > { %1593 = vst.msk [vmem:[#allocation3 + $0x8] sm:$0xff] %vm335_vm0, %v1561_v25  ;;  %v1624_v32 = vld [vmem:[#allocation3] sm:$0xff]  ;;  %v1564_v35 = vadd.f32 %v1532_v21, %v1466_v55  ;;  %v1853_v21 = vmul.f32 %v3959_v59, %v3761_v56  ;;  %v893_v56 = vmul.f32 %v3581_v42, %v3973_v40 }
  0xc4   : > { %1433 = vst.msk [vmem:[#allocation3 + $0x18] sm:$0xff] %vm335_vm0, %v1401_v27  ;;  %v1464_v24 = vld [vmem:[#allocation3 + $0x10] sm:$0xff]  ;;  %v1723_v43 = vadd.f32 %v1691_v26, %v1624_v32 }
  0xc5   : > { %v1562_v44 = vadd.f32 %v1530_v33, %v1464_v24  ;;  %1596 = vst.msk [vmem:[#allocation3 + $0x20] sm:$0xff] %vm335_vm0, %v1564_v35  ;;  %v1630_v45 = vld [vmem:[#allocation3 + $0x30] sm:$0xff]  ;;  %v1469_v35 = vld [vmem:[#allocation3 + $0x38] sm:$0xff] }
  0xc6   : > { %1755 = vst.msk [vmem:[#allocation3] sm:$0xff] %vm335_vm0, %v1723_v43  ;;  %v1729_v53 = vadd.f32 %v1697_v39, %v1630_v45  ;;  %v826_v54 = vld [vmem:[#allocation3 + $0x60] sm:$0xff]  ;;  %v1696_v39 = vmul.f32 %v3917_v61, %v3784_v18  ;;  %v1054_v45 = vmul.f32 %v3652_v48, %v3982_v28  ;;  %v1854_v18 = vmul.f32 %v3959_v59, %v3777_v11 }
  0xc7   : > { %1594 = vst.msk [vmem:[#allocation3 + $0x10] sm:$0xff] %vm335_vm0, %v1562_v44  ;;  %v924_v29 = vadd.f32 %v892_v49, %v826_v54  ;;  %v1694_v54 = vmul.f32 %v3917_v61, %v3656_v50  ;;  %v729_v11 = vmul.f32 %v3555_v36, %v695_v17 }
  0xc8   : > { %v1467_v1 = vld [vmem:[#allocation3 + $0x28] sm:$0xff]  ;;  %1761 = vst.msk [vmem:[#allocation3 + $0x30] sm:$0xff] %vm335_vm0, %v1729_v53 }
  0xc9   : > { %v1565_v60 = vadd.f32 %v1533_v47, %v1467_v1  ;;  %795 = vst.msk [vmem:[#allocation3 + $0x68] sm:$0xff] %vm335_vm0, %v763_v46  ;;  %v1308_v14 = vld [vmem:[#allocation3 + $0x40] sm:$0xff]  ;;  %v3998_v46 = vld [vmem:[%s5107_s1 + $0x8] ss:$0 sm:$0xff]  ;;  %v1567_v47 = vadd.f32 %v1535_v38, %v1469_v35 }
  0xca   : > { %v1625_v5 = vld [vmem:[#allocation3 + $0x8] sm:$0xff]  ;;  %956 = vst.msk [vmem:[#allocation3 + $0x60] sm:$0xff] %vm335_vm0, %v924_v29  ;;  %v1406_v33 = vadd.f32 %v1374_v16, %v1308_v14  ;;  %v2015_v50 = vmul.f32 %v3998_v46, %v3804_v37  ;;  %v1855_v14 = vmul.f32 %v3959_v59, %v3574_v41  ;;  %v1858_v41 = vmul.f32 %v3959_v59, %v3831_v9 }
  0xcb   : > { %1597 = vst.msk [vmem:[#allocation3 + $0x28] sm:$0xff] %vm335_vm0, %v1565_v60  ;;  %v1465_v7 = vld [vmem:[#allocation3 + $0x18] sm:$0xff]  ;;  %v1724_v8 = vadd.f32 %v1692_v2, %v1625_v5  ;;  %v4007_v29 = vld [vmem:[#allocation2 + $0x7a] sm:$0xff]  ;;  %v1857_v2 = vmul.f32 %v3959_v59, %v3828_v6  ;;  %v1859_v5 = vmul.f32 %v3959_v59, %v3743_v31  ;;  %v1856_v9 = vmul.f32 %v3959_v59, %v3675_v57 }
  0xcc   : > { %v1563_v23 = vadd.f32 %v1531_v3, %v1465_v7  ;;  %v1628_v25 = vld [vmem:[#allocation3 + $0x20] sm:$0xff]  ;;  %1115 = vst.msk [vmem:[#allocation3 + $0x48] sm:$0xff] %vm335_vm0, %v1083_v62  ;;  %v1052_v36 = vmul.f32 %v3652_v48, %v4007_v29 }
  0xcd   : > { %1756 = vst.msk [vmem:[#allocation3 + $0x8] sm:$0xff] %vm335_vm0, %v1724_v8  ;;  %v1787_v12 = vld [vmem:[#allocation3] sm:$0xff]  ;;  %v1727_v26 = vadd.f32 %v1695_v13, %v1628_v25  ;;  %v663_v13 = vld [vmem:[#allocation3 + $0x58] sm:$0xff] }
  0xce   : > { %1595 = vst.msk [vmem:[#allocation3 + $0x18] sm:$0xff] %vm335_vm0, %v1563_v23  ;;  %v1626_v27 = vld [vmem:[#allocation3 + $0x10] sm:$0xff]  ;;  %v1885_v55 = vadd.f32 %v1853_v21, %v1787_v12 }
  0xcf   : > { %v1725_v32 = vadd.f32 %v1693_v15, %v1626_v27  ;;  %1759 = vst.msk [vmem:[#allocation3 + $0x20] sm:$0xff] %vm335_vm0, %v1727_v26  ;;  %v1793_v3 = vld [vmem:[#allocation3 + $0x30] sm:$0xff]  ;;  %v761_v15 = vadd.f32 %v729_v11, %v663_v13  ;;  %v1213_v26 = vmul.f32 %v3790_v22, %v695_v17 }
  0xd0   : > { %1917 = vst.msk [vmem:[#allocation3] sm:$0xff] %vm335_vm0, %v1885_v55  ;;  %v827_v24 = vld [vmem:[#allocation3 + $0x68] sm:$0xff]  ;;  %v1891_v37 = vadd.f32 %v1859_v5, %v1793_v3  ;;  %v986_v12 = vld [vmem:[#allocation3 + $0x50] sm:$0xff]  ;;  %v1214_v3 = vmul.f32 %v3790_v22, %v3885_v19  ;;  %v2021_v5 = vmul.f32 %v3998_v46, %v4007_v29 }
  0xd1   : > { %1757 = vst.msk [vmem:[#allocation3 + $0x10] sm:$0xff] %vm335_vm0, %v1725_v32  ;;  %v925_v44 = vadd.f32 %v893_v56, %v827_v24  ;;  %v988_v52 = vld [vmem:[#allocation3 + $0x60] sm:$0xff]  ;;  %v1084_v55 = vadd.f32 %v1052_v36, %v986_v12  ;;  %v2016_v32 = vmul.f32 %v3998_v46, %v3822_v63  ;;  %v491_v36 = vpop.permute.xlu1 %490 }
  0xd2   : > { %v1629_v43 = vld [vmem:[#allocation3 + $0x28] sm:$0xff]  ;;  %1438 = vst.msk [vmem:[#allocation3 + $0x40] sm:$0xff] %vm335_vm0, %v1406_v33  ;;  %v1086_v53 = vadd.f32 %v1054_v45, %v988_v52  ;;  %v857_v52 = vld [vmem:[#allocation2 + $0x81] sm:$0xff] }
  0xd3   : > { %v1728_v49 = vadd.f32 %v1696_v39, %v1629_v43  ;;  %957 = vst.msk [vmem:[#allocation3 + $0x68] sm:$0xff] %vm335_vm0, %v925_v44  ;;  %v1147_v25 = vld [vmem:[#allocation3 + $0x48] sm:$0xff]  ;;  %v1536_v39 = vmul.f32 %v3882_v10, %v4007_v29  ;;  %v2019_v44 = vmul.f32 %v3998_v46, %v3865_v58 }
  0xd4   : > { %v1788_v1 = vld [vmem:[#allocation3 + $0x8] sm:$0xff]  ;;  %1118 = vst.msk [vmem:[#allocation3 + $0x60] sm:$0xff] %vm335_vm0, %v1086_v53  ;;  %v1245_v56 = vadd.f32 %v1213_v26, %v1147_v25  ;;  %v1019_v25 = vld [vmem:[#allocation2 + $0x82] sm:$0xff]  ;;  %v1860_v26 = vmul.f32 %v3959_v59, %v857_v52 }
  0xd5   : > { %1760 = vst.msk [vmem:[#allocation3 + $0x28] sm:$0xff] %vm335_vm0, %v1728_v49  ;;  %v1627_v60 = vld [vmem:[#allocation3 + $0x18] sm:$0xff]  ;;  %v1886_v62 = vadd.f32 %v1854_v18, %v1788_v1  ;;  %v2017_v18 = vmul.f32 %v3998_v46, %v3658_v51  ;;  %v4064_v29 = vld [vmem:[#allocation2 + $0x9a] sm:$0xff] }
  0xd6   : > { %v1726_v7 = vadd.f32 %v1694_v54, %v1627_v60  ;;  %v1791_v8 = vld [vmem:[#allocation3 + $0x20] sm:$0xff]  ;;  %1599 = vst.msk [vmem:[#allocation3 + $0x38] sm:$0xff] %vm335_vm0, %v1567_v47  ;;  %v1698_v47 = vmul.f32 %v3917_v61, %v695_v17  ;;  %v891_v60 = vmul.f32 %v3581_v42, %v857_v52 }
  0xd7   : > { %1918 = vst.msk [vmem:[#allocation3 + $0x8] sm:$0xff] %vm335_vm0, %v1886_v62  ;;  %v1949_v6 = vld [vmem:[#allocation3] sm:$0xff]  ;;  %v1889_v16 = vadd.f32 %v1857_v2, %v1791_v8  ;;  %v2020_v62 = vmul.f32 %v3998_v46, %v3942_v34  ;;  %v1375_v8 = vmul.f32 %v3846_v20, %v857_v52 }
  0xd8   : > { %1758 = vst.msk [vmem:[#allocation3 + $0x18] sm:$0xff] %vm335_vm0, %v1726_v7  ;;  %v1789_v31 = vld [vmem:[#allocation3 + $0x10] sm:$0xff]  ;;  %v2047_v21 = vadd.f32 %v2015_v50, %v1949_v6  ;;  %v541_v50 = vpop.permute.xlu2 %540  ;;  %v2018_v6 = vmul.f32 %v3998_v46, %v3697_v0 }
  0xd9   : > { %v1887_v23 = vadd.f32 %v1855_v14, %v1789_v31  ;;  %1921 = vst.msk [vmem:[#allocation3 + $0x20] sm:$0xff] %vm335_vm0, %v1889_v16  ;;  %v1470_v35 = vld [vmem:[#allocation3 + $0x40] sm:$0xff] }
  0xda   : > { %2079 = vst.msk [vmem:[#allocation3] sm:$0xff] %vm335_vm0, %v2047_v21  ;;  %v1568_v57 = vadd.f32 %v1536_v39, %v1470_v35  ;;  %v486_v21 = vpop.permute.xlu0 %485  ;;  %v989_v0 = vld [vmem:[#allocation3 + $0x68] sm:$0xff] }
  0xdb   : > { %1919 = vst.msk [vmem:[#allocation3 + $0x10] sm:$0xff] %vm335_vm0, %v1887_v23  ;;  %v1699_v23 = vmul.f32 %v3917_v61, %v3885_v19 }
  0xdc   : > { %v1792_v27 = vld [vmem:[#allocation3 + $0x28] sm:$0xff]  ;;  %1923 = vst.msk [vmem:[#allocation3 + $0x30] sm:$0xff] %vm335_vm0, %v1891_v37 }
  0xdd   : > { %v1890_v33 = vadd.f32 %v1858_v41, %v1792_v27  ;;  %793 = vst.msk [vmem:[#allocation3 + $0x58] sm:$0xff] %vm335_vm0, %v761_v15  ;;  %v1631_v45 = vld [vmem:[#allocation3 + $0x38] sm:$0xff]  ;;  %v1055_v41 = vmul.f32 %v3652_v48, %v4064_v29  ;;  %v1053_v27 = vmul.f32 %v3652_v48, %v1019_v25 }
  0xde   : > { %v1950_v38 = vld [vmem:[#allocation3 + $0x8] sm:$0xff]  ;;  %1116 = vst.msk [vmem:[#allocation3 + $0x50] sm:$0xff] %vm335_vm0, %v1084_v55  ;;  %v1730_v54 = vadd.f32 %v1698_v47, %v1631_v45  ;;  %v1215_v47 = vmul.f32 %v3790_v22, %v3921_v4 }
  0xdf   : > { %1922 = vst.msk [vmem:[#allocation3 + $0x28] sm:$0xff] %vm335_vm0, %v1890_v33  ;;  %v1790_v24 = vld [vmem:[#allocation3 + $0x18] sm:$0xff]  ;;  %v2048_v43 = vadd.f32 %v2016_v32, %v1950_v38  ;;  %v1376_v32 = vmul.f32 %v3846_v20, %v3937_v30  ;;  %v1537_v38 = vmul.f32 %v3882_v10, %v1019_v25 }
  0xe0   : > { %v1888_v63 = vadd.f32 %v1856_v9, %v1790_v24  ;;  %v1953_v49 = vld [vmem:[#allocation3 + $0x20] sm:$0xff]  ;;  %1277 = vst.msk [vmem:[#allocation3 + $0x48] sm:$0xff] %vm335_vm0, %v1245_v56  ;;  %v1087_v56 = vadd.f32 %v1055_v41, %v989_v0  ;;  %v556_v9 = vpop.permute.xlu2 %555 }
  0xe1   : > { %2080 = vst.msk [vmem:[#allocation3 + $0x8] sm:$0xff] %vm335_vm0, %v2048_v43  ;;  %v2051_v53 = vadd.f32 %v2019_v44, %v1953_v49  ;;  %v506_v44 = vpop.permute.xlu1 %505 }
  0xe2   : > { %1920 = vst.msk [vmem:[#allocation3 + $0x18] sm:$0xff] %vm335_vm0, %v1888_v63  ;;  %v1951_v58 = vld [vmem:[#allocation3 + $0x10] sm:$0xff]  ;;  %v501_v45 = vpop.permute.xlu0 %500  ;;  %v1861_v63 = vmul.f32 %v3959_v59, %v3937_v30 }
  0xe3   : > { %v2049_v1 = vadd.f32 %v2017_v18, %v1951_v58  ;;  %2083 = vst.msk [vmem:[#allocation3 + $0x20] sm:$0xff] %vm335_vm0, %v2051_v53  ;;  %v1955_v2 = vld [vmem:[#allocation3 + $0x30] sm:$0xff]  ;;  %v1538_v58 = vmul.f32 %v3882_v10, %v3982_v28 }
  0xe4   : > { %v825_v17 = vld [vmem:[#allocation3 + $0x58] sm:$0xff]  ;;  %1600 = vst.msk [vmem:[#allocation3 + $0x40] sm:$0xff] %vm335_vm0, %v1568_v57  ;;  %v2053_v14 = vadd.f32 %v2021_v5, %v1955_v2  ;;  %v2022_v57 = vmul.f32 %v3998_v46, %v1019_v25 }
  0xe5   : > { %2081 = vst.msk [vmem:[#allocation3 + $0x10] sm:$0xff] %vm335_vm0, %v2049_v1  ;;  %v923_v11 = vadd.f32 %v891_v60, %v825_v17  ;;  %v1148_v42 = vld [vmem:[#allocation3 + $0x50] sm:$0xff]  ;;  %v1700_v60 = vmul.f32 %v3917_v61, %v3921_v4 }
  0xe6   : > { %v1954_v51 = vld [vmem:[#allocation3 + $0x28] sm:$0xff]  ;;  %1762 = vst.msk [vmem:[#allocation3 + $0x38] sm:$0xff] %vm335_vm0, %v1730_v54  ;;  %v1246_v34 = vadd.f32 %v1214_v3, %v1148_v42  ;;  %v666_v17 = vld [vmem:[#allocation3 + $0x70] sm:$0xff]  ;;  %v1150_v42 = vld [vmem:[#allocation3 + $0x60] sm:$0xff] }
  0xe7   : > { %v2052_v7 = vadd.f32 %v2020_v62, %v1954_v51  ;;  %955 = vst.msk [vmem:[#allocation3 + $0x58] sm:$0xff] %vm335_vm0, %v923_v11  ;;  %v1309_v13 = vld [vmem:[#allocation3 + $0x48] sm:$0xff]  ;;  %v667_v11 = vld [vmem:[#allocation3 + $0x78] sm:$0xff]  ;;  %v4110_v4 = vld [vmem:[%s5107_s1] ss:$0 sm:$0xff] }
  0xe8   : > { %v1407_v16 = vadd.f32 %v1375_v8, %v1309_v13  ;;  %1278 = vst.msk [vmem:[#allocation3 + $0x50] sm:$0xff] %vm335_vm0, %v1246_v34  ;;  %v571_v1 = vpop.permute.xlu2 %570 }
  0xe9   : > { %2084 = vst.msk [vmem:[#allocation3 + $0x28] sm:$0xff] %vm335_vm0, %v2052_v7  ;;  %v1952_v31 = vld [vmem:[#allocation3 + $0x18] sm:$0xff]  ;;  %v521_v7 = vpop.permute.xlu1 %520 }
  0xea   : > { %v2050_v37 = vadd.f32 %v2018_v6, %v1952_v31  ;;  %1439 = vst.msk [vmem:[#allocation3 + $0x48] sm:$0xff] %vm335_vm0, %v1407_v16  ;;  %v516_v13 = vpop.permute.xlu0 %515 }
  0xeb   : > { %v1632_v15 = vld [vmem:[#allocation3 + $0x40] sm:$0xff]  ;;  %2085 = vst.msk [vmem:[#allocation3 + $0x30] sm:$0xff] %vm335_vm0, %v2053_v14  ;;  %v2023_v14 = vmul.f32 %v3998_v46, %v3982_v28  ;;  %v1377_v28 = vmul.f32 %v3846_v20, %v3973_v40 }
  0xec   : > { %2082 = vst.msk [vmem:[#allocation3 + $0x18] sm:$0xff] %vm335_vm0, %v2050_v37  ;;  %v1731_v12 = vadd.f32 %v1699_v23, %v1632_v15 }
  0xed   : > { %v1794_v55 = vld [vmem:[#allocation3 + $0x38] sm:$0xff]  ;;  %607 = vst.msk [vmem:[#allocation2 + $0x129] sm:$0xff] %vm335_vm0, %v541_v50 }
  0xee   : > { %v987_v19 = vld [vmem:[#allocation3 + $0x58] sm:$0xff]  ;;  %1763 = vst.msk [vmem:[#allocation3 + $0x40] sm:$0xff] %vm335_vm0, %v1731_v12  ;;  %v1892_v33 = vadd.f32 %v1860_v26, %v1794_v55  ;;  %v680_v55 = vld [vmem:[#allocation3 + $0xe0] sm:$0xff] }
  0xef   : > { %v1085_v35 = vadd.f32 %v1053_v27, %v987_v19  ;;  %597 = vst.msk [vmem:[#allocation2 + $0xb1] sm:$0xff] %vm335_vm0, %v491_v36  ;;  %v1310_v48 = vld [vmem:[#allocation3 + $0x50] sm:$0xff] }
  0xf0   : > { %1924 = vst.msk [vmem:[#allocation3 + $0x38] sm:$0xff] %vm335_vm0, %v1892_v33  ;;  %v1408_v24 = vadd.f32 %v1376_v32, %v1310_v48  ;;  %v670_v33 = vld [vmem:[#allocation3 + $0x90] sm:$0xff]  ;;  %v1862_v32 = vmul.f32 %v3959_v59, %v3973_v40 }
  0xf1   : > { %1117 = vst.msk [vmem:[#allocation3 + $0x58] sm:$0xff] %vm335_vm0, %v1085_v35  ;;  %v1471_v39 = vld [vmem:[#allocation3 + $0x48] sm:$0xff]  ;;  %v4148_v40 = vld [vmem:[%s5107_s1 + $0x1] ss:$0 sm:$0xff] }
  0xf2   : > { %v1569_v43 = vadd.f32 %v1537_v38, %v1471_v39  ;;  %1119 = vst.msk [vmem:[#allocation3 + $0x68] sm:$0xff] %vm335_vm0, %v1087_v56 }
  0xf3   : > { %1440 = vst.msk [vmem:[#allocation3 + $0x50] sm:$0xff] %vm335_vm0, %v1408_v24 }
  0xf4   : > { %1601 = vst.msk [vmem:[#allocation3 + $0x48] sm:$0xff] %vm335_vm0, %v1569_v43  ;;  %v671_v43 = vld [vmem:[#allocation3 + $0x98] sm:$0xff] }
  0xf5   : > { %v1795_v49 = vld [vmem:[#allocation3 + $0x40] sm:$0xff]  ;;  %596 = vst.msk [vmem:[#allocation2 + $0xa9] sm:$0xff] %vm335_vm0, %v486_v21 }
  0xf6   : > { %v1893_v52 = vadd.f32 %v1861_v63, %v1795_v49  ;;  %610 = vst.msk [vmem:[#allocation2 + $0x151] sm:$0xff] %vm335_vm0, %v556_v9 }
  0xf7   : > { %v1956_v18 = vld [vmem:[#allocation3 + $0x38] sm:$0xff]  ;;  %600 = vst.msk [vmem:[#allocation2 + $0xd9] sm:$0xff] %vm335_vm0, %v506_v44 }
  0xf8   : > { %v1149_v53 = vld [vmem:[#allocation3 + $0x58] sm:$0xff]  ;;  %1925 = vst.msk [vmem:[#allocation3 + $0x40] sm:$0xff] %vm335_vm0, %v1893_v52  ;;  %v2054_v30 = vadd.f32 %v2022_v57, %v1956_v18 }
  0xf9   : > { %v1247_v54 = vadd.f32 %v1215_v47, %v1149_v53  ;;  %599 = vst.msk [vmem:[#allocation2 + $0xc9] sm:$0xff] %vm335_vm0, %v501_v45  ;;  %v1151_v31 = vld [vmem:[#allocation3 + $0x68] sm:$0xff] }
  0xfa   : > { %2086 = vst.msk [vmem:[#allocation3 + $0x38] sm:$0xff] %vm335_vm0, %v2054_v30  ;;  %v1472_v62 = vld [vmem:[#allocation3 + $0x50] sm:$0xff]  ;;  %v4142_v45 = vld [vmem:[#allocation2 + $0xb1] sm:$0xff] }
  0xfb   : > { %1279 = vst.msk [vmem:[#allocation3 + $0x58] sm:$0xff] %vm335_vm0, %v1247_v54  ;;  %v1633_v2 = vld [vmem:[#allocation3 + $0x48] sm:$0xff]  ;;  %v1570_v51 = vadd.f32 %v1538_v58, %v1472_v62  ;;  %v895_v47 = vmul.f32 %v4148_v40, %v4142_v45  ;;  %v1539_v58 = vmul.f32 %v3882_v10, %v4064_v29 }
  0xfc   : > { %v1732_v3 = vadd.f32 %v1700_v60, %v1633_v2  ;;  %v698_v5 = vld [vmem:[#allocation2 + $0xa8] sm:$0xff]  ;;  %v4103_v50 = vld [vmem:[#allocation2 + $0xb0] sm:$0xff]  ;;  %613 = vst.msk [vmem:[#allocation2 + $0x171] sm:$0xff] %vm335_vm0, %v571_v1  ;;  %v1379_v60 = vmul.f32 %v3846_v20, %v4142_v45 }
  0xfd   : > { %1602 = vst.msk [vmem:[#allocation3 + $0x50] sm:$0xff] %vm335_vm0, %v1570_v51  ;;  %v732_v8 = vmul.f32 %v4110_v4, %v698_v5  ;;  %v733_v34 = vmul.f32 %v4110_v4, %v4103_v50  ;;  %v1216_v6 = vmul.f32 %v3790_v22, %v698_v5  ;;  %v712_v16 = vld [vmem:[#allocation2 + $0x150] sm:$0xff]  ;;  %v1217_v25 = vmul.f32 %v3790_v22, %v4103_v50 }
  0xfe   : > { %1764 = vst.msk [vmem:[#allocation3 + $0x48] sm:$0xff] %vm335_vm0, %v1732_v3  ;;  %v4122_v0 = vld [vmem:[#allocation2 + $0xd8] sm:$0xff]  ;;  %v746_v41 = vmul.f32 %v4110_v4, %v712_v16  ;;  %v4129_v12 = vld [vmem:[#allocation2 + $0xe0] sm:$0xff]  ;;  %v1701_v19 = vmul.f32 %v3917_v61, %v698_v5  ;;  %v860_v9 = vld [vmem:[#allocation2 + $0xa9] sm:$0xff] }
  0xff   : > { %v1957_v36 = vld [vmem:[#allocation3 + $0x40] sm:$0xff]  ;;  %v764_v21 = vadd.f32 %v732_v8, %v666_v17  ;;  %v765_v37 = vadd.f32 %v733_v34, %v667_v11  ;;  %603 = vst.msk [vmem:[#allocation2 + $0xf9] sm:$0xff] %vm335_vm0, %v521_v7  ;;  %v1248_v15 = vadd.f32 %v1216_v6, %v1150_v42  ;;  %v1249_v27 = vadd.f32 %v1217_v25, %v1151_v31  ;;  %v4168_v5 = vld [vmem:[#allocation2 + $0xd9] sm:$0xff]  ;;  %v4173_v34 = vld [vmem:[#allocation2 + $0xe1] sm:$0xff] }
 0x100   : > { %v2055_v23 = vadd.f32 %v2023_v14, %v1957_v36  ;;  %602 = vst.msk [vmem:[#allocation2 + $0xf1] sm:$0xff] %vm335_vm0, %v516_v13  ;;  %v736_v56 = vmul.f32 %v4110_v4, %v4122_v0  ;;  %v737_v38 = vmul.f32 %v4110_v4, %v4129_v12  ;;  %v778_v24 = vadd.f32 %v746_v41, %v680_v55  ;;  %v4163_v17 = vld [vmem:[#allocation2 + $0x151] sm:$0xff] }
 0x101   : > { %796 = vst.msk [vmem:[#allocation3 + $0x70] sm:$0xff] %vm335_vm0, %v764_v21  ;;  %v894_v49 = vmul.f32 %v4148_v40, %v860_v9  ;;  %v1378_v30 = vmul.f32 %v3846_v20, %v860_v9  ;;  %v1863_v11 = vmul.f32 %v3959_v59, %v860_v9  ;;  %v2024_v7 = vmul.f32 %v3998_v46, %v4064_v29  ;;  %v1022_v42 = vld [vmem:[#allocation2 + $0xaa] sm:$0xff]  ;;  %v4178_v36 = vld [vmem:[#allocation2 + $0xb2] sm:$0xff]  ;;  %v4186_v21 = vld [vmem:[%s5107_s1 + $0x2] ss:$0 sm:$0xff] }
 0x102   : > { %2087 = vst.msk [vmem:[#allocation3 + $0x40] sm:$0xff] %vm335_vm0, %v2055_v23  ;;  %v1311_v26 = vld [vmem:[#allocation3 + $0x58] sm:$0xff]  ;;  %v768_v63 = vadd.f32 %v736_v56, %v670_v33  ;;  %v769_v57 = vadd.f32 %v737_v38, %v671_v43  ;;  %v908_v6 = vmul.f32 %v4148_v40, %v4163_v17  ;;  %v898_v31 = vmul.f32 %v4148_v40, %v4168_v5 }
 0x103   : > { %v1409_v22 = vadd.f32 %v1377_v28, %v1311_v26  ;;  %797 = vst.msk [vmem:[#allocation3 + $0x78] sm:$0xff] %vm335_vm0, %v765_v37  ;;  %v1056_v37 = vmul.f32 %v4186_v21, %v1022_v42  ;;  %v899_v28 = vmul.f32 %v4148_v40, %v4173_v34  ;;  %v1057_v55 = vmul.f32 %v4186_v21, %v4178_v36 }
 0x104   : > { %v1634_v35 = vld [vmem:[#allocation3 + $0x50] sm:$0xff]  ;;  %1280 = vst.msk [vmem:[#allocation3 + $0x60] sm:$0xff] %vm335_vm0, %v1248_v15  ;;  %v4190_v15 = vld [vmem:[#allocation2 + $0xc8] sm:$0xff]  ;;  %v1540_v33 = vmul.f32 %v3882_v10, %v1022_v42  ;;  %v1702_v38 = vmul.f32 %v3917_v61, %v4103_v50  ;;  %v1541_v43 = vmul.f32 %v3882_v10, %v4178_v36 }
 0x105   : > { %v1796_v48 = vld [vmem:[#allocation3 + $0x48] sm:$0xff]  ;;  %1441 = vst.msk [vmem:[#allocation3 + $0x58] sm:$0xff] %vm335_vm0, %v1409_v22  ;;  %v1733_v39 = vadd.f32 %v1701_v19, %v1634_v35  ;;  %v735_v35 = vmul.f32 %v4110_v4, %v4190_v15 }
 0x106   : > { %v1894_v44 = vadd.f32 %v1862_v32, %v1796_v48  ;;  %1281 = vst.msk [vmem:[#allocation3 + $0x68] sm:$0xff] %vm335_vm0, %v1249_v27  ;;  %v4195_v27 = vld [vmem:[#allocation2 + $0xc2] sm:$0xff]  ;;  %v669_v48 = vld [vmem:[#allocation3 + $0x88] sm:$0xff] }
 0x107   : > { %1765 = vst.msk [vmem:[#allocation3 + $0x50] sm:$0xff] %vm335_vm0, %v1733_v39 }
 0x108   : > { %1926 = vst.msk [vmem:[#allocation3 + $0x48] sm:$0xff] %vm335_vm0, %v1894_v44  ;;  %v828_v52 = vld [vmem:[#allocation3 + $0x70] sm:$0xff] }
 0x109   : > { %v926_v18 = vadd.f32 %v894_v49, %v828_v52  ;;  %810 = vst.msk [vmem:[#allocation3 + $0xe0] sm:$0xff] %vm335_vm0, %v778_v24  ;;  %v1058_v24 = vmul.f32 %v4186_v21, %v4195_v27  ;;  %v2025_v52 = vmul.f32 %v3998_v46, %v1022_v42 }
 0x10a   : > { %v829_v53 = vld [vmem:[#allocation3 + $0x78] sm:$0xff]  ;;  %800 = vst.msk [vmem:[#allocation3 + $0x90] sm:$0xff] %vm335_vm0, %v768_v63 }
 0x10b   : > { %v927_v54 = vadd.f32 %v895_v47, %v829_v53  ;;  %958 = vst.msk [vmem:[#allocation3 + $0x70] sm:$0xff] %vm335_vm0, %v926_v18  ;;  %v1312_v1 = vld [vmem:[#allocation3 + $0x60] sm:$0xff] }
 0x10c   : > { %v1473_v62 = vld [vmem:[#allocation3 + $0x58] sm:$0xff]  ;;  %v1410_v2 = vadd.f32 %v1378_v30, %v1312_v1  ;;  %801 = vst.msk [vmem:[#allocation3 + $0x98] sm:$0xff] %vm335_vm0, %v769_v57  ;;  %v4213_v57 = vld [vmem:[#allocation2 + $0xda] sm:$0xff]  ;;  %v992_v18 = vld [vmem:[#allocation3 + $0x80] sm:$0xff]  ;;  %v767_v30 = vadd.f32 %v735_v35, %v669_v48 }
 0x10d   : > { %v1571_v51 = vadd.f32 %v1539_v58, %v1473_v62  ;;  %959 = vst.msk [vmem:[#allocation3 + $0x78] sm:$0xff] %vm335_vm0, %v927_v54  ;;  %v1313_v3 = vld [vmem:[#allocation3 + $0x68] sm:$0xff]  ;;  %v4217_v58 = vld [vmem:[#allocation2 + $0xe2] sm:$0xff]  ;;  %v1090_v54 = vadd.f32 %v1058_v24, %v992_v18  ;;  %v1060_v1 = vmul.f32 %v4186_v21, %v4213_v57 }
 0x10e   : > { %v1411_v8 = vadd.f32 %v1379_v60, %v1313_v3  ;;  %1442 = vst.msk [vmem:[#allocation3 + $0x60] sm:$0xff] %vm335_vm0, %v1410_v2  ;;  %v1797_v20 = vld [vmem:[#allocation3 + $0x50] sm:$0xff]  ;;  %v4223_v60 = vld [vmem:[#allocation2 + $0xf0] sm:$0xff] }
 0x10f   : > { %v1958_v13 = vld [vmem:[#allocation3 + $0x48] sm:$0xff]  ;;  %1603 = vst.msk [vmem:[#allocation3 + $0x58] sm:$0xff] %vm335_vm0, %v1571_v51  ;;  %v1895_v14 = vadd.f32 %v1863_v11, %v1797_v20  ;;  %v3321_v62 = vld [vmem:[#allocation2 + $0xc0] sm:$0xff]  ;;  %v1061_v11 = vmul.f32 %v4186_v21, %v4217_v58 }
 0x110   : > { %v2056_v16 = vadd.f32 %v2024_v7, %v1958_v13  ;;  %1443 = vst.msk [vmem:[#allocation3 + $0x68] sm:$0xff] %vm335_vm0, %v1411_v8  ;;  %v842_v29 = vld [vmem:[#allocation3 + $0xe0] sm:$0xff]  ;;  %v4228_v2 = vld [vmem:[%s5107_s1 + $0x3] ss:$0 sm:$0xff] }
 0x111   : > { %1927 = vst.msk [vmem:[#allocation3 + $0x50] sm:$0xff] %vm335_vm0, %v1895_v14  ;;  %v940_v23 = vadd.f32 %v908_v6, %v842_v29  ;;  %v832_v25 = vld [vmem:[#allocation3 + $0x90] sm:$0xff]  ;;  %v1218_v51 = vmul.f32 %v4228_v2, %v3321_v62  ;;  %v1219_v20 = vmul.f32 %v4228_v2, %v4190_v15  ;;  %v4238_v14 = vld [vmem:[#allocation2 + $0xf8] sm:$0xff]  ;;  %v738_v6 = vmul.f32 %v4110_v4, %v4223_v60 }
 0x112   : > { %2088 = vst.msk [vmem:[#allocation3 + $0x48] sm:$0xff] %vm335_vm0, %v2056_v16  ;;  %v990_v41 = vld [vmem:[#allocation3 + $0x70] sm:$0xff]  ;;  %v930_v26 = vadd.f32 %v898_v31, %v832_v25  ;;  %v1703_v16 = vmul.f32 %v3321_v62, %v3917_v61  ;;  %v672_v31 = vld [vmem:[#allocation3 + $0xa0] sm:$0xff]  ;;  %v2026_v62 = vmul.f32 %v3998_v46, %v4178_v36 }
 0x113   : > { %v1088_v22 = vadd.f32 %v1056_v37, %v990_v41  ;;  %972 = vst.msk [vmem:[#allocation3 + $0xe0] sm:$0xff] %vm335_vm0, %v940_v23  ;;  %v833_v19 = vld [vmem:[#allocation3 + $0x98] sm:$0xff]  ;;  %v1864_v23 = vmul.f32 %v3959_v59, %v4142_v45  ;;  %v673_v45 = vld [vmem:[#allocation3 + $0xa8] sm:$0xff] }
 0x114   : > { %v931_v56 = vadd.f32 %v899_v28, %v833_v19  ;;  %962 = vst.msk [vmem:[#allocation3 + $0x90] sm:$0xff] %vm335_vm0, %v930_v26  ;;  %v991_v32 = vld [vmem:[#allocation3 + $0x78] sm:$0xff]  ;;  %v739_v19 = vmul.f32 %v4110_v4, %v4238_v14 }
 0x115   : > { %1120 = vst.msk [vmem:[#allocation3 + $0x70] sm:$0xff] %vm335_vm0, %v1088_v22  ;;  %v1474_v9 = vld [vmem:[#allocation3 + $0x60] sm:$0xff]  ;;  %v1089_v39 = vadd.f32 %v1057_v55, %v991_v32  ;;  %v1704_v22 = vmul.f32 %v3917_v61, %v4190_v15  ;;  %v770_v32 = vadd.f32 %v738_v6, %v672_v31  ;;  %v1220_v15 = vmul.f32 %v4228_v2, %v4122_v0  ;;  %v4281_v6 = vld [vmem:[#allocation2 + $0xf9] sm:$0xff] }
 0x116   : > { %v1635_v44 = vld [vmem:[#allocation3 + $0x58] sm:$0xff]  ;;  %v1572_v63 = vadd.f32 %v1540_v33, %v1474_v9  ;;  %963 = vst.msk [vmem:[#allocation3 + $0x98] sm:$0xff] %vm335_vm0, %v931_v56  ;;  %v771_v24 = vadd.f32 %v739_v19, %v673_v45  ;;  %v4298_v19 = vld [vmem:[%s5107_s1 + $0x5] ss:$0 sm:$0xff] }
 0x117   : > { %v1734_v49 = vadd.f32 %v1702_v38, %v1635_v44  ;;  %1121 = vst.msk [vmem:[#allocation3 + $0x78] sm:$0xff] %vm335_vm0, %v1089_v39  ;;  %v1475_v50 = vld [vmem:[#allocation3 + $0x68] sm:$0xff]  ;;  %v863_v28 = vld [vmem:[#allocation2 + $0xc9] sm:$0xff]  ;;  %v3323_v44 = vld [vmem:[#allocation2 + $0xc1] sm:$0xff] }
 0x118   : > { %1604 = vst.msk [vmem:[#allocation3 + $0x60] sm:$0xff] %vm335_vm0, %v1572_v63  ;;  %v1959_v47 = vld [vmem:[#allocation3 + $0x50] sm:$0xff]  ;;  %v1573_v53 = vadd.f32 %v1541_v43, %v1475_v50  ;;  %v897_v35 = vmul.f32 %v4148_v40, %v863_v28  ;;  %v1222_v43 = vmul.f32 %v4228_v2, %v4223_v60 }
 0x119   : > { %1766 = vst.msk [vmem:[#allocation3 + $0x58] sm:$0xff] %vm335_vm0, %v1734_v49  ;;  %v2057_v10 = vadd.f32 %v2025_v52, %v1959_v47  ;;  %v4264_v63 = vld [vmem:[%s5107_s1 + $0x4] ss:$0 sm:$0xff] }
 0x11a   : > { %1605 = vst.msk [vmem:[#allocation3 + $0x68] sm:$0xff] %vm335_vm0, %v1573_v53  ;;  %v1380_v49 = vmul.f32 %v4264_v63, %v3323_v44 }
 0x11b   : > { %2089 = vst.msk [vmem:[#allocation3 + $0x50] sm:$0xff] %vm335_vm0, %v2057_v10  ;;  %v994_v3 = vld [vmem:[#allocation3 + $0x90] sm:$0xff]  ;;  %v1865_v10 = vmul.f32 %v3323_v44, %v3959_v59  ;;  %v4311_v44 = vld [vmem:[#allocation2 + $0xf2] sm:$0xff] }
 0x11c   : > { %v1152_v7 = vld [vmem:[#allocation3 + $0x70] sm:$0xff]  ;;  %v1092_v42 = vadd.f32 %v1060_v1, %v994_v3  ;;  %799 = vst.msk [vmem:[#allocation3 + $0x88] sm:$0xff] %vm335_vm0, %v767_v30  ;;  %v1381_v30 = vmul.f32 %v4264_v63, %v863_v28  ;;  %v4273_v1 = vld [vmem:[#allocation2 + $0xf1] sm:$0xff] }
 0x11d   : > { %v1250_v8 = vadd.f32 %v1218_v51, %v1152_v7  ;;  %1122 = vst.msk [vmem:[#allocation3 + $0x80] sm:$0xff] %vm335_vm0, %v1090_v54  ;;  %v995_v13 = vld [vmem:[#allocation3 + $0x98] sm:$0xff]  ;;  %v900_v36 = vmul.f32 %v4148_v40, %v4273_v1 }
 0x11e   : > { %1124 = vst.msk [vmem:[#allocation3 + $0x90] sm:$0xff] %vm335_vm0, %v1092_v42  ;;  %v1153_v29 = vld [vmem:[#allocation3 + $0x78] sm:$0xff]  ;;  %v1093_v37 = vadd.f32 %v1061_v11, %v995_v13 }
 0x11f   : > { %1282 = vst.msk [vmem:[#allocation3 + $0x70] sm:$0xff] %vm335_vm0, %v1250_v8  ;;  %v1636_v25 = vld [vmem:[#allocation3 + $0x60] sm:$0xff]  ;;  %v1251_v41 = vadd.f32 %v1219_v20, %v1153_v29  ;;  %v1866_v8 = vmul.f32 %v3959_v59, %v863_v28 }
 0x120   : > { %v1735_v26 = vadd.f32 %v1703_v16, %v1636_v25  ;;  %v1798_v55 = vld [vmem:[#allocation3 + $0x58] sm:$0xff]  ;;  %1125 = vst.msk [vmem:[#allocation3 + $0x98] sm:$0xff] %vm335_vm0, %v1093_v37  ;;  %v1382_v37 = vmul.f32 %v4264_v63, %v4168_v5 }
 0x121   : > { %v1896_v33 = vadd.f32 %v1864_v23, %v1798_v55  ;;  %v1637_v56 = vld [vmem:[#allocation3 + $0x68] sm:$0xff]  ;;  %1283 = vst.msk [vmem:[#allocation3 + $0x78] sm:$0xff] %vm335_vm0, %v1251_v41  ;;  %v1025_v3 = vld [vmem:[#allocation2 + $0xca] sm:$0xff] }
 0x122   : > { %1767 = vst.msk [vmem:[#allocation3 + $0x60] sm:$0xff] %vm335_vm0, %v1735_v26  ;;  %v1736_v9 = vadd.f32 %v1704_v22, %v1637_v56  ;;  %v1059_v16 = vmul.f32 %v4186_v21, %v1025_v3  ;;  %v901_v26 = vmul.f32 %v4148_v40, %v4281_v6  ;;  %v1223_v22 = vmul.f32 %v4228_v2, %v4238_v14 }
 0x123   : > { %1928 = vst.msk [vmem:[#allocation3 + $0x58] sm:$0xff] %vm335_vm0, %v1896_v33  ;;  %v831_v38 = vld [vmem:[#allocation3 + $0x88] sm:$0xff]  ;;  %v1542_v33 = vmul.f32 %v4298_v19, %v4195_v27 }
 0x124   : > { %v929_v48 = vadd.f32 %v897_v35, %v831_v38  ;;  %v1154_v39 = vld [vmem:[#allocation3 + $0x80] sm:$0xff]  ;;  %1768 = vst.msk [vmem:[#allocation3 + $0x68] sm:$0xff] %vm335_vm0, %v1736_v9 }
 0x125   : > { %v1252_v52 = vadd.f32 %v1220_v15, %v1154_v39  ;;  %v1156_v50 = vld [vmem:[#allocation3 + $0x90] sm:$0xff]  ;;  %802 = vst.msk [vmem:[#allocation3 + $0xa0] sm:$0xff] %vm335_vm0, %v770_v32  ;;  %v1543_v15 = vmul.f32 %v4298_v19, %v1025_v3  ;;  %v1384_v39 = vmul.f32 %v4264_v63, %v4273_v1 }
 0x126   : > { %v1314_v47 = vld [vmem:[#allocation3 + $0x70] sm:$0xff]  ;;  %961 = vst.msk [vmem:[#allocation3 + $0x88] sm:$0xff] %vm335_vm0, %v929_v48  ;;  %v1254_v18 = vadd.f32 %v1222_v43, %v1156_v50  ;;  %v2027_v43 = vmul.f32 %v3998_v46, %v4195_v27  ;;  %v1062_v27 = vmul.f32 %v4186_v21, %v4311_v44 }
 0x127   : > { %v1412_v53 = vadd.f32 %v1380_v49, %v1314_v47  ;;  %1284 = vst.msk [vmem:[#allocation3 + $0x80] sm:$0xff] %vm335_vm0, %v1252_v52  ;;  %v1157_v25 = vld [vmem:[#allocation3 + $0x98] sm:$0xff]  ;;  %v2028_v47 = vmul.f32 %v3998_v46, %v1025_v3  ;;  %v4324_v3 = vld [vmem:[#allocation2 + $0xfa] sm:$0xff] }
 0x128   : > { %v1315_v54 = vld [vmem:[#allocation3 + $0x78] sm:$0xff]  ;;  %803 = vst.msk [vmem:[#allocation3 + $0xa8] sm:$0xff] %vm335_vm0, %v771_v24  ;;  %v1255_v9 = vadd.f32 %v1223_v22, %v1157_v25 }
 0x129   : > { %1444 = vst.msk [vmem:[#allocation3 + $0x70] sm:$0xff] %vm335_vm0, %v1412_v53  ;;  %v1799_v51 = vld [vmem:[#allocation3 + $0x60] sm:$0xff]  ;;  %v1413_v11 = vadd.f32 %v1381_v30, %v1315_v54  ;;  %v1221_v30 = vmul.f32 %v4228_v2, %v4129_v12 }
 0x12a   : > { %v1960_v7 = vld [vmem:[#allocation3 + $0x58] sm:$0xff]  ;;  %v1897_v42 = vadd.f32 %v1865_v10, %v1799_v51  ;;  %1286 = vst.msk [vmem:[#allocation3 + $0x90] sm:$0xff] %vm335_vm0, %v1254_v18 }
 0x12b   : > { %v2058_v20 = vadd.f32 %v2026_v62, %v1960_v7  ;;  %1445 = vst.msk [vmem:[#allocation3 + $0x78] sm:$0xff] %vm335_vm0, %v1413_v11  ;;  %v1800_v13 = vld [vmem:[#allocation3 + $0x68] sm:$0xff]  ;;  %v1544_v62 = vmul.f32 %v4298_v19, %v4213_v57 }
 0x12c   : > { %1929 = vst.msk [vmem:[#allocation3 + $0x60] sm:$0xff] %vm335_vm0, %v1897_v42  ;;  %v1898_v29 = vadd.f32 %v1866_v8, %v1800_v13  ;;  %v834_v31 = vld [vmem:[#allocation3 + $0xa0] sm:$0xff]  ;;  %v1705_v8 = vmul.f32 %v3917_v61, %v4122_v0  ;;  %v536_v13 = vpop.permute.xlu1 %535 }
 0x12d   : > { %2090 = vst.msk [vmem:[#allocation3 + $0x58] sm:$0xff] %vm335_vm0, %v2058_v20  ;;  %v993_v23 = vld [vmem:[#allocation3 + $0x88] sm:$0xff]  ;;  %v932_v28 = vadd.f32 %v900_v36, %v834_v31  ;;  %v1385_v31 = vmul.f32 %v4264_v63, %v4281_v6 }
 0x12e   : > { %v1091_v41 = vadd.f32 %v1059_v16, %v993_v23  ;;  %1930 = vst.msk [vmem:[#allocation3 + $0x68] sm:$0xff] %vm335_vm0, %v1898_v29  ;;  %v1316_v55 = vld [vmem:[#allocation3 + $0x80] sm:$0xff]  ;;  %v1063_v29 = vmul.f32 %v4186_v21, %v4324_v3 }
 0x12f   : > { %v1414_v56 = vadd.f32 %v1382_v37, %v1316_v55  ;;  %v835_v45 = vld [vmem:[#allocation3 + $0xa8] sm:$0xff]  ;;  %964 = vst.msk [vmem:[#allocation3 + $0xa0] sm:$0xff] %vm335_vm0, %v932_v28  ;;  %v4339_v37 = vld [vmem:[%s5107_s1 + $0x6] ss:$0 sm:$0xff]  ;;  %v1546_v55 = vmul.f32 %v4298_v19, %v4311_v44 }
 0x130   : > { %v1476_v32 = vld [vmem:[#allocation3 + $0x70] sm:$0xff]  ;;  %1123 = vst.msk [vmem:[#allocation3 + $0x88] sm:$0xff] %vm335_vm0, %v1091_v41  ;;  %v933_v35 = vadd.f32 %v901_v26, %v835_v45  ;;  %v1706_v61 = vmul.f32 %v4339_v37, %v4129_v12  ;;  %v531_v45 = vpop.permute.xlu0 %530 }
 0x131   : > { %v1574_v38 = vadd.f32 %v1542_v33, %v1476_v32  ;;  %1446 = vst.msk [vmem:[#allocation3 + $0x80] sm:$0xff] %vm335_vm0, %v1414_v56  ;;  %v1318_v48 = vld [vmem:[#allocation3 + $0x90] sm:$0xff]  ;;  %v3327_v33 = vld [vmem:[#allocation2 + $0x108] sm:$0xff]  ;;  %v1383_v32 = vmul.f32 %v4264_v63, %v4173_v34 }
 0x132   : > { %v1477_v24 = vld [vmem:[#allocation3 + $0x78] sm:$0xff]  ;;  %965 = vst.msk [vmem:[#allocation3 + $0xa8] sm:$0xff] %vm335_vm0, %v933_v35  ;;  %v1416_v50 = vadd.f32 %v1384_v39, %v1318_v48  ;;  %v1224_v12 = vmul.f32 %v3327_v33, %v4228_v2 }
 0x133   : > { %v1961_v49 = vld [vmem:[#allocation3 + $0x60] sm:$0xff]  ;;  %v1575_v52 = vadd.f32 %v1543_v15, %v1477_v24  ;;  %1606 = vst.msk [vmem:[#allocation3 + $0x70] sm:$0xff] %vm335_vm0, %v1574_v38  ;;  %v1707_v38 = vmul.f32 %v4339_v37, %v4223_v60 }
 0x134   : > { %v2059_v18 = vadd.f32 %v2027_v43, %v1961_v49  ;;  %1287 = vst.msk [vmem:[#allocation3 + $0x98] sm:$0xff] %vm335_vm0, %v1255_v9  ;;  %v676_v24 = vld [vmem:[#allocation3 + $0xc0] sm:$0xff]  ;;  %v1867_v43 = vmul.f32 %v3959_v59, %v4168_v5  ;;  %v1868_v5 = vmul.f32 %v3959_v59, %v4173_v34 }
 0x135   : > { %1607 = vst.msk [vmem:[#allocation3 + $0x78] sm:$0xff] %vm335_vm0, %v1575_v52  ;;  %v1962_v53 = vld [vmem:[#allocation3 + $0x68] sm:$0xff] }
 0x136   : > { %v2060_v10 = vadd.f32 %v2028_v47, %v1962_v53  ;;  %2091 = vst.msk [vmem:[#allocation3 + $0x60] sm:$0xff] %vm335_vm0, %v2059_v18  ;;  %v996_v54 = vld [vmem:[#allocation3 + $0xa0] sm:$0xff]  ;;  %v677_v52 = vld [vmem:[#allocation3 + $0xc8] sm:$0xff]  ;;  %v551_v18 = vpop.permute.xlu1 %550 }
 0x137   : > { %v1155_v51 = vld [vmem:[#allocation3 + $0x88] sm:$0xff]  ;;  %v1094_v11 = vadd.f32 %v1062_v27, %v996_v54  ;;  %1448 = vst.msk [vmem:[#allocation3 + $0x90] sm:$0xff] %vm335_vm0, %v1416_v50 }
 0x138   : > { %v1253_v7 = vadd.f32 %v1221_v30, %v1155_v51  ;;  %2092 = vst.msk [vmem:[#allocation3 + $0x68] sm:$0xff] %vm335_vm0, %v2060_v10  ;;  %v1478_v42 = vld [vmem:[#allocation3 + $0x80] sm:$0xff]  ;;  %v1709_v51 = vmul.f32 %v3327_v33, %v4339_v37  ;;  %v546_v34 = vpop.permute.xlu0 %545  ;;  %v2029_v33 = vmul.f32 %v3998_v46, %v4213_v57 }
 0x139   : > { %v1576_v20 = vadd.f32 %v1544_v62, %v1478_v42  ;;  %1126 = vst.msk [vmem:[#allocation3 + $0xa0] sm:$0xff] %vm335_vm0, %v1094_v11  ;;  %v997_v36 = vld [vmem:[#allocation3 + $0xa8] sm:$0xff]  ;;  %v3328_v42 = vld [vmem:[#allocation2 + $0x109] sm:$0xff] }
 0x13a   : > { %1285 = vst.msk [vmem:[#allocation3 + $0x88] sm:$0xff] %vm335_vm0, %v1253_v7  ;;  %v1638_v16 = vld [vmem:[#allocation3 + $0x70] sm:$0xff]  ;;  %v1095_v41 = vadd.f32 %v1063_v29, %v997_v36 }
 0x13b   : > { %v1737_v0 = vadd.f32 %v1705_v8, %v1638_v16  ;;  %1608 = vst.msk [vmem:[#allocation3 + $0x80] sm:$0xff] %vm335_vm0, %v1576_v20  ;;  %v1319_v23 = vld [vmem:[#allocation3 + $0x98] sm:$0xff]  ;;  %v1386_v8 = vmul.f32 %v3328_v42, %v4264_v63  ;;  %v1545_v20 = vmul.f32 %v4298_v19, %v4217_v58 }
 0x13c   : > { %v1639_v25 = vld [vmem:[#allocation3 + $0x78] sm:$0xff]  ;;  %v1417_v28 = vadd.f32 %v1385_v31, %v1319_v23  ;;  %606 = vst.msk [vmem:[#allocation2 + $0x121] sm:$0xff] %vm335_vm0, %v536_v13  ;;  %v1547_v13 = vmul.f32 %v4298_v19, %v4324_v3  ;;  %v4388_v31 = vld [vmem:[%s5107_s1 + $0x7] ss:$0 sm:$0xff] }
 0x13d   : > { %v1738_v26 = vadd.f32 %v1706_v61, %v1639_v25  ;;  %1769 = vst.msk [vmem:[#allocation3 + $0x70] sm:$0xff] %vm335_vm0, %v1737_v0  ;;  %v1869_v61 = vmul.f32 %v4388_v31, %v4273_v1 }
 0x13e   : > { %1449 = vst.msk [vmem:[#allocation3 + $0x98] sm:$0xff] %vm335_vm0, %v1417_v28  ;;  %v1480_v22 = vld [vmem:[#allocation3 + $0x90] sm:$0xff] }
 0x13f   : > { %1770 = vst.msk [vmem:[#allocation3 + $0x78] sm:$0xff] %vm335_vm0, %v1738_v26  ;;  %v1578_v56 = vadd.f32 %v1546_v55, %v1480_v22  ;;  %v4397_v22 = vld [vmem:[#allocation2 + $0x129] sm:$0xff] }
 0x140   : > { %v1158_v35 = vld [vmem:[#allocation3 + $0xa0] sm:$0xff]  ;;  %1127 = vst.msk [vmem:[#allocation3 + $0xa8] sm:$0xff] %vm335_vm0, %v1095_v41 }
 0x141   : > { %v1317_v9 = vld [vmem:[#allocation3 + $0x88] sm:$0xff]  ;;  %v1256_v15 = vadd.f32 %v1224_v12, %v1158_v35  ;;  %1610 = vst.msk [vmem:[#allocation3 + $0x90] sm:$0xff] %vm335_vm0, %v1578_v56 }
 0x142   : > { %v1415_v48 = vadd.f32 %v1383_v32, %v1317_v9  ;;  %v1640_v39 = vld [vmem:[#allocation3 + $0x80] sm:$0xff]  ;;  %605 = vst.msk [vmem:[#allocation2 + $0x111] sm:$0xff] %vm335_vm0, %v531_v45  ;;  %v2030_v32 = vmul.f32 %v3998_v46, %v4217_v58 }
 0x143   : > { %1288 = vst.msk [vmem:[#allocation3 + $0xa0] sm:$0xff] %vm335_vm0, %v1256_v15  ;;  %v1739_v49 = vadd.f32 %v1707_v38, %v1640_v39  ;;  %v4361_v50 = vld [vmem:[#allocation2 + $0x120] sm:$0xff]  ;;  %v4363_v47 = vld [vmem:[#allocation2 + $0x128] sm:$0xff]  ;;  %v905_v38 = vmul.f32 %v4148_v40, %v4397_v22 }
 0x144   : > { %v1801_v53 = vld [vmem:[#allocation3 + $0x70] sm:$0xff]  ;;  %1447 = vst.msk [vmem:[#allocation3 + $0x88] sm:$0xff] %vm335_vm0, %v1415_v48  ;;  %v742_v60 = vmul.f32 %v4110_v4, %v4361_v50  ;;  %v743_v27 = vmul.f32 %v4110_v4, %v4363_v47  ;;  %v675_v15 = vld [vmem:[#allocation3 + $0xb8] sm:$0xff] }
 0x145   : > { %v1899_v30 = vadd.f32 %v1867_v43, %v1801_v53  ;;  %1771 = vst.msk [vmem:[#allocation3 + $0x80] sm:$0xff] %vm335_vm0, %v1739_v49  ;;  %v1481_v16 = vld [vmem:[#allocation3 + $0x98] sm:$0xff]  ;;  %v998_v49 = vld [vmem:[#allocation3 + $0xb0] sm:$0xff] }
 0x146   : > { %v1802_v10 = vld [vmem:[#allocation3 + $0x78] sm:$0xff]  ;;  %v774_v54 = vadd.f32 %v742_v60, %v676_v24  ;;  %v775_v62 = vadd.f32 %v743_v27, %v677_v52  ;;  %609 = vst.msk [vmem:[#allocation2 + $0x141] sm:$0xff] %vm335_vm0, %v551_v18  ;;  %v1579_v26 = vadd.f32 %v1547_v13, %v1481_v16  ;;  %v1871_v24 = vmul.f32 %v4388_v31, %v3328_v42 }
 0x147   : > { %v1900_v11 = vadd.f32 %v1868_v5, %v1802_v10  ;;  %1931 = vst.msk [vmem:[#allocation3 + $0x70] sm:$0xff] %vm335_vm0, %v1899_v30  ;;  %v4392_v0 = vld [vmem:[#allocation2 + $0x121] sm:$0xff]  ;;  %v1159_v53 = vld [vmem:[#allocation3 + $0xa8] sm:$0xff]  ;;  %v1708_v5 = vmul.f32 %v4339_v37, %v4238_v14 }
 0x148   : > { %v1642_v7 = vld [vmem:[#allocation3 + $0x90] sm:$0xff]  ;;  %806 = vst.msk [vmem:[#allocation3 + $0xc0] sm:$0xff] %vm335_vm0, %v774_v54  ;;  %v904_v56 = vmul.f32 %v4148_v40, %v4392_v0 }
 0x149   : > { %1932 = vst.msk [vmem:[#allocation3 + $0x78] sm:$0xff] %vm335_vm0, %v1900_v11  ;;  %v1741_v59 = vadd.f32 %v1709_v51, %v1642_v7  ;;  %v707_v25 = vld [vmem:[#allocation2 + $0x110] sm:$0xff]  ;;  %v4427_v51 = vld [vmem:[%s5107_s1 + $0x8] ss:$0 sm:$0xff] }
 0x14a   : > { %807 = vst.msk [vmem:[#allocation3 + $0xc8] sm:$0xff] %vm335_vm0, %v775_v62  ;;  %v1320_v36 = vld [vmem:[#allocation3 + $0xa0] sm:$0xff]  ;;  %v741_v45 = vmul.f32 %v4110_v4, %v707_v25  ;;  %v1225_v10 = vmul.f32 %v4228_v2, %v707_v25  ;;  %v2031_v11 = vmul.f32 %v4427_v51, %v4311_v44  ;;  %v4431_v7 = vld [vmem:[#allocation2 + $0x122] sm:$0xff]  ;;  %v1710_v44 = vmul.f32 %v4339_v37, %v707_v25 }
 0x14b   : > { %v1479_v29 = vld [vmem:[#allocation3 + $0x88] sm:$0xff]  ;;  %1773 = vst.msk [vmem:[#allocation3 + $0x90] sm:$0xff] %vm335_vm0, %v1741_v59  ;;  %v1418_v23 = vadd.f32 %v1386_v8, %v1320_v36  ;;  %v4394_v55 = vld [vmem:[#allocation2 + $0x10a] sm:$0xff] }
 0x14c   : > { %v1577_v28 = vadd.f32 %v1545_v20, %v1479_v29  ;;  %v1803_v41 = vld [vmem:[#allocation3 + $0x80] sm:$0xff]  ;;  %608 = vst.msk [vmem:[#allocation2 + $0x139] sm:$0xff] %vm335_vm0, %v546_v34  ;;  %v1064_v57 = vmul.f32 %v4186_v21, %v4394_v55  ;;  %v773_v18 = vadd.f32 %v741_v45, %v675_v15  ;;  %v1548_v14 = vmul.f32 %v4298_v19, %v4394_v55 }
 0x14d   : > { %v1901_v12 = vadd.f32 %v1869_v61, %v1803_v41  ;;  %1450 = vst.msk [vmem:[#allocation3 + $0xa0] sm:$0xff] %vm335_vm0, %v1418_v23  ;;  %v1257_v59 = vadd.f32 %v1225_v10, %v1159_v53  ;;  %v4437_v34 = vld [vmem:[#allocation2 + $0x12a] sm:$0xff]  ;;  %v1066_v29 = vmul.f32 %v4186_v21, %v4431_v7  ;;  %v678_v61 = vld [vmem:[#allocation3 + $0xd0] sm:$0xff] }
 0x14e   : > { %v1963_v1 = vld [vmem:[#allocation3 + $0x70] sm:$0xff]  ;;  %1609 = vst.msk [vmem:[#allocation3 + $0x88] sm:$0xff] %vm335_vm0, %v1577_v28  ;;  %v1096_v27 = vadd.f32 %v1064_v57, %v998_v49  ;;  %v869_v41 = vld [vmem:[#allocation2 + $0x111] sm:$0xff]  ;;  %v1870_v57 = vmul.f32 %v4388_v31, %v4281_v6 }
 0x14f   : > { %v2061_v35 = vadd.f32 %v2029_v33, %v1963_v1  ;;  %1933 = vst.msk [vmem:[#allocation3 + $0x80] sm:$0xff] %vm335_vm0, %v1901_v12  ;;  %v838_v9 = vld [vmem:[#allocation3 + $0xc0] sm:$0xff]  ;;  %v1067_v33 = vmul.f32 %v4186_v21, %v4437_v34  ;;  %v903_v45 = vmul.f32 %v4148_v40, %v869_v41 }
 0x150   : > { %v1964_v48 = vld [vmem:[#allocation3 + $0x78] sm:$0xff]  ;;  %v936_v39 = vadd.f32 %v904_v56, %v838_v9  ;;  %1611 = vst.msk [vmem:[#allocation3 + $0x98] sm:$0xff] %vm335_vm0, %v1579_v26  ;;  %v1226_v9 = vmul.f32 %v4228_v2, %v4361_v50 }
 0x151   : > { %v2062_v43 = vadd.f32 %v2030_v32, %v1964_v48  ;;  %2093 = vst.msk [vmem:[#allocation3 + $0x70] sm:$0xff] %vm335_vm0, %v2061_v35  ;;  %v839_v46 = vld [vmem:[#allocation3 + $0xc8] sm:$0xff]  ;;  %v679_v32 = vld [vmem:[#allocation3 + $0xd8] sm:$0xff] }
 0x152   : > { %v937_v58 = vadd.f32 %v905_v38, %v839_v46  ;;  %968 = vst.msk [vmem:[#allocation3 + $0xc0] sm:$0xff] %vm335_vm0, %v936_v39  ;;  %v1805_v52 = vld [vmem:[#allocation3 + $0x90] sm:$0xff]  ;;  %v1387_v46 = vmul.f32 %v4264_v63, %v869_v41 }
 0x153   : > { %2094 = vst.msk [vmem:[#allocation3 + $0x78] sm:$0xff] %vm335_vm0, %v2062_v43  ;;  %v1903_v60 = vadd.f32 %v1871_v24, %v1805_v52  ;;  %v4422_v54 = vld [vmem:[#allocation2 + $0x138] sm:$0xff]  ;;  %v4446_v23 = vld [vmem:[#allocation2 + $0x140] sm:$0xff] }
 0x154   : > { %969 = vst.msk [vmem:[#allocation3 + $0xc8] sm:$0xff] %vm335_vm0, %v937_v58  ;;  %v1482_v30 = vld [vmem:[#allocation3 + $0xa0] sm:$0xff]  ;;  %v744_v16 = vmul.f32 %v4110_v4, %v4422_v54  ;;  %v745_v1 = vmul.f32 %v4110_v4, %v4446_v23  ;;  %v1711_v58 = vmul.f32 %v4339_v37, %v4361_v50  ;;  %v1228_v53 = vmul.f32 %v4228_v2, %v4422_v54 }
 0x155   : > { %v1641_v62 = vld [vmem:[#allocation3 + $0x88] sm:$0xff]  ;;  %1935 = vst.msk [vmem:[#allocation3 + $0x90] sm:$0xff] %vm335_vm0, %v1903_v60  ;;  %v1580_v36 = vadd.f32 %v1548_v14, %v1482_v30  ;;  %v1229_v10 = vmul.f32 %v4228_v2, %v4446_v23 }
 0x156   : > { %v1740_v42 = vadd.f32 %v1708_v5, %v1641_v62  ;;  %v1965_v8 = vld [vmem:[#allocation3 + $0x80] sm:$0xff]  ;;  %805 = vst.msk [vmem:[#allocation3 + $0xb8] sm:$0xff] %vm335_vm0, %v773_v18  ;;  %v776_v56 = vadd.f32 %v744_v16, %v678_v61  ;;  %v777_v24 = vadd.f32 %v745_v1, %v679_v32  ;;  %v4470_v18 = vld [vmem:[#allocation2 + $0x139] sm:$0xff]  ;;  %v1872_v5 = vmul.f32 %v4388_v31, %v869_v41 }
 0x157   : > { %v2063_v20 = vadd.f32 %v2031_v11, %v1965_v8  ;;  %v1643_v13 = vld [vmem:[#allocation3 + $0x98] sm:$0xff]  ;;  %1128 = vst.msk [vmem:[#allocation3 + $0xb0] sm:$0xff] %vm335_vm0, %v1096_v27  ;;  %v1031_v60 = vld [vmem:[#allocation2 + $0x112] sm:$0xff]  ;;  %v2033_v16 = vmul.f32 %v4427_v51, %v4394_v55 }
 0x158   : > { %1772 = vst.msk [vmem:[#allocation3 + $0x88] sm:$0xff] %vm335_vm0, %v1740_v42  ;;  %v1742_v26 = vadd.f32 %v1710_v44, %v1643_v13  ;;  %v906_v42 = vmul.f32 %v4148_v40, %v4470_v18  ;;  %v1549_v55 = vmul.f32 %v4298_v19, %v1031_v60 }
 0x159   : > { %2095 = vst.msk [vmem:[#allocation3 + $0x80] sm:$0xff] %vm335_vm0, %v2063_v20  ;;  %v1000_v28 = vld [vmem:[#allocation3 + $0xc0] sm:$0xff] }
 0x15a   : > { %v1098_v25 = vadd.f32 %v1066_v29, %v1000_v28  ;;  %1289 = vst.msk [vmem:[#allocation3 + $0xa8] sm:$0xff] %vm335_vm0, %v1257_v59  ;;  %v1065_v59 = vmul.f32 %v4186_v21, %v1031_v60  ;;  %v4489_v29 = vld [vmem:[#allocation2 + $0x141] sm:$0xff]  ;;  %v2032_v28 = vmul.f32 %v4427_v51, %v4324_v3  ;;  %v1873_v3 = vmul.f32 %v4388_v31, %v4392_v0 }
 0x15b   : > { %1612 = vst.msk [vmem:[#allocation3 + $0xa0] sm:$0xff] %vm335_vm0, %v1580_v36  ;;  %v1001_v12 = vld [vmem:[#allocation3 + $0xc8] sm:$0xff]  ;;  %v1388_v36 = vmul.f32 %v4264_v63, %v4392_v0 }
 0x15c   : > { %1130 = vst.msk [vmem:[#allocation3 + $0xc0] sm:$0xff] %vm335_vm0, %v1098_v25  ;;  %v1099_v35 = vadd.f32 %v1067_v33, %v1001_v12  ;;  %v1967_v8 = vld [vmem:[#allocation3 + $0x90] sm:$0xff] }
 0x15d   : > { %v837_v15 = vld [vmem:[#allocation3 + $0xb8] sm:$0xff]  ;;  %1774 = vst.msk [vmem:[#allocation3 + $0x98] sm:$0xff] %vm335_vm0, %v1742_v26  ;;  %v2065_v25 = vadd.f32 %v2033_v16, %v1967_v8 }
 0x15e   : > { %v935_v38 = vadd.f32 %v903_v45, %v837_v15  ;;  %v1160_v48 = vld [vmem:[#allocation3 + $0xb0] sm:$0xff]  ;;  %1131 = vst.msk [vmem:[#allocation3 + $0xc8] sm:$0xff] %vm335_vm0, %v1099_v35 }
 0x15f   : > { %v1804_v4 = vld [vmem:[#allocation3 + $0x88] sm:$0xff]  ;;  %v1258_v39 = vadd.f32 %v1226_v9, %v1160_v48  ;;  %808 = vst.msk [vmem:[#allocation3 + $0xd0] sm:$0xff] %vm335_vm0, %v776_v56  ;;  %v907_v56 = vmul.f32 %v4148_v40, %v4489_v29  ;;  %v2034_v40 = vmul.f32 %v4427_v51, %v1031_v60 }
 0x160   : > { %v1902_v43 = vadd.f32 %v1870_v57, %v1804_v4  ;;  %967 = vst.msk [vmem:[#allocation3 + $0xb8] sm:$0xff] %vm335_vm0, %v935_v38  ;;  %v4503_v57 = vld [vmem:[#allocation2 + $0x13a] sm:$0xff]  ;;  %v1390_v38 = vmul.f32 %v4264_v63, %v4470_v18 }
 0x161   : > { %1290 = vst.msk [vmem:[#allocation3 + $0xb0] sm:$0xff] %vm335_vm0, %v1258_v39  ;;  %v1321_v6 = vld [vmem:[#allocation3 + $0xa8] sm:$0xff] }
 0x162   : > { %1934 = vst.msk [vmem:[#allocation3 + $0x88] sm:$0xff] %vm335_vm0, %v1902_v43  ;;  %v1419_v49 = vadd.f32 %v1387_v46, %v1321_v6  ;;  %v1644_v52 = vld [vmem:[#allocation3 + $0xa0] sm:$0xff]  ;;  %v1391_v43 = vmul.f32 %v4264_v63, %v4489_v29  ;;  %v1068_v46 = vmul.f32 %v4186_v21, %v4503_v57 }
 0x163   : > { %v1743_v27 = vadd.f32 %v1711_v58, %v1644_v52  ;;  %v1162_v30 = vld [vmem:[#allocation3 + $0xc0] sm:$0xff]  ;;  %809 = vst.msk [vmem:[#allocation3 + $0xd8] sm:$0xff] %vm335_vm0, %v777_v24 }
 0x164   : > { %1451 = vst.msk [vmem:[#allocation3 + $0xa8] sm:$0xff] %vm335_vm0, %v1419_v49  ;;  %v1806_v50 = vld [vmem:[#allocation3 + $0x98] sm:$0xff]  ;;  %v1260_v62 = vadd.f32 %v1228_v53, %v1162_v30  ;;  %v2127_v6 = vld [vmem:[#allocation3 + $0x80] sm:$0xff]  ;;  %v1227_v49 = vmul.f32 %v4228_v2, %v4363_v47 }
 0x165   : > { %1775 = vst.msk [vmem:[#allocation3 + $0xa0] sm:$0xff] %vm335_vm0, %v1743_v27  ;;  %v1904_v11 = vadd.f32 %v1872_v5, %v1806_v50  ;;  %v1163_v14 = vld [vmem:[#allocation3 + $0xc8] sm:$0xff]  ;;  %v2159_v50 = vmax.f32 %v2127_v6, 0.0 }
 0x166   : > { %v840_v20 = vld [vmem:[#allocation3 + $0xd0] sm:$0xff]  ;;  %v1261_v13 = vadd.f32 %v1229_v10, %v1163_v14  ;;  %1292 = vst.msk [vmem:[#allocation3 + $0xc0] sm:$0xff] %vm335_vm0, %v1260_v62  ;;  %v1550_v14 = vmul.f32 %v4298_v19, %v4431_v7 }
 0x167   : > { %v999_v44 = vld [vmem:[#allocation3 + $0xb8] sm:$0xff]  ;;  %1936 = vst.msk [vmem:[#allocation3 + $0x98] sm:$0xff] %vm335_vm0, %v1904_v11  ;;  %v938_v61 = vadd.f32 %v906_v42, %v840_v20  ;;  %v566_v11 = vpop.permute.xlu1 %565  ;;  %v1712_v42 = vmul.f32 %v4339_v37, %v4363_v47  ;;  %v2035_v20 = vmul.f32 %v4427_v51, %v4431_v7 }
 0x168   : > { %v1097_v41 = vadd.f32 %v1065_v59, %v999_v44  ;;  %v1322_v26 = vld [vmem:[#allocation3 + $0xb0] sm:$0xff]  ;;  %1293 = vst.msk [vmem:[#allocation3 + $0xc8] sm:$0xff] %vm335_vm0, %v1261_v13 }
 0x169   : > { %v1966_v33 = vld [vmem:[#allocation3 + $0x88] sm:$0xff]  ;;  %v1420_v12 = vadd.f32 %v1388_v36, %v1322_v26  ;;  %970 = vst.msk [vmem:[#allocation3 + $0xd0] sm:$0xff] %vm335_vm0, %v938_v61  ;;  %v4520_v62 = vld [vmem:[#allocation2 + $0x142] sm:$0xff] }
 0x16a   : > { %v2064_v1 = vadd.f32 %v2032_v28, %v1966_v33  ;;  %1129 = vst.msk [vmem:[#allocation3 + $0xb8] sm:$0xff] %vm335_vm0, %v1097_v41  ;;  %v841_v45 = vld [vmem:[#allocation3 + $0xd8] sm:$0xff]  ;;  %v1069_v61 = vmul.f32 %v4186_v21, %v4520_v62  ;;  %v1552_v33 = vmul.f32 %v4298_v19, %v4503_v57 }
 0x16b   : > { %v1483_v32 = vld [vmem:[#allocation3 + $0xa8] sm:$0xff]  ;;  %2097 = vst.msk [vmem:[#allocation3 + $0x90] sm:$0xff] %vm335_vm0, %v2065_v25  ;;  %v939_v15 = vadd.f32 %v907_v56, %v841_v45  ;;  %v1389_v56 = vmul.f32 %v4264_v63, %v4397_v22 }
 0x16c   : > { %2096 = vst.msk [vmem:[#allocation3 + $0x88] sm:$0xff] %vm335_vm0, %v2064_v1  ;;  %v1581_v35 = vadd.f32 %v1549_v55, %v1483_v32  ;;  %v1807_v9 = vld [vmem:[#allocation3 + $0xa0] sm:$0xff] }
 0x16d   : > { %v1905_v48 = vadd.f32 %v1873_v3, %v1807_v9  ;;  %1452 = vst.msk [vmem:[#allocation3 + $0xb0] sm:$0xff] %vm335_vm0, %v1420_v12  ;;  %v1324_v4 = vld [vmem:[#allocation3 + $0xc0] sm:$0xff] }
 0x16e   : > { %1613 = vst.msk [vmem:[#allocation3 + $0xa8] sm:$0xff] %vm335_vm0, %v1581_v35  ;;  %v1968_v0 = vld [vmem:[#allocation3 + $0x98] sm:$0xff]  ;;  %v1422_v39 = vadd.f32 %v1390_v38, %v1324_v4  ;;  %v3331_v12 = vld [vmem:[#allocation2 + $0x150] sm:$0xff]  ;;  %v682_v38 = vld [vmem:[#allocation3 + $0xf0] sm:$0xff]  ;;  %v561_v4 = vpop.permute.xlu0 %560 }
 0x16f   : > { %1937 = vst.msk [vmem:[#allocation3 + $0xa0] sm:$0xff] %vm335_vm0, %v1905_v48  ;;  %v2066_v24 = vadd.f32 %v2034_v40, %v1968_v0  ;;  %v1325_v58 = vld [vmem:[#allocation3 + $0xc8] sm:$0xff]  ;;  %v1230_v1 = vmul.f32 %v3331_v12, %v4228_v2  ;;  %v1874_v0 = vmul.f32 %v4388_v31, %v4397_v22 }
 0x170   : > { %971 = vst.msk [vmem:[#allocation3 + $0xd8] sm:$0xff] %vm335_vm0, %v939_v15  ;;  %v1002_v52 = vld [vmem:[#allocation3 + $0xd0] sm:$0xff]  ;;  %v1423_v27 = vadd.f32 %v1391_v43, %v1325_v58  ;;  %v581_v58 = vpop.permute.xlu1 %580 }
 0x171   : > { %v1161_v53 = vld [vmem:[#allocation3 + $0xb8] sm:$0xff]  ;;  %2098 = vst.msk [vmem:[#allocation3 + $0x98] sm:$0xff] %vm335_vm0, %v2066_v24  ;;  %v1100_v60 = vadd.f32 %v1068_v46, %v1002_v52  ;;  %v3332_v24 = vld [vmem:[%s5107_s1] ss:$0 sm:$0xff]  ;;  %v1713_v52 = vmul.f32 %v4339_v37, %v4422_v54  ;;  %v1551_v54 = vmul.f32 %v4298_v19, %v4437_v34 }
 0x172   : > { %v1259_v5 = vadd.f32 %v1227_v49, %v1161_v53  ;;  %v2129_v30 = vld [vmem:[#allocation3 + $0x90] sm:$0xff]  ;;  %1454 = vst.msk [vmem:[#allocation3 + $0xc0] sm:$0xff] %vm335_vm0, %v1422_v39  ;;  %v683_v39 = vld [vmem:[#allocation3 + $0xf8] sm:$0xff] }
 0x173   : > { %v2161_v10 = vmax.f32 %v2129_v30, 0.0  ;;  %1132 = vst.msk [vmem:[#allocation3 + $0xd0] sm:$0xff] %vm335_vm0, %v1100_v60  ;;  %v2128_v8 = vld [vmem:[#allocation3 + $0x88] sm:$0xff]  ;;  %v1553_v30 = vmul.f32 %v4298_v19, %v4520_v62 }
 0x174   : > { %1291 = vst.msk [vmem:[#allocation3 + $0xb8] sm:$0xff] %vm335_vm0, %v1259_v5  ;;  %v1484_v59 = vld [vmem:[#allocation3 + $0xb0] sm:$0xff]  ;;  %v2160_v47 = vmax.f32 %v2128_v8, 0.0 }
 0x175   : > { %v1645_v13 = vld [vmem:[#allocation3 + $0xa8] sm:$0xff]  ;;  %v2183_v36 = vmax.f32 %v2159_v50, %v2161_v10  ;;  %1455 = vst.msk [vmem:[#allocation3 + $0xc8] sm:$0xff] %vm335_vm0, %v1423_v27  ;;  %v1582_v28 = vadd.f32 %v1550_v14, %v1484_v59  ;;  %v1715_v27 = vmul.f32 %v3331_v12, %v4339_v37  ;;  %v1392_v14 = vmul.f32 %v4264_v63, %v4163_v17 }
 0x176   : > { %v1744_v44 = vadd.f32 %v1712_v42, %v1645_v13  ;;  %v1969_v16 = vld [vmem:[#allocation3 + $0xa0] sm:$0xff]  ;;  %612 = vst.msk [vmem:[#allocation2 + $0x169] sm:$0xff] %vm335_vm0, %v566_v11  ;;  %v681_v12 = vld [vmem:[#allocation3 + $0xe8] sm:$0xff] }
 0x177   : > { %v2067_v41 = vadd.f32 %v2035_v20, %v1969_v16  ;;  %2199 = vst.msk [vmem:[#allocation4 + $0x40] sm:$0xff] %vm335_vm0, %v2183_v36  ;;  %v1003_v26 = vld [vmem:[#allocation3 + $0xd8] sm:$0xff]  ;;  %v576_v16 = vpop.permute.xlu0 %575 }
 0x178   : > { %1776 = vst.msk [vmem:[#allocation3 + $0xa8] sm:$0xff] %vm335_vm0, %v1744_v44  ;;  %v2130_v7 = vld [vmem:[#allocation3 + $0x98] sm:$0xff]  ;;  %v1101_v25 = vadd.f32 %v1069_v61, %v1003_v26  ;;  %v2036_v61 = vmul.f32 %v4427_v51, %v4437_v34  ;;  %v1875_v34 = vmul.f32 %v4388_v31, %v4470_v18 }
 0x179   : > { %2099 = vst.msk [vmem:[#allocation3 + $0xa0] sm:$0xff] %vm335_vm0, %v2067_v41  ;;  %v2162_v21 = vmax.f32 %v2130_v7, 0.0  ;;  %v1486_v55 = vld [vmem:[#allocation3 + $0xc0] sm:$0xff]  ;;  %v4588_v41 = vld [vmem:[%s5107_s1 + $0x1] ss:$0 sm:$0xff] }
 0x17a   : > { %1614 = vst.msk [vmem:[#allocation3 + $0xb0] sm:$0xff] %vm335_vm0, %v1582_v28  ;;  %v1164_v45 = vld [vmem:[#allocation3 + $0xd0] sm:$0xff]  ;;  %v1584_v3 = vadd.f32 %v1552_v33, %v1486_v55  ;;  %v4580_v28 = vld [vmem:[#allocation2 + $0x171] sm:$0xff] }
 0x17b   : > { %v2184_v32 = vmax.f32 %v2160_v47, %v2162_v21  ;;  %v1323_v35 = vld [vmem:[#allocation3 + $0xb8] sm:$0xff]  ;;  %v1262_v9 = vadd.f32 %v1230_v1, %v1164_v45  ;;  %1133 = vst.msk [vmem:[#allocation3 + $0xd8] sm:$0xff] %vm335_vm0, %v1101_v25  ;;  %v911_v1 = vmul.f32 %v4588_v41, %v4580_v28 }
 0x17c   : > { %v1421_v15 = vadd.f32 %v1389_v56, %v1323_v35  ;;  %1616 = vst.msk [vmem:[#allocation3 + $0xc0] sm:$0xff] %vm335_vm0, %v1584_v3  ;;  %v1487_v11 = vld [vmem:[#allocation3 + $0xc8] sm:$0xff]  ;;  %v4601_v56 = vld [vmem:[%s5107_s1 + $0x2] ss:$0 sm:$0xff] }
 0x17d   : > { %2200 = vst.msk [vmem:[#allocation4 + $0x48] sm:$0xff] %vm335_vm0, %v2184_v32  ;;  %v4546_v48 = vld [vmem:[#allocation2 + $0x168] sm:$0xff]  ;;  %v4548_v40 = vld [vmem:[#allocation2 + $0x170] sm:$0xff]  ;;  %v1585_v8 = vadd.f32 %v1553_v30, %v1487_v11  ;;  %v2037_v11 = vmul.f32 %v4427_v51, %v4503_v57 }
 0x17e   : > { %1453 = vst.msk [vmem:[#allocation3 + $0xb8] sm:$0xff] %vm335_vm0, %v1421_v15  ;;  %v748_v43 = vmul.f32 %v3332_v24, %v4546_v48  ;;  %v749_v46 = vmul.f32 %v3332_v24, %v4548_v40  ;;  %v4575_v20 = vld [vmem:[#allocation2 + $0x169] sm:$0xff]  ;;  %v3335_v3 = vld [vmem:[#allocation2 + $0x151] sm:$0xff] }
 0x17f   : > { %v1808_v6 = vld [vmem:[#allocation3 + $0xa8] sm:$0xff]  ;;  %1294 = vst.msk [vmem:[#allocation3 + $0xd0] sm:$0xff] %vm335_vm0, %v1262_v9  ;;  %v910_v26 = vmul.f32 %v4588_v41, %v4575_v20  ;;  %v1877_v18 = vmul.f32 %v3335_v3, %v4388_v31 }
 0x180   : > { %v1906_v49 = vadd.f32 %v1874_v0, %v1808_v6  ;;  %v780_v22 = vadd.f32 %v748_v43, %v682_v38  ;;  %611 = vst.msk [vmem:[#allocation2 + $0x159] sm:$0xff] %vm335_vm0, %v561_v4  ;;  %v781_v60 = vadd.f32 %v749_v46, %v683_v39  ;;  %v1714_v0 = vmul.f32 %v4339_v37, %v4446_v23  ;;  %v1004_v39 = vld [vmem:[#allocation3 + $0xe0] sm:$0xff] }
 0x181   : > { %v1646_v53 = vld [vmem:[#allocation3 + $0xb0] sm:$0xff]  ;;  %615 = vst.msk [vmem:[#allocation2 + $0x189] sm:$0xff] %vm335_vm0, %v581_v58  ;;  %v4620_v30 = vld [vmem:[#allocation2 + $0x172] sm:$0xff] }
 0x182   : > { %1938 = vst.msk [vmem:[#allocation3 + $0xa8] sm:$0xff] %vm335_vm0, %v1906_v49  ;;  %v1745_v5 = vadd.f32 %v1713_v52, %v1646_v53  ;;  %v1165_v15 = vld [vmem:[#allocation3 + $0xd8] sm:$0xff]  ;;  %v2113_v52 = vld [vmem:[#allocation3 + $0x10] sm:$0xff] }
 0x183   : > { %v1648_v50 = vld [vmem:[#allocation3 + $0xc0] sm:$0xff]  ;;  %812 = vst.msk [vmem:[#allocation3 + $0xf0] sm:$0xff] %vm335_vm0, %v780_v22 }
 0x184   : > { %v1747_v10 = vadd.f32 %v1715_v27, %v1648_v50  ;;  %1777 = vst.msk [vmem:[#allocation3 + $0xb0] sm:$0xff] %vm335_vm0, %v1745_v5  ;;  %v4615_v53 = vld [vmem:[#allocation2 + $0x16a] sm:$0xff] }
 0x185   : > { %v1485_v42 = vld [vmem:[#allocation3 + $0xb8] sm:$0xff]  ;;  %813 = vst.msk [vmem:[#allocation3 + $0xf8] sm:$0xff] %vm335_vm0, %v781_v60  ;;  %v2111_v5 = vld [vmem:[#allocation3] sm:$0xff] }
 0x186   : > { %v1583_v59 = vadd.f32 %v1551_v54, %v1485_v42  ;;  %1779 = vst.msk [vmem:[#allocation3 + $0xc0] sm:$0xff] %vm335_vm0, %v1747_v10  ;;  %v1326_v13 = vld [vmem:[#allocation3 + $0xd0] sm:$0xff]  ;;  %v2145_v54 = vmax.f32 %v2113_v52, 0.0  ;;  %v1072_v10 = vmul.f32 %v4601_v56, %v4615_v53 }
 0x187   : > { %v1424_v36 = vadd.f32 %v1392_v14, %v1326_v13  ;;  %1617 = vst.msk [vmem:[#allocation3 + $0xc8] sm:$0xff] %vm335_vm0, %v1585_v8  ;;  %v713_v44 = vld [vmem:[#allocation2 + $0x158] sm:$0xff]  ;;  %v2143_v8 = vmax.f32 %v2111_v5, 0.0 }
 0x188   : > { %1615 = vst.msk [vmem:[#allocation3 + $0xb8] sm:$0xff] %vm335_vm0, %v1583_v59  ;;  %v4583_v17 = vld [vmem:[#allocation2 + $0x152] sm:$0xff]  ;;  %v747_v7 = vmul.f32 %v3332_v24, %v713_v44  ;;  %v1231_v43 = vmul.f32 %v4228_v2, %v713_v44  ;;  %v1716_v27 = vmul.f32 %v4339_v37, %v713_v44  ;;  %v1073_v59 = vmul.f32 %v4601_v56, %v4620_v30  ;;  %v1037_v52 = vld [vmem:[#allocation2 + $0x15a] sm:$0xff] }
 0x189   : > { %v1970_v47 = vld [vmem:[#allocation3 + $0xa8] sm:$0xff]  ;;  %1456 = vst.msk [vmem:[#allocation3 + $0xd0] sm:$0xff] %vm335_vm0, %v1424_v36  ;;  %v1070_v45 = vmul.f32 %v4601_v56, %v4583_v17  ;;  %v1554_v49 = vmul.f32 %v4298_v19, %v4583_v17 }
 0x18a   : > { %v2068_v33 = vadd.f32 %v2036_v61, %v1970_v47  ;;  %v844_v25 = vld [vmem:[#allocation3 + $0xf0] sm:$0xff]  ;;  %614 = vst.msk [vmem:[#allocation2 + $0x181] sm:$0xff] %vm335_vm0, %v576_v16  ;;  %v779_v4 = vadd.f32 %v747_v7, %v681_v12  ;;  %v1263_v23 = vadd.f32 %v1231_v43, %v1165_v15  ;;  %v2175_v61 = vmax.f32 %v2143_v8, %v2145_v54 }
 0x18b   : > { %v1809_v21 = vld [vmem:[#allocation3 + $0xb0] sm:$0xff]  ;;  %v942_v55 = vadd.f32 %v910_v26, %v844_v25  ;;  %v1102_v6 = vadd.f32 %v1070_v45, %v1004_v39  ;;  %v2114_v26 = vld [vmem:[#allocation3 + $0x18] sm:$0xff]  ;;  %v1876_v7 = vmul.f32 %v4388_v31, %v4489_v29 }
 0x18c   : > { %2100 = vst.msk [vmem:[#allocation3 + $0xa8] sm:$0xff] %vm335_vm0, %v2068_v33  ;;  %v1907_v32 = vadd.f32 %v1875_v34, %v1809_v21  ;;  %v845_v35 = vld [vmem:[#allocation3 + $0xf8] sm:$0xff]  ;;  %v875_v42 = vld [vmem:[#allocation2 + $0x159] sm:$0xff]  ;;  %v2115_v34 = vld [vmem:[#allocation3 + $0x20] sm:$0xff] }
 0x18d   : > { %v943_v9 = vadd.f32 %v911_v1, %v845_v35  ;;  %974 = vst.msk [vmem:[#allocation3 + $0xf0] sm:$0xff] %vm335_vm0, %v942_v55  ;;  %v1811_v38 = vld [vmem:[#allocation3 + $0xc0] sm:$0xff]  ;;  %v909_v57 = vmul.f32 %v4588_v41, %v875_v42  ;;  %v4641_v12 = vld [vmem:[%s5107_s1 + $0x3] ss:$0 sm:$0xff]  ;;  %v2112_v41 = vld [vmem:[#allocation3 + $0x8] sm:$0xff]  ;;  %v1393_v29 = vmul.f32 %v4264_v63, %v875_v42  ;;  %v1717_v35 = vmul.f32 %v4339_v37, %v4546_v48 }
 0x18e   : > { %1939 = vst.msk [vmem:[#allocation3 + $0xb0] sm:$0xff] %vm335_vm0, %v1907_v32  ;;  %v1909_v24 = vadd.f32 %v1877_v18, %v1811_v38  ;;  %v1649_v58 = vld [vmem:[#allocation3 + $0xc8] sm:$0xff]  ;;  %v1232_v1 = vmul.f32 %v4641_v12, %v4546_v48  ;;  %v2146_v18 = vmax.f32 %v2114_v26, 0.0  ;;  %v2117_v32 = vld [vmem:[#allocation3 + $0x30] sm:$0xff]  ;;  %v2147_v38 = vmax.f32 %v2115_v34, 0.0  ;;  %v2119_v26 = vld [vmem:[#allocation3 + $0x40] sm:$0xff] }
 0x18f   : > { %v1647_v46 = vld [vmem:[#allocation3 + $0xb8] sm:$0xff]  ;;  %975 = vst.msk [vmem:[#allocation3 + $0xf8] sm:$0xff] %vm335_vm0, %v943_v9  ;;  %v1748_v50 = vadd.f32 %v1716_v27, %v1649_v58  ;;  %v1878_v63 = vmul.f32 %v4388_v31, %v875_v42  ;;  %v2291_v58 = vld [vmem:[#allocation5 + $0x1] sm:$0xff]  ;;  %v2038_v42 = vmul.f32 %v4427_v51, %v4520_v62  ;;  %v4682_v62 = vld [vmem:[%s5107_s1 + $0x4] ss:$0 sm:$0xff]  ;;  %v2040_v34 = vmul.f32 %v4427_v51, %v1037_v52 }
 0x190   : > { %v1746_v22 = vadd.f32 %v1714_v0, %v1647_v46  ;;  %v1488_v60 = vld [vmem:[#allocation3 + $0xd0] sm:$0xff]  ;;  %1941 = vst.msk [vmem:[#allocation3 + $0xc0] sm:$0xff] %vm335_vm0, %v1909_v24  ;;  %v2144_v24 = vmax.f32 %v2112_v41, 0.0  ;;  %2307 = vrot.lane.b32.xlu2 %v2291_v58, %s3352_s24 }
 0x191   : > { %811 = vst.msk [vmem:[#allocation3 + $0xe8] sm:$0xff] %vm335_vm0, %v779_v4  ;;  %v1586_v2 = vadd.f32 %v1554_v49, %v1488_v60  ;;  %v4647_v3 = vld [vmem:[#allocation2 + $0x180] sm:$0xff]  ;;  %v4655_v39 = vld [vmem:[#allocation2 + $0x188] sm:$0xff]  ;;  %v2149_v49 = vmax.f32 %v2117_v32, 0.0 }
 0x192   : > { %1778 = vst.msk [vmem:[#allocation3 + $0xb8] sm:$0xff] %vm335_vm0, %v1746_v22  ;;  %v1234_v48 = vmul.f32 %v4641_v12, %v4647_v3  ;;  %v1235_v27 = vmul.f32 %v4641_v12, %v4655_v39 }
 0x193   : > { %1134 = vst.msk [vmem:[#allocation3 + $0xe0] sm:$0xff] %vm335_vm0, %v1102_v6  ;;  %v2340_v6 = vld [vmem:[#allocation5 + $0x2] sm:$0xff]  ;;  %v2177_v54 = vmax.f32 %v2147_v38, %v2149_v49 }
 0x194   : > { %v1006_v14 = vld [vmem:[#allocation3 + $0xf0] sm:$0xff]  ;;  %1295 = vst.msk [vmem:[#allocation3 + $0xd8] sm:$0xff] %vm335_vm0, %v1263_v23  ;;  %2356 = vrot.lane.b32.xlu1 %v2340_v6, %s3353_s25  ;;  %v2176_v23 = vmax.f32 %v2144_v24, %v2146_v18  ;;  %v2120_v6 = vld [vmem:[#allocation3 + $0x48] sm:$0xff] }
 0x195   : > { %v1971_v13 = vld [vmem:[#allocation3 + $0xb0] sm:$0xff]  ;;  %v1104_v36 = vadd.f32 %v1072_v10, %v1006_v14  ;;  %1618 = vst.msk [vmem:[#allocation3 + $0xd0] sm:$0xff] %vm335_vm0, %v1586_v2  ;;  %v1071_v10 = vmul.f32 %v4601_v56, %v1037_v52  ;;  %v1555_v56 = vmul.f32 %v4298_v19, %v1037_v52  ;;  %v2116_v19 = vld [vmem:[#allocation3 + $0x28] sm:$0xff] }
 0x196   : > { %v2069_v44 = vadd.f32 %v2037_v11, %v1971_v13  ;;  %1780 = vst.msk [vmem:[#allocation3 + $0xc8] sm:$0xff] %vm335_vm0, %v1748_v50  ;;  %v1007_v16 = vld [vmem:[#allocation3 + $0xf8] sm:$0xff]  ;;  %v2039_v11 = vmul.f32 %v4427_v51, %v4583_v17  ;;  %v1394_v17 = vmul.f32 %v4682_v62, %v4575_v20  ;;  %v2148_v32 = vmax.f32 %v2116_v19, 0.0 }
 0x197   : > { %1136 = vst.msk [vmem:[#allocation3 + $0xf0] sm:$0xff] %vm335_vm0, %v1104_v36  ;;  %v1105_v47 = vadd.f32 %v1073_v59, %v1007_v16  ;;  %v1973_v5 = vld [vmem:[#allocation3 + $0xc0] sm:$0xff] }
 0x198   : > { %2101 = vst.msk [vmem:[#allocation3 + $0xb0] sm:$0xff] %vm335_vm0, %v2069_v44  ;;  %v843_v33 = vld [vmem:[#allocation3 + $0xe8] sm:$0xff]  ;;  %v2071_v36 = vadd.f32 %v2039_v11, %v1973_v5  ;;  %v2123_v5 = vld [vmem:[#allocation3 + $0x60] sm:$0xff] }
 0x199   : > { %v1810_v25 = vld [vmem:[#allocation3 + $0xb8] sm:$0xff]  ;;  %v941_v21 = vadd.f32 %v909_v57, %v843_v33  ;;  %1137 = vst.msk [vmem:[#allocation3 + $0xf8] sm:$0xff] %vm335_vm0, %v1105_v47  ;;  %v1879_v57 = vmul.f32 %v4388_v31, %v4575_v20 }
 0x19a   : > { %v1908_v55 = vadd.f32 %v1876_v7, %v1810_v25  ;;  %v1166_v45 = vld [vmem:[#allocation3 + $0xe0] sm:$0xff]  ;;  %2191 = vst.msk [vmem:[#allocation4] sm:$0xff] %vm335_vm0, %v2175_v61  ;;  %v4676_v61 = vld [vmem:[#allocation2 + $0x181] sm:$0xff] }
 0x19b   : > { %973 = vst.msk [vmem:[#allocation3 + $0xe8] sm:$0xff] %vm335_vm0, %v941_v21  ;;  %v1264_v9 = vadd.f32 %v1232_v1, %v1166_v45  ;;  %v1327_v15 = vld [vmem:[#allocation3 + $0xd8] sm:$0xff]  ;;  %v1396_v20 = vmul.f32 %v4682_v62, %v4676_v61  ;;  %v2121_v45 = vld [vmem:[#allocation3 + $0x50] sm:$0xff] }
 0x19c   : > { %1940 = vst.msk [vmem:[#allocation3 + $0xb8] sm:$0xff] %vm335_vm0, %v1908_v55  ;;  %v1425_v4 = vadd.f32 %v1393_v29, %v1327_v15  ;;  %v1650_v0 = vld [vmem:[#allocation3 + $0xd0] sm:$0xff]  ;;  %v4691_v25 = vld [vmem:[#allocation2 + $0x189] sm:$0xff] }
 0x19d   : > { %1296 = vst.msk [vmem:[#allocation3 + $0xe0] sm:$0xff] %vm335_vm0, %v1264_v9  ;;  %v1749_v43 = vadd.f32 %v1717_v35, %v1650_v0  ;;  %v1812_v46 = vld [vmem:[#allocation3 + $0xc8] sm:$0xff]  ;;  %v2118_v1 = vld [vmem:[#allocation3 + $0x38] sm:$0xff]  ;;  %v2151_v35 = vmax.f32 %v2119_v26, 0.0  ;;  %v1397_v9 = vmul.f32 %v4682_v62, %v4691_v25 }
 0x19e   : > { %1457 = vst.msk [vmem:[#allocation3 + $0xd8] sm:$0xff] %vm335_vm0, %v1425_v4  ;;  %v1910_v22 = vadd.f32 %v1878_v63, %v1812_v46  ;;  %v1168_v60 = vld [vmem:[#allocation3 + $0xf0] sm:$0xff]  ;;  %v2122_v0 = vld [vmem:[#allocation3 + $0x58] sm:$0xff]  ;;  %v2150_v63 = vmax.f32 %v2118_v1, 0.0  ;;  %v2153_v46 = vmax.f32 %v2121_v45, 0.0 }
 0x19f   : > { %1781 = vst.msk [vmem:[#allocation3 + $0xd0] sm:$0xff] %vm335_vm0, %v1749_v43  ;;  %v1266_v2 = vadd.f32 %v1234_v48, %v1168_v60  ;;  %v1233_v48 = vmul.f32 %v4641_v12, %v4548_v40  ;;  %v2152_v12 = vmax.f32 %v2120_v6, 0.0 }
 0x1a0   : > { %1942 = vst.msk [vmem:[#allocation3 + $0xc8] sm:$0xff] %vm335_vm0, %v1910_v22  ;;  %v1169_v50 = vld [vmem:[#allocation3 + $0xf8] sm:$0xff]  ;;  %v2178_v52 = vmax.f32 %v2148_v32, %v2150_v63  ;;  %v2154_v22 = vmax.f32 %v2122_v0, 0.0 }
 0x1a1   : > { %v1267_v14 = vadd.f32 %v1235_v27, %v1169_v50  ;;  %1298 = vst.msk [vmem:[#allocation3 + $0xf0] sm:$0xff] %vm335_vm0, %v1266_v2  ;;  %v2125_v27 = vld [vmem:[#allocation3 + $0x70] sm:$0xff]  ;;  %v1718_v2 = vmul.f32 %v4339_v37, %v4548_v40  ;;  %v2041_v50 = vmul.f32 %v4427_v51, %v4615_v53 }
 0x1a2   : > { %v1005_v8 = vld [vmem:[#allocation3 + $0xe8] sm:$0xff]  ;;  %2192 = vst.msk [vmem:[#allocation4 + $0x8] sm:$0xff] %vm335_vm0, %v2176_v23  ;;  %v2179_v23 = vmax.f32 %v2151_v35, %v2153_v46  ;;  %v2157_v37 = vmax.f32 %v2125_v27, 0.0  ;;  %v4720_v40 = vld [vmem:[%s5107_s1 + $0x5] ss:$0 sm:$0xff]  ;;  %v3276_v35 = vld [vmem:[%s5109_s3 + $0x88] sm:$0xff] }
 0x1a3   : > { %v1972_v59 = vld [vmem:[#allocation3 + $0xb8] sm:$0xff]  ;;  %v1103_v13 = vadd.f32 %v1071_v10, %v1005_v8  ;;  %1299 = vst.msk [vmem:[#allocation3 + $0xf8] sm:$0xff] %vm335_vm0, %v1267_v14  ;;  %v2180_v8 = vmax.f32 %v2152_v12, %v2154_v22  ;;  %2875 = vmatpush.bf16.msra.mxu2 %v3276_v35  ;;  %v4752_v46 = vld [vmem:[%s5107_s1 + $0x6] ss:$0 sm:$0xff] }
 0x1a4   : > { %v2070_v44 = vadd.f32 %v2038_v42, %v1972_v59  ;;  %v1328_v16 = vld [vmem:[#allocation3 + $0xe0] sm:$0xff]  ;;  %2193 = vst.msk [vmem:[#allocation4 + $0x10] sm:$0xff] %vm335_vm0, %v2177_v54  ;;  %v4712_v10 = vld [vmem:[#allocation2 + $0x182] sm:$0xff]  ;;  %v1556_v59 = vmul.f32 %v4720_v40, %v4615_v53 }
 0x1a5   : > { %1135 = vst.msk [vmem:[#allocation3 + $0xe8] sm:$0xff] %vm335_vm0, %v1103_v13  ;;  %v1489_v47 = vld [vmem:[#allocation3 + $0xd8] sm:$0xff]  ;;  %v1426_v55 = vadd.f32 %v1394_v17, %v1328_v16  ;;  %v2124_v17 = vld [vmem:[#allocation3 + $0x68] sm:$0xff] }
 0x1a6   : > { %2102 = vst.msk [vmem:[#allocation3 + $0xb8] sm:$0xff] %vm335_vm0, %v2070_v44  ;;  %v1587_v7 = vadd.f32 %v1555_v56, %v1489_v47  ;;  %v1813_v33 = vld [vmem:[#allocation3 + $0xd0] sm:$0xff]  ;;  %v4714_v42 = vld [vmem:[#allocation2 + $0x18a] sm:$0xff]  ;;  %v1558_v56 = vmul.f32 %v4720_v40, %v4712_v10 }
 0x1a7   : > { %v1911_v21 = vadd.f32 %v1879_v57, %v1813_v33  ;;  %v1974_v41 = vld [vmem:[#allocation3 + $0xc8] sm:$0xff]  ;;  %2103 = vst.msk [vmem:[#allocation3 + $0xc0] sm:$0xff] %vm335_vm0, %v2071_v36  ;;  %v2155_v36 = vmax.f32 %v2123_v5, 0.0  ;;  %v2126_v16 = vld [vmem:[#allocation3 + $0x78] sm:$0xff]  ;;  %v1559_v57 = vmul.f32 %v4720_v40, %v4714_v42  ;;  %v1395_v33 = vmul.f32 %v4682_v62, %v4580_v28  ;;  %v2131_v5 = vld [vmem:[#allocation3 + $0xa0] sm:$0xff] }
 0x1a8   : > { %1619 = vst.msk [vmem:[#allocation3 + $0xd8] sm:$0xff] %vm335_vm0, %v1587_v7  ;;  %v2072_v29 = vadd.f32 %v2040_v34, %v1974_v41  ;;  %v1330_v18 = vld [vmem:[#allocation3 + $0xf0] sm:$0xff]  ;;  %v2158_v41 = vmax.f32 %v2126_v16, 0.0  ;;  %v2163_v16 = vmax.f32 %v2131_v5, 0.0 }
 0x1a9   : > { %1943 = vst.msk [vmem:[#allocation3 + $0xd0] sm:$0xff] %vm335_vm0, %v1911_v21  ;;  %v1428_v15 = vadd.f32 %v1396_v20, %v1330_v18  ;;  %v2207_v38 = vld [vmem:[#allocation4] ss:$2 sm:$0xff]  ;;  %v2223_v4 = vld [vmem:[#allocation4 + $0x1] ss:$2 sm:$0xff]  ;;  %v2181_v7 = vmax.f32 %v2155_v36, %v2157_v37  ;;  %v2133_v37 = vld [vmem:[#allocation3 + $0xb0] sm:$0xff] }
 0x1aa   : > { %2104 = vst.msk [vmem:[#allocation3 + $0xc8] sm:$0xff] %vm335_vm0, %v2072_v29  ;;  %v1331_v24 = vld [vmem:[#allocation3 + $0xf8] sm:$0xff]  ;;  %v2238_v43 = vmax.f32 %v2207_v38, %v2223_v4  ;;  %v1687_v29 = vld [vmem:[#allocation2 + $0x198] sm:$0xff] }
 0x1ab   : > { %1458 = vst.msk [vmem:[#allocation3 + $0xe0] sm:$0xff] %vm335_vm0, %v1426_v55  ;;  %v1429_v58 = vadd.f32 %v1397_v9, %v1331_v24  ;;  %v2156_v55 = vmax.f32 %v2124_v17, 0.0  ;;  %v1880_v9 = vmul.f32 %v4388_v31, %v4580_v28  ;;  %v2042_v17 = vmul.f32 %v4427_v51, %v4620_v30  ;;  %v4790_v51 = vld [vmem:[%s5107_s1 + $0x7] ss:$0 sm:$0xff] }
 0x1ac   : > { %v1167_v49 = vld [vmem:[#allocation3 + $0xe8] sm:$0xff]  ;;  %1460 = vst.msk [vmem:[#allocation3 + $0xf0] sm:$0xff] %vm335_vm0, %v1428_v15  ;;  %v1688_v15 = vld [vmem:[#allocation2 + $0x1a0] sm:$0xff] }
 0x1ad   : > { %v1265_v60 = vadd.f32 %v1233_v48, %v1167_v49  ;;  %1461 = vst.msk [vmem:[#allocation3 + $0xf8] sm:$0xff] %vm335_vm0, %v1429_v58  ;;  %v2182_v0 = vmax.f32 %v2156_v55, %v2158_v41  ;;  %v1721_v48 = vmul.f32 %v4752_v46, %v1687_v29  ;;  %v1722_v28 = vmul.f32 %v4752_v46, %v1688_v15  ;;  %v2132_v29 = vld [vmem:[#allocation3 + $0xa8] sm:$0xff] }
 0x1ae   : > { %2267 = vst.msk [vmem:[#allocation5 + $0x11] sm:$0xff] %vm335_vm0, %v2238_v43  ;;  %v2135_v20 = vld [vmem:[#allocation3 + $0xc0] sm:$0xff]  ;;  %v1719_v58 = vmul.f32 %v4752_v46, %v4647_v3 }
 0x1af   : > { %1297 = vst.msk [vmem:[#allocation3 + $0xe8] sm:$0xff] %vm335_vm0, %v1265_v60  ;;  %v1651_v54 = vld [vmem:[#allocation3 + $0xd8] sm:$0xff]  ;;  %v2167_v43 = vmax.f32 %v2135_v20, 0.0 }
 0x1b0   : > { %v1750_v11 = vadd.f32 %v1718_v2, %v1651_v54  ;;  %v1975_v14 = vld [vmem:[#allocation3 + $0xd0] sm:$0xff]  ;;  %2194 = vst.msk [vmem:[#allocation4 + $0x18] sm:$0xff] %vm335_vm0, %v2178_v52  ;;  %v2215_v54 = vld [vmem:[#allocation4 + $0x40] ss:$2 sm:$0xff] }
 0x1b1   : > { %v2073_v13 = vadd.f32 %v2041_v50, %v1975_v14  ;;  %2195 = vst.msk [vmem:[#allocation4 + $0x20] sm:$0xff] %vm335_vm0, %v2179_v23  ;;  %v3275_v52 = vld [vmem:[%s5109_s3 + $0x80] sm:$0xff]  ;;  %v1557_v14 = vmul.f32 %v4720_v40, %v4620_v30 }
 0x1b2   : > { %1782 = vst.msk [vmem:[#allocation3 + $0xd8] sm:$0xff] %vm335_vm0, %v1750_v11  ;;  %v1490_v44 = vld [vmem:[#allocation3 + $0xe0] sm:$0xff]  ;;  %2876 = vmatpush.bf16.msra.mxu2 %v3275_v52  ;;  %v1849_v40 = vld [vmem:[#allocation2 + $0x199] sm:$0xff] }
 0x1b3   : > { %2105 = vst.msk [vmem:[#allocation3 + $0xd0] sm:$0xff] %vm335_vm0, %v2073_v13  ;;  %v1588_v47 = vadd.f32 %v1556_v59, %v1490_v44  ;;  %v1492_v19 = vld [vmem:[#allocation3 + $0xf0] sm:$0xff]  ;;  %v2231_v11 = vld [vmem:[#allocation4 + $0x41] ss:$2 sm:$0xff]  ;;  %v1883_v30 = vmul.f32 %v4790_v51, %v1849_v40 }
 0x1b4   : > { %v1493_v53 = vld [vmem:[#allocation3 + $0xf8] sm:$0xff]  ;;  %v1590_v26 = vadd.f32 %v1558_v56, %v1492_v19  ;;  %2196 = vst.msk [vmem:[#allocation4 + $0x28] sm:$0xff] %vm335_vm0, %v2180_v8  ;;  %v2242_v56 = vmax.f32 %v2215_v54, %v2231_v11 }
 0x1b5   : > { %1620 = vst.msk [vmem:[#allocation3 + $0xe0] sm:$0xff] %vm335_vm0, %v1588_v47  ;;  %v1591_v34 = vadd.f32 %v1559_v57, %v1493_v53  ;;  %v2341_v1 = vld [vmem:[#allocation5 + $0x12] sm:$0xff]  ;;  %v2165_v57 = vmax.f32 %v2133_v37, 0.0 }
 0x1b6   : > { %v4735_v21 = vld [vmem:[#allocation5 + $0x11] sm:$0xff]  ;;  %v1329_v45 = vld [vmem:[#allocation3 + $0xe8] sm:$0xff]  ;;  %1622 = vst.msk [vmem:[#allocation3 + $0xf0] sm:$0xff] %vm335_vm0, %v1590_v26  ;;  %2358 = vrot.lane.b32.xlu2 %v2341_v1, %s3353_s25 }
 0x1b7   : > { %2309 = vrot.lane.b32.xlu0 %v4735_v21, %s3352_s24  ;;  %v1427_v18 = vadd.f32 %v1395_v33, %v1329_v45  ;;  %1623 = vst.msk [vmem:[#allocation3 + $0xf8] sm:$0xff] %vm335_vm0, %v1591_v34  ;;  %v2209_v62 = vld [vmem:[#allocation4 + $0x10] ss:$2 sm:$0xff]  ;;  %v2225_v32 = vld [vmem:[#allocation4 + $0x11] ss:$2 sm:$0xff]  ;;  %v2185_v55 = vmax.f32 %v2163_v16, %v2165_v57  ;;  %v1881_v45 = vmul.f32 %v4790_v51, %v4676_v61 }
 0x1b8   : > { %v2239_v38 = vmax.f32 %v2209_v62, %v2225_v32  ;;  %2197 = vst.msk [vmem:[#allocation4 + $0x30] sm:$0xff] %vm335_vm0, %v2181_v7  ;;  %v4763_v12 = vld [vmem:[#allocation5 + $0x10] sm:$0xff]  ;;  %v2134_v33 = vld [vmem:[#allocation3 + $0xb8] sm:$0xff] }
 0x1b9   : > { %v1814_v4 = vld [vmem:[#allocation3 + $0xd8] sm:$0xff]  ;;  %1459 = vst.msk [vmem:[#allocation3 + $0xe8] sm:$0xff] %vm335_vm0, %v1427_v18  ;;  %v2166_v62 = vmax.f32 %v2134_v33, 0.0 }
 0x1ba   : > { %v1912_v63 = vadd.f32 %v1880_v9, %v1814_v4  ;;  %v2137_v24 = vld [vmem:[#allocation3 + $0xd0] sm:$0xff]  ;;  %2268 = vst.msk [vmem:[#allocation5 + $0x21] sm:$0xff] %vm335_vm0, %v2239_v38  ;;  %v1720_v9 = vmul.f32 %v4752_v46, %v4655_v39  ;;  %v2164_v38 = vmax.f32 %v2132_v29, 0.0 }
 0x1bb   : > { %v2169_v31 = vmax.f32 %v2137_v24, 0.0  ;;  %v2211_v6 = vld [vmem:[#allocation4 + $0x20] ss:$2 sm:$0xff]  ;;  %v2227_v49 = vld [vmem:[#allocation4 + $0x21] ss:$2 sm:$0xff]  ;;  %2198 = vst.msk [vmem:[#allocation4 + $0x38] sm:$0xff] %vm335_vm0, %v2182_v0 }
 0x1bc   : > { %1944 = vst.msk [vmem:[#allocation3 + $0xd8] sm:$0xff] %vm335_vm0, %v1912_v63  ;;  %v1652_v22 = vld [vmem:[#allocation3 + $0xe0] sm:$0xff]  ;;  %v2240_v60 = vmax.f32 %v2211_v6, %v2227_v49  ;;  %v1850_v19 = vld [vmem:[#allocation2 + $0x1a1] sm:$0xff]  ;;  %v2136_v63 = vld [vmem:[#allocation3 + $0xc8] sm:$0xff] }
 0x1bd   : > { %v2187_v23 = vmax.f32 %v2167_v43, %v2169_v31  ;;  %v1654_v27 = vld [vmem:[#allocation3 + $0xf0] sm:$0xff]  ;;  %v1751_v2 = vadd.f32 %v1719_v58, %v1652_v22  ;;  %2271 = vst.msk [vmem:[#allocation5 + $0x51] sm:$0xff] %vm335_vm0, %v2242_v56  ;;  %v1884_v20 = vmul.f32 %v4790_v51, %v1850_v19  ;;  %v2186_v43 = vmax.f32 %v2164_v38, %v2166_v62  ;;  %v3341_v22 = vld [vmem:[%s5107_s1 + $0x8] ss:$0 sm:$0xff] }
 0x1be   : > { %v1655_v3 = vld [vmem:[#allocation3 + $0xf8] sm:$0xff]  ;;  %v1753_v50 = vadd.f32 %v1721_v48, %v1654_v27  ;;  %2470 = vrot.lane.b32.xlu2 %v2341_v1, %s3352_s24  ;;  %2269 = vst.msk [vmem:[#allocation5 + $0x31] sm:$0xff] %vm335_vm0, %v2240_v60  ;;  %v2011_v48 = vld [vmem:[#allocation2 + $0x19a] sm:$0xff]  ;;  %v2168_v58 = vmax.f32 %v2136_v63, 0.0 }
 0x1bf   : > { %2405 = vrot.lane.b32.xlu0 %v4763_v12, %s3354_s17  ;;  %2203 = vst.msk [vmem:[#allocation4 + $0x60] sm:$0xff] %vm335_vm0, %v2187_v23  ;;  %v1754_v8 = vadd.f32 %v1722_v28, %v1655_v3  ;;  %v2012_v31 = vld [vmem:[#allocation2 + $0x1a2] sm:$0xff]  ;;  %v2045_v60 = vmul.f32 %v3341_v22, %v2011_v48 }
 0x1c0   : > { %v1491_v59 = vld [vmem:[#allocation3 + $0xe8] sm:$0xff]  ;;  %1783 = vst.msk [vmem:[#allocation3 + $0xe0] sm:$0xff] %vm335_vm0, %v1751_v2  ;;  %v2046_v3 = vmul.f32 %v3341_v22, %v2012_v31  ;;  %v2606_v62 = vld [vmem:[#allocation5 + $0x92] sm:$0xff] }
 0x1c1   : > { %v1589_v13 = vadd.f32 %v1557_v14, %v1491_v59  ;;  %1785 = vst.msk [vmem:[#allocation3 + $0xf0] sm:$0xff] %vm335_vm0, %v1753_v50  ;;  %v4775_v36 = vld [vmem:[#allocation5 + $0x20] sm:$0xff]  ;;  %v2043_v50 = vmul.f32 %v3341_v22, %v4712_v10 }
 0x1c2   : > { %v4777_v44 = vld [vmem:[#allocation5 + $0x22] sm:$0xff]  ;;  %1786 = vst.msk [vmem:[#allocation3 + $0xf8] sm:$0xff] %vm335_vm0, %v1754_v8  ;;  %2407 = vrot.lane.b32.xlu1 %v4775_v36, %s3354_s17  ;;  %v2213_v26 = vld [vmem:[#allocation4 + $0x30] ss:$2 sm:$0xff]  ;;  %v2229_v7 = vld [vmem:[#allocation4 + $0x31] ss:$2 sm:$0xff]  ;;  %v1882_v8 = vmul.f32 %v4790_v51, %v4691_v25 }
 0x1c3   : > { %v1976_v47 = vld [vmem:[#allocation3 + $0xd8] sm:$0xff]  ;;  %1621 = vst.msk [vmem:[#allocation3 + $0xe8] sm:$0xff] %vm335_vm0, %v1589_v13  ;;  %v2241_v41 = vmax.f32 %v2213_v26, %v2229_v7  ;;  %v2551_v28 = vld [vmem:[#allocation5 + $0x21] sm:$0xff] }
 0x1c4   : > { %v2074_v53 = vadd.f32 %v2042_v17, %v1976_v47  ;;  %2607 = vst.msk [vmem:[#allocation6 + $0x10] sm:$0xff] %vm335_vm0, %v4777_v44  ;;  %v4817_v39 = vld [vmem:[#allocation5 + $0x52] sm:$0xff] }
 0x1c5   : > { %v4793_v34 = vld [vmem:[#allocation5 + $0x30] sm:$0xff]  ;;  %2270 = vst.msk [vmem:[#allocation5 + $0x41] sm:$0xff] %vm335_vm0, %v2241_v41 }
 0x1c6   : > { %v4795_v1 = vld [vmem:[#allocation5 + $0x32] sm:$0xff]  ;;  %2106 = vst.msk [vmem:[#allocation3 + $0xd8] sm:$0xff] %vm335_vm0, %v2074_v53  ;;  %2521 = vrot.lane.b32.xlu2 %v4793_v34, %s3353_s25 }
 0x1c7   : > { %2472 = vrot.lane.b32.xlu0 %v4777_v44, %s3352_s24  ;;  %v1815_v18 = vld [vmem:[#allocation3 + $0xe0] sm:$0xff]  ;;  %2608 = vst.msk [vmem:[#allocation6 + $0x28] sm:$0xff] %vm335_vm0, %v4795_v1  ;;  %v2552_v23 = vld [vmem:[#allocation5 + $0x31] sm:$0xff] }
 0x1c8   : > { %v1817_v32 = vld [vmem:[#allocation3 + $0xf0] sm:$0xff]  ;;  %v1913_v35 = vadd.f32 %v1881_v45, %v1815_v18  ;;  %2201 = vst.msk [vmem:[#allocation4 + $0x50] sm:$0xff] %vm335_vm0, %v2185_v55 }
 0x1c9   : > { %v1818_v61 = vld [vmem:[#allocation3 + $0xf8] sm:$0xff]  ;;  %v1915_v15 = vadd.f32 %v1883_v30, %v1817_v32  ;;  %2610 = vst.msk [vmem:[#allocation6 + $0x58] sm:$0xff] %vm335_vm0, %v4817_v39  ;;  %v2506_v29 = vld [vmem:[#allocation5 + $0x50] sm:$0xff] }
 0x1ca   : > { %v1653_v4 = vld [vmem:[#allocation3 + $0xe8] sm:$0xff]  ;;  %v1916_v0 = vadd.f32 %v1884_v20, %v1818_v61  ;;  %1945 = vst.msk [vmem:[#allocation3 + $0xe0] sm:$0xff] %vm335_vm0, %v1913_v35  ;;  %2519 = vrot.lane.b32.xlu1 %v4775_v36, %s3353_s25  ;;  %v2554_v7 = vld [vmem:[#allocation5 + $0x51] sm:$0xff] }
 0x1cb   : > { %v1752_v24 = vadd.f32 %v1720_v9, %v1653_v4  ;;  %1947 = vst.msk [vmem:[#allocation3 + $0xf0] sm:$0xff] %vm335_vm0, %v1915_v15  ;;  %v2617_v49 = vld [vmem:[#allocation6 + $0x10] sm:$0xff] }
 0x1cc   : > { %1948 = vst.msk [vmem:[#allocation3 + $0xf8] sm:$0xff] %vm335_vm0, %v1916_v0  ;;  %v4827_v2 = vld [vmem:[#allocation5 + $0x42] sm:$0xff] }
 0x1cd   : > { %v2138_v46 = vld [vmem:[#allocation3 + $0xd8] sm:$0xff]  ;;  %1784 = vst.msk [vmem:[#allocation3 + $0xe8] sm:$0xff] %vm335_vm0, %v1752_v24  ;;  %v2392_v40 = vld [vmem:[#allocation5 + $0x40] sm:$0xff] }
 0x1ce   : > { %v2170_v6 = vmax.f32 %v2138_v46, 0.0  ;;  %2311 = vrot.lane.b32.xlu2 %v2551_v28, %s3352_s24  ;;  %v2620_v52 = vld [vmem:[#allocation6 + $0x28] sm:$0xff]  ;;  %2202 = vst.msk [vmem:[#allocation4 + $0x58] sm:$0xff] %vm335_vm0, %v2186_v43  ;;  %v2275_v24 = vld [vmem:[#allocation5] sm:$0xff] }
 0x1cf   : > { %2567 = vrot.lane.b32.xlu0 %v2551_v28, %s3354_s17  ;;  %v2641_v27 = vpack.c.bf16 %v2620_v52, %v2617_v49  ;;  %2609 = vst.msk [vmem:[#allocation6 + $0x40] sm:$0xff] %vm335_vm0, %v4827_v2  ;;  %v2553_v41 = vld [vmem:[#allocation5 + $0x41] sm:$0xff] }
 0x1d0   : > { %v2188_v5 = vmax.f32 %v2168_v58, %v2170_v6  ;;  %2446 = vst.msk [vmem:[#allocation6 + $0x8] sm:$0xff] %vm335_vm0, %v4735_v21  ;;  %v2626_v57 = vld [vmem:[#allocation6 + $0x58] sm:$0xff]  ;;  %v3266_v6 = vld [vmem:[%s5109_s3 + $0x38] sm:$0xff] }
 0x1d1   : > { %v1977_v54 = vld [vmem:[#allocation3 + $0xe0] sm:$0xff]  ;;  %3203 = vmatmul.msk.bf16.vlgmr.msra.gmra.mxu2 %vm335_vm0, %v2641_v27  ;;  %2285 = vst.msk [vmem:[#allocation6 + $0x30] sm:$0xff] %vm335_vm0, %v4775_v36  ;;  %2811 = vmatpush.bf16.msra.mxu0 %v3266_v6 }
 0x1d2   : > { %2204 = vst.msk [vmem:[#allocation4 + $0x68] sm:$0xff] %vm335_vm0, %v2188_v5  ;;  %v1979_v11 = vld [vmem:[#allocation3 + $0xf0] sm:$0xff]  ;;  %v2075_v14 = vadd.f32 %v2043_v50, %v1977_v54  ;;  %2569 = vrot.lane.b32.xlu1 %v2552_v23, %s3354_s17  ;;  %v3262_v5 = vld [vmem:[%s5109_s3 + $0x18] sm:$0xff]  ;;  %v3273_v50 = vld [vmem:[%s5109_s3 + $0x70] sm:$0xff] }
 0x1d3   : > { %v1980_v37 = vld [vmem:[#allocation3 + $0xf8] sm:$0xff]  ;;  %v2077_v10 = vadd.f32 %v2045_v60, %v1979_v11  ;;  %2284 = vst.msk [vmem:[#allocation6 + $0x18] sm:$0xff] %vm335_vm0, %v4763_v12  ;;  %v2044_v12 = vmul.f32 %v3341_v22, %v4714_v42  ;;  %v3265_v22 = vld [vmem:[%s5109_s3 + $0x30] sm:$0xff] }
 0x1d4   : > { %v1816_v59 = vld [vmem:[#allocation3 + $0xe8] sm:$0xff]  ;;  %v2078_v13 = vadd.f32 %v2046_v3, %v1980_v37  ;;  %2107 = vst.msk [vmem:[#allocation3 + $0xe0] sm:$0xff] %vm335_vm0, %v2075_v14  ;;  %v3264_v60 = vld [vmem:[%s5109_s3 + $0x28] sm:$0xff]  ;;  %v3261_v11 = vld [vmem:[%s5109_s3 + $0x10] sm:$0xff] }
 0x1d5   : > { %v1914_v56 = vadd.f32 %v1882_v8, %v1816_v59  ;;  %2109 = vst.msk [vmem:[#allocation3 + $0xf0] sm:$0xff] %vm335_vm0, %v2077_v10  ;;  %v2217_v25 = vld [vmem:[#allocation4 + $0x50] ss:$2 sm:$0xff]  ;;  %v2233_v21 = vld [vmem:[#allocation4 + $0x51] ss:$2 sm:$0xff]  ;;  %2812 = vmatpush.bf16.msra.mxu0 %v3265_v22  ;;  %v3274_v3 = vld [vmem:[%s5109_s3 + $0x78] sm:$0xff] }
 0x1d6   : > { %2110 = vst.msk [vmem:[#allocation3 + $0xf8] sm:$0xff] %vm335_vm0, %v2078_v13  ;;  %2362 = vrot.lane.b32.xlu2 %v4795_v1, %s3353_s25  ;;  %v2243_v16 = vmax.f32 %v2217_v25, %v2233_v21  ;;  %v2623_v26 = vld [vmem:[#allocation6 + $0x40] sm:$0xff]  ;;  %2840 = vmatpush.bf16.msra.mxu1 %v3274_v3  ;;  %v3260_v14 = vld [vmem:[%s5109_s3 + $0x8] sm:$0xff]  ;;  %v3271_v37 = vld [vmem:[%s5109_s3 + $0x60] sm:$0xff] }
 0x1d7   : > { %2313 = vrot.lane.b32.xlu0 %v2552_v23, %s3352_s24  ;;  %1946 = vst.msk [vmem:[#allocation3 + $0xe8] sm:$0xff] %vm335_vm0, %v1914_v56  ;;  %v2644_v30 = vpack.c.bf16 %v2626_v57, %v2623_v26  ;;  %v3272_v8 = vld [vmem:[%s5109_s3 + $0x68] sm:$0xff]  ;;  %v3259_v59 = vld [vmem:[%s5109_s3] sm:$0xff]  ;;  %v3270_v56 = vld [vmem:[%s5109_s3 + $0x58] sm:$0xff] }
 0x1d8   : > { %2272 = vst.msk [vmem:[#allocation5 + $0x61] sm:$0xff] %vm335_vm0, %v2243_v16  ;;  %v3269_v25 = vld [vmem:[%s5109_s3 + $0x50] sm:$0xff]  ;;  %v3267_v57 = vld [vmem:[%s5109_s3 + $0x40] sm:$0xff] }
 0x1d9   : > { %v2219_v36 = vld [vmem:[#allocation4 + $0x60] ss:$2 sm:$0xff]  ;;  %v2235_v17 = vld [vmem:[#allocation4 + $0x61] ss:$2 sm:$0xff]  ;;  %2448 = vst.msk [vmem:[#allocation6 + $0x38] sm:$0xff] %vm335_vm0, %v2552_v23  ;;  %2813 = vmatpush.bf16.msra.mxu0 %v3264_v60 }
 0x1da   : > { %2360 = vrot.lane.b32.xlu1 %v4777_v44, %s3353_s25  ;;  %v2244_v47 = vmax.f32 %v2219_v36, %v2235_v17  ;;  %2447 = vst.msk [vmem:[#allocation6 + $0x20] sm:$0xff] %vm335_vm0, %v2551_v28  ;;  %2841 = vmatpush.bf16.msra.mxu1 %v3273_v50  ;;  %v3268_v36 = vld [vmem:[%s5109_s3 + $0x48] sm:$0xff]  ;;  %v2510_v17 = vld [vmem:[#allocation5 + $0x90] sm:$0xff] }
 0x1db   : > { %v2139_v19 = vld [vmem:[#allocation3 + $0xe0] sm:$0xff]  ;;  %2287 = vst.msk [vmem:[#allocation6 + $0x60] sm:$0xff] %vm335_vm0, %v2392_v40 }
 0x1dc   : > { %v2141_v53 = vld [vmem:[#allocation3 + $0xf0] sm:$0xff]  ;;  %2273 = vst.msk [vmem:[#allocation5 + $0x71] sm:$0xff] %vm335_vm0, %v2244_v47  ;;  %v2171_v33 = vmax.f32 %v2139_v19, 0.0 }
 0x1dd   : > { %v2173_v51 = vmax.f32 %v2141_v53, 0.0  ;;  %2286 = vst.msk [vmem:[#allocation6 + $0x48] sm:$0xff] %vm335_vm0, %v4793_v34 }
 0x1de   : > { %v1978_v44 = vld [vmem:[#allocation3 + $0xe8] sm:$0xff]  ;;  %2474 = vrot.lane.b32.xlu2 %v4795_v1, %s3352_s24  ;;  %2450 = vst.msk [vmem:[#allocation6 + $0x68] sm:$0xff] %vm335_vm0, %v2554_v7  ;;  %2842 = vmatpush.bf16.msra.mxu1 %v3272_v8 }
 0x1df   : > { %2409 = vrot.lane.b32.xlu0 %v4793_v34, %s3354_s17  ;;  %v2076_v55 = vadd.f32 %v2044_v12, %v1978_v44  ;;  %v2189_v20 = vmax.f32 %v2171_v33, %v2173_v51  ;;  %v4866_v42 = vld [vmem:[#allocation5 + $0x62] sm:$0xff]  ;;  %2449 = vst.msk [vmem:[#allocation6 + $0x50] sm:$0xff] %vm335_vm0, %v2553_v41  ;;  %v2142_v34 = vld [vmem:[#allocation3 + $0xf8] sm:$0xff] }
 0x1e0   : > { %v2394_v1 = vld [vmem:[#allocation5 + $0x60] sm:$0xff]  ;;  %2611 = vst.msk [vmem:[#allocation6 + $0x70] sm:$0xff] %vm335_vm0, %v4866_v42  ;;  %v2174_v35 = vmax.f32 %v2142_v34, 0.0 }
 0x1e1   : > { %2108 = vst.msk [vmem:[#allocation3 + $0xe8] sm:$0xff] %vm335_vm0, %v2076_v55  ;;  %3204 = vmatmul.msk.bf16.gmra.mxu2 %vm335_vm0, %v2644_v30  ;;  %v2555_v32 = vld [vmem:[#allocation5 + $0x61] sm:$0xff] }
 0x1e2   : > { %2205 = vst.msk [vmem:[#allocation4 + $0x70] sm:$0xff] %vm335_vm0, %v2189_v20  ;;  %2411 = vrot.lane.b32.xlu1 %v2392_v40, %s3354_s17  ;;  %2843 = vmatpush.bf16.msra.mxu1 %v3271_v37 }
 0x1e3   : > { %v4873_v45 = vld [vmem:[#allocation5 + $0x72] sm:$0xff]  ;;  %2289 = vst.msk [vmem:[#allocation6 + $0x90] sm:$0xff] %vm335_vm0, %v2394_v1 }
 0x1e4   : > { %2612 = vst.msk [vmem:[#allocation6 + $0x88] sm:$0xff] %vm335_vm0, %v4873_v45  ;;  %v4879_v18 = vld [vmem:[#allocation5 + $0x71] sm:$0xff] }
 0x1e5   : > { %2614 = vst.msk [vmem:[#allocation6 + $0xb8] sm:$0xff] %vm335_vm0, %v2606_v62  ;;  %v4886_v9 = vld [vmem:[#allocation5 + $0x70] sm:$0xff] }
 0x1e6   : > { %2525 = vrot.lane.b32.xlu2 %v2506_v29, %s3353_s25  ;;  %2288 = vst.msk [vmem:[#allocation6 + $0x78] sm:$0xff] %vm335_vm0, %v2506_v29  ;;  %2844 = vmatpush.bf16.msra.mxu1 %v3270_v56 }
 0x1e7   : > { %2476 = vrot.lane.b32.xlu0 %v4827_v2, %s3352_s24  ;;  %2452 = vst.msk [vmem:[#allocation6 + $0x98] sm:$0xff] %vm335_vm0, %v4879_v18  ;;  %v2629_v0 = vld [vmem:[#allocation6 + $0x70] sm:$0xff] }
 0x1e8   : > { %v2140_v61 = vld [vmem:[#allocation3 + $0xe8] sm:$0xff]  ;;  %2451 = vst.msk [vmem:[#allocation6 + $0x80] sm:$0xff] %vm335_vm0, %v2555_v32 }
 0x1e9   : > { %v2172_v15 = vmax.f32 %v2140_v61, 0.0  ;;  %2290 = vst.msk [vmem:[#allocation6 + $0xa8] sm:$0xff] %vm335_vm0, %v4886_v9 }
 0x1ea   : > { %2523 = vrot.lane.b32.xlu1 %v2392_v40, %s3353_s25  ;;  %2283 = vst.msk [vmem:[#allocation6] sm:$0xff] %vm335_vm0, %v2275_v24  ;;  %v2308_v31 = vpop.permute.xlu2 %2307  ;;  %2845 = vmatpush.bf16.msra.mxu1 %v3269_v25  ;;  %v2558_v40 = vld [vmem:[#allocation5 + $0x91] sm:$0xff] }
 0x1eb   : > { %v2190_v38 = vmax.f32 %v2172_v15, %v2174_v35  ;;  %v2632_v4 = vld [vmem:[#allocation6 + $0x88] sm:$0xff]  ;;  %2332 = vst.msk [vmem:[#allocation6] sm:$0xff] %vm2331_vm2, %v2308_v31 }
 0x1ec   : > { %v2647_v63 = vpack.c.bf16 %v2632_v4, %v2629_v0  ;;  %v2638_v49 = vld [vmem:[#allocation6 + $0xb8] sm:$0xff] }
 0x1ed   : > { %2206 = vst.msk [vmem:[#allocation4 + $0x78] sm:$0xff] %vm335_vm0, %v2190_v38 }
 0x1ee   : > { %2315 = vrot.lane.b32.xlu2 %v2553_v41, %s3352_s24  ;;  %2846 = vmatpush.bf16.msra.mxu1 %v3268_v36 }
 0x1ef   : > { %2571 = vrot.lane.b32.xlu0 %v2553_v41, %s3354_s17 }
 0x1f1   : > { %3205 = vmatmul.msk.bf16.gmra.mxu2 %vm335_vm0, %v2647_v63 }
 0x1f2   : > { %2573 = vrot.lane.b32.xlu1 %v2554_v7, %s3354_s17  ;;  %2847 = vmatpush.bf16.msra.mxu1 %v3267_v57 }
 0x1f4   : > { %v2221_v43 = vld [vmem:[#allocation4 + $0x70] ss:$2 sm:$0xff]  ;;  %v2237_v48 = vld [vmem:[#allocation4 + $0x71] ss:$2 sm:$0xff] }
 0x1f5   : > { %v2245_v46 = vmax.f32 %v2221_v43, %v2237_v48 }
 0x1f6   : > { %2366 = vrot.lane.b32.xlu2 %v4817_v39, %s3353_s25 }
 0x1f7   : > { %2317 = vrot.lane.b32.xlu0 %v2554_v7, %s3352_s24  ;;  %2274 = vst.msk [vmem:[#allocation5 + $0x81] sm:$0xff] %vm335_vm0, %v2245_v46 }
 0x1fa   : > { %2364 = vrot.lane.b32.xlu1 %v4827_v2, %s3353_s25  ;;  %v3263_v2 = vld [vmem:[%s5109_s3 + $0x20] sm:$0xff] }
 0x1fb   : > { %2814 = vmatpush.bf16.msra.mxu0 %v3263_v2 }
 0x1fe   : > { %2478 = vrot.lane.b32.xlu2 %v4817_v39, %s3352_s24  ;;  %v2605_v28 = vld [vmem:[#allocation5 + $0x82] sm:$0xff] }
 0x1ff   : > { %2413 = vrot.lane.b32.xlu0 %v2506_v29, %s3354_s17  ;;  %v4911_v58 = vld [vmem:[#allocation5 + $0x81] sm:$0xff]  ;;  %2613 = vst.msk [vmem:[#allocation6 + $0xa0] sm:$0xff] %vm335_vm0, %v2605_v28  ;;  %2815 = vmatpush.bf16.msra.mxu0 %v3262_v5 }
 0x200   : > { %2453 = vst.msk [vmem:[#allocation6 + $0xb0] sm:$0xff] %vm335_vm0, %v4911_v58  ;;  %v2396_v13 = vld [vmem:[#allocation5 + $0x80] sm:$0xff] }
 0x202   : > { %2415 = vrot.lane.b32.xlu1 %v2394_v1, %s3354_s17 }
 0x203   : > { %2816 = vmatpush.bf16.msra.mxu0 %v3261_v11 }
 0x206   : > { %2529 = vrot.lane.b32.xlu2 %v4886_v9, %s3353_s25  ;;  %v2635_v39 = vld [vmem:[#allocation6 + $0xa0] sm:$0xff]  ;;  %v2357_v27 = vpop.permute.xlu1 %2356 }
 0x207   : > { %2480 = vrot.lane.b32.xlu0 %v4866_v42, %s3352_s24  ;;  %v2650_v52 = vpack.c.bf16 %v2638_v49, %v2635_v39  ;;  %2381 = vst.msk [vmem:[#allocation6] sm:$0xff] %vm2380_vm3, %v2357_v27  ;;  %2817 = vmatpush.bf16.msra.mxu0 %v3260_v14 }
 0x209   : > { %3206 = vmatmul.msk.bf16.gmra.mxu2 %vm335_vm0, %v2650_v52 }
 0x20a   : > { %2527 = vrot.lane.b32.xlu1 %v2394_v1, %s3353_s25 }
 0x20b   : > { %2818 = vmatpush.bf16.msra.mxu0 %v3259_v59 }
 0x20e   : > { %2319 = vrot.lane.b32.xlu2 %v2555_v32, %s3352_s24 }
 0x20f   : > { %2575 = vrot.lane.b32.xlu0 %v2555_v32, %s3354_s17 }
 0x210   : > { %v2359_v23 = vpop.permute.xlu2 %2358 }
 0x212   : > { %2577 = vrot.lane.b32.xlu1 %v4879_v18, %s3354_s17 }
 0x216   : > { %2370 = vrot.lane.b32.xlu2 %v4873_v45, %s3353_s25 }
 0x217   : > { %2321 = vrot.lane.b32.xlu0 %v4879_v18, %s3352_s24 }
 0x218   : > { %v2471_v54 = vpop.permute.xlu2 %2470 }
 0x219   : > { %2494 = vst.msk [vmem:[#allocation6 + $0x8] sm:$0xff] %vm2331_vm2, %v2471_v54 }
 0x21a   : > { %2368 = vrot.lane.b32.xlu1 %v4866_v42, %s3353_s25 }
 0x21e   : > { %2482 = vrot.lane.b32.xlu2 %v4873_v45, %s3352_s24 }
 0x21f   : > { %2417 = vrot.lane.b32.xlu0 %v4886_v9, %s3354_s17 }
 0x220   : > { %v2522_v10 = vpop.permute.xlu2 %2521 }
 0x222   : > { %2419 = vrot.lane.b32.xlu1 %v2396_v13, %s3354_s17 }
 0x226   : > { %2533 = vrot.lane.b32.xlu2 %v2510_v17, %s3353_s25 }
 0x227   : > { %2484 = vrot.lane.b32.xlu0 %v2605_v28, %s3352_s24 }
 0x228   : > { %v2312_v21 = vpop.permute.xlu2 %2311 }
 0x229   : > { %v2310_v16 = vpop.permute.xlu0 %2309  ;;  %2334 = vst.msk [vmem:[#allocation6 + $0x30] sm:$0xff] %vm2331_vm2, %v2312_v21 }
 0x22a   : > { %2531 = vrot.lane.b32.xlu1 %v2396_v13, %s3353_s25  ;;  %2333 = vst.msk [vmem:[#allocation6 + $0x18] sm:$0xff] %vm2331_vm2, %v2310_v16 }
 0x22b   : > { %2382 = vst.msk [vmem:[#allocation6 + $0x18] sm:$0xff] %vm2380_vm3, %v2359_v23 }
 0x22f   : > { %2579 = vrot.lane.b32.xlu0 %v4911_v58, %s3354_s17 }
 0x230   : > { %v2363_v47 = vpop.permute.xlu2 %2362 }
 0x231   : > { %v2406_v19 = vpop.permute.xlu0 %2405 }
 0x232   : > { %2430 = vst.msk [vmem:[#allocation6] sm:$0xff] %vm2429_vm4, %v2406_v19  ;;  %2581 = vrot.lane.b32.xlu1 %v2558_v40, %s3354_s17 }
 0x234   : > { %v2408_v53 = vpop.permute.xlu1 %2407 }
 0x235   : > { %2431 = vst.msk [vmem:[#allocation6 + $0x18] sm:$0xff] %vm2429_vm4, %v2408_v53  ;;  %v5042_v53 = vld [vmem:[%s5110_s4] ss:$0 sm:$0xff] }
 0x238   : > { %v2475_v26 = vpop.permute.xlu2 %2474 }
 0x239   : > { %v2473_v7 = vpop.permute.xlu0 %2472  ;;  %2496 = vst.msk [vmem:[#allocation6 + $0x38] sm:$0xff] %vm2331_vm2, %v2475_v26  ;;  %v2615_v12 = vld [vmem:[#allocation6] sm:$0xff] }
 0x23a   : > { %2495 = vst.msk [vmem:[#allocation6 + $0x20] sm:$0xff] %vm2331_vm2, %v2473_v7 }
 0x23b   : > { %2544 = vst.msk [vmem:[#allocation6 + $0x20] sm:$0xff] %vm2380_vm3, %v2522_v10 }
 0x23c   : > { %v2520_v33 = vpop.permute.xlu1 %2519  ;;  %v2618_v51 = vld [vmem:[#allocation6 + $0x18] sm:$0xff] }
 0x23d   : > { %2543 = vst.msk [vmem:[#allocation6 + $0x8] sm:$0xff] %vm2380_vm3, %v2520_v33  ;;  %v2639_v30 = vpack.c.bf16 %v2618_v51, %v2615_v12 }
 0x23f   : > { %2819 = vmatmul.bf16.vlgmr.msra.gmra.mxu0 %v2639_v30 }
 0x240   : > { %v2526_v41 = vpop.permute.xlu2 %2525 }
 0x241   : > { %v2568_v44 = vpop.permute.xlu0 %2567 }
 0x242   : > { %2591 = vst.msk [vmem:[#allocation6 + $0x8] sm:$0xff] %vm2429_vm4, %v2568_v44 }
 0x244   : > { %v2570_v55 = vpop.permute.xlu1 %2569 }
 0x245   : > { %2592 = vst.msk [vmem:[#allocation6 + $0x20] sm:$0xff] %vm2429_vm4, %v2570_v55 }
 0x248   : > { %v2316_v20 = vpop.permute.xlu2 %2315 }
 0x249   : > { %v2314_v42 = vpop.permute.xlu0 %2313  ;;  %2336 = vst.msk [vmem:[#allocation6 + $0x60] sm:$0xff] %vm2331_vm2, %v2316_v20  ;;  %v2616_v1 = vld [vmem:[#allocation6 + $0x8] sm:$0xff] }
 0x24a   : > { %2335 = vst.msk [vmem:[#allocation6 + $0x48] sm:$0xff] %vm2331_vm2, %v2314_v42 }
 0x24b   : > { %2384 = vst.msk [vmem:[#allocation6 + $0x48] sm:$0xff] %vm2380_vm3, %v2363_v47 }
 0x24c   : > { %v2361_v45 = vpop.permute.xlu1 %2360  ;;  %v2619_v34 = vld [vmem:[#allocation6 + $0x20] sm:$0xff] }
 0x24d   : > { %2383 = vst.msk [vmem:[#allocation6 + $0x30] sm:$0xff] %vm2380_vm3, %v2361_v45  ;;  %v2640_v29 = vpack.c.bf16 %v2619_v34, %v2616_v1 }
 0x24f   : > { %2848 = vmatmul.bf16.vlgmr.msra.gmra.mxu1 %v2640_v29 }
 0x250   : > { %v2367_v18 = vpop.permute.xlu2 %2366 }
 0x251   : > { %v2410_v62 = vpop.permute.xlu0 %2409 }
 0x252   : > { %2432 = vst.msk [vmem:[#allocation6 + $0x30] sm:$0xff] %vm2429_vm4, %v2410_v62 }
 0x254   : > { %v2412_v32 = vpop.permute.xlu1 %2411  ;;  %v2878_v26 = vpop.f32.mrf.mxu2 }
 0x255   : > { %2433 = vst.msk [vmem:[#allocation6 + $0x48] sm:$0xff] %vm2429_vm4, %v2412_v32 }
 0x258   : > { %v2479_v35 = vpop.permute.xlu2 %2478 }
 0x259   : > { %v2477_v9 = vpop.permute.xlu0 %2476  ;;  %2498 = vst.msk [vmem:[#allocation6 + $0x68] sm:$0xff] %vm2331_vm2, %v2479_v35  ;;  %v2621_v61 = vld [vmem:[#allocation6 + $0x30] sm:$0xff] }
 0x25a   : > { %2497 = vst.msk [vmem:[#allocation6 + $0x50] sm:$0xff] %vm2331_vm2, %v2477_v9 }
 0x25b   : > { %2546 = vst.msk [vmem:[#allocation6 + $0x50] sm:$0xff] %vm2380_vm3, %v2526_v41 }
 0x25c   : > { %v2524_v15 = vpop.permute.xlu1 %2523  ;;  %v2624_v38 = vld [vmem:[#allocation6 + $0x48] sm:$0xff]  ;;  %v2880_v20 = vpop.f32.mrf.mxu2 }
 0x25d   : > { %2545 = vst.msk [vmem:[#allocation6 + $0x38] sm:$0xff] %vm2380_vm3, %v2524_v15  ;;  %v2642_v4 = vpack.c.bf16 %v2624_v38, %v2621_v61 }
 0x25f   : > { %2824 = vmatmul.bf16.gmra.mxu0 %v2642_v4 }
 0x260   : > { %v2530_v0 = vpop.permute.xlu2 %2529 }
 0x261   : > { %v2572_v63 = vpop.permute.xlu0 %2571 }
 0x262   : > { %2593 = vst.msk [vmem:[#allocation6 + $0x38] sm:$0xff] %vm2429_vm4, %v2572_v63 }
 0x264   : > { %v2574_v24 = vpop.permute.xlu1 %2573 }
 0x265   : > { %2594 = vst.msk [vmem:[#allocation6 + $0x50] sm:$0xff] %vm2429_vm4, %v2574_v24 }
 0x268   : > { %v2320_v43 = vpop.permute.xlu2 %2319 }
 0x269   : > { %v2318_v48 = vpop.permute.xlu0 %2317  ;;  %2338 = vst.msk [vmem:[#allocation6 + $0x90] sm:$0xff] %vm2331_vm2, %v2320_v43  ;;  %v2622_v46 = vld [vmem:[#allocation6 + $0x38] sm:$0xff] }
 0x26a   : > { %2337 = vst.msk [vmem:[#allocation6 + $0x78] sm:$0xff] %vm2331_vm2, %v2318_v48 }
 0x26b   : > { %2386 = vst.msk [vmem:[#allocation6 + $0x78] sm:$0xff] %vm2380_vm3, %v2367_v18  ;;  %v2883_v18 = vpop.f32.mrf.mxu2 }
 0x26c   : > { %v2365_v31 = vpop.permute.xlu1 %2364  ;;  %v2625_v28 = vld [vmem:[#allocation6 + $0x50] sm:$0xff] }
 0x26d   : > { %2385 = vst.msk [vmem:[#allocation6 + $0x60] sm:$0xff] %vm2380_vm3, %v2365_v31  ;;  %v2643_v58 = vpack.c.bf16 %v2625_v28, %v2622_v46 }
 0x26f   : > { %2853 = vmatmul.bf16.gmra.mxu1 %v2643_v58 }
 0x270   : > { %v2371_v6 = vpop.permute.xlu2 %2370 }
 0x271   : > { %v2414_v49 = vpop.permute.xlu0 %2413 }
 0x272   : > { %2434 = vst.msk [vmem:[#allocation6 + $0x60] sm:$0xff] %vm2429_vm4, %v2414_v49 }
 0x274   : > { %v2416_v39 = vpop.permute.xlu1 %2415 }
 0x275   : > { %2435 = vst.msk [vmem:[#allocation6 + $0x78] sm:$0xff] %vm2429_vm4, %v2416_v39 }
 0x278   : > { %v2483_v52 = vpop.permute.xlu2 %2482 }
 0x279   : > { %v2481_v22 = vpop.permute.xlu0 %2480  ;;  %2500 = vst.msk [vmem:[#allocation6 + $0x98] sm:$0xff] %vm2331_vm2, %v2483_v52  ;;  %v2627_v60 = vld [vmem:[#allocation6 + $0x60] sm:$0xff] }
 0x27a   : > { %2499 = vst.msk [vmem:[#allocation6 + $0x80] sm:$0xff] %vm2331_vm2, %v2481_v22 }
 0x27b   : > { %2548 = vst.msk [vmem:[#allocation6 + $0x80] sm:$0xff] %vm2380_vm3, %v2530_v0  ;;  %v2885_v0 = vpop.f32.mrf.mxu2 }
 0x27c   : > { %v2528_v23 = vpop.permute.xlu1 %2527  ;;  %v2630_v27 = vld [vmem:[#allocation6 + $0x78] sm:$0xff] }
 0x27d   : > { %2547 = vst.msk [vmem:[#allocation6 + $0x68] sm:$0xff] %vm2380_vm3, %v2528_v23  ;;  %v2645_v2 = vpack.c.bf16 %v2630_v27, %v2627_v60 }
 0x27f   : > { %2829 = vmatmul.bf16.gmra.mxu0 %v2645_v2 }
 0x280   : > { %v2534_v59 = vpop.permute.xlu2 %2533 }
 0x281   : > { %v2576_v5 = vpop.permute.xlu0 %2575 }
 0x282   : > { %2595 = vst.msk [vmem:[#allocation6 + $0x68] sm:$0xff] %vm2429_vm4, %v2576_v5 }
 0x283   : > { %v2888_v31 = vpop.f32.mrf.mxu2 }
 0x284   : > { %v2578_v3 = vpop.permute.xlu1 %2577 }
 0x285   : > { %2596 = vst.msk [vmem:[#allocation6 + $0x80] sm:$0xff] %vm2429_vm4, %v2578_v3 }
 0x289   : > { %v2322_v50 = vpop.permute.xlu0 %2321  ;;  %v2628_v54 = vld [vmem:[#allocation6 + $0x68] sm:$0xff] }
 0x28a   : > { %2339 = vst.msk [vmem:[#allocation6 + $0xa8] sm:$0xff] %vm2331_vm2, %v2322_v50  ;;  %v3280_v50 = vld [vmem:[%s5111_s5 + $0x18] sm:$0xff] }
 0x28b   : > { %2388 = vst.msk [vmem:[#allocation6 + $0xa8] sm:$0xff] %vm2380_vm3, %v2371_v6  ;;  %v2890_v23 = vpop.f32.mrf.mxu2  ;;  %2968 = vmatpush.bf16.msra.mxu3 %v3280_v50 }
 0x28c   : > { %v2369_v11 = vpop.permute.xlu1 %2368  ;;  %v2631_v14 = vld [vmem:[#allocation6 + $0x80] sm:$0xff] }
 0x28d   : > { %2387 = vst.msk [vmem:[#allocation6 + $0x90] sm:$0xff] %vm2380_vm3, %v2369_v11  ;;  %v2646_v8 = vpack.c.bf16 %v2631_v14, %v2628_v54  ;;  %v3279_v54 = vld [vmem:[%s5111_s5 + $0x10] sm:$0xff]  ;;  %v3278_v11 = vld [vmem:[%s5111_s5 + $0x8] sm:$0xff]  ;;  %v3277_v14 = vld [vmem:[%s5111_s5] sm:$0xff] }
 0x28f   : > { %2858 = vmatmul.bf16.gmra.mxu1 %v2646_v8  ;;  %2969 = vmatpush.bf16.msra.mxu3 %v3279_v54 }
 0x291   : > { %v2418_v37 = vpop.permute.xlu0 %2417 }
 0x292   : > { %2436 = vst.msk [vmem:[#allocation6 + $0x90] sm:$0xff] %vm2429_vm4, %v2418_v37  ;;  %v3288_v37 = vld [vmem:[%s5113_s7 + $0x38] sm:$0xff] }
 0x293   : > { %2970 = vmatpush.bf16.msra.mxu3 %v3278_v11 }
 0x294   : > { %v2420_v10 = vpop.permute.xlu1 %2419 }
 0x295   : > { %2437 = vst.msk [vmem:[#allocation6 + $0xa8] sm:$0xff] %vm2429_vm4, %v2420_v10  ;;  %v3287_v10 = vld [vmem:[%s5113_s7 + $0x30] sm:$0xff] }
 0x297   : > { %2971 = vmatpush.bf16.msra.mxu3 %v3277_v14 }
 0x299   : > { %v2485_v13 = vpop.permute.xlu0 %2484  ;;  %v2633_v56 = vld [vmem:[#allocation6 + $0x90] sm:$0xff] }
 0x29a   : > { %2501 = vst.msk [vmem:[#allocation6 + $0xb0] sm:$0xff] %vm2331_vm2, %v2485_v13 }
 0x29b   : > { %2550 = vst.msk [vmem:[#allocation6 + $0xb0] sm:$0xff] %vm2380_vm3, %v2534_v59  ;;  %3049 = vmatpush.bf16.msrb.mxu3 %v3288_v37  ;;  %v2893_v59 = vpop.f32.mrf.mxu2 }
 0x29c   : > { %v2532_v25 = vpop.permute.xlu1 %2531  ;;  %v2636_v21 = vld [vmem:[#allocation6 + $0xa8] sm:$0xff] }
 0x29d   : > { %2549 = vst.msk [vmem:[#allocation6 + $0x98] sm:$0xff] %vm2380_vm3, %v2532_v25  ;;  %v2648_v16 = vpack.c.bf16 %v2636_v21, %v2633_v56  ;;  %v3286_v25 = vld [vmem:[%s5113_s7 + $0x28] sm:$0xff] }
 0x29f   : > { %2834 = vmatmul.bf16.gmra.mxu0 %v2648_v16  ;;  %3050 = vmatpush.bf16.msrb.mxu3 %v3287_v10 }
 0x2a1   : > { %v2580_v36 = vpop.permute.xlu0 %2579 }
 0x2a2   : > { %2597 = vst.msk [vmem:[#allocation6 + $0x98] sm:$0xff] %vm2429_vm4, %v2580_v36 }
 0x2a3   : > { %3051 = vmatpush.bf16.msrb.mxu3 %v3286_v25 }
 0x2a4   : > { %v2582_v17 = vpop.permute.xlu1 %2581 }
 0x2a5   : > { %2598 = vst.msk [vmem:[#allocation6 + $0xb0] sm:$0xff] %vm2429_vm4, %v2582_v17  ;;  %v3285_v17 = vld [vmem:[%s5113_s7 + $0x20] sm:$0xff] }
 0x2a7   : > { %3052 = vmatpush.bf16.msrb.mxu3 %v3285_v17 }
 0x2a9   : > { %v2634_v40 = vld [vmem:[#allocation6 + $0x98] sm:$0xff] }
 0x2ac   : > { %v2637_v57 = vld [vmem:[#allocation6 + $0xb0] sm:$0xff] }
 0x2ad   : > { %v2649_v47 = vpack.c.bf16 %v2637_v57, %v2634_v40 }
 0x2af   : > { %2863 = vmatmul.bf16.gmra.mxu1 %v2649_v47 }
 0x2bc   : > { %v2820_v19 = vpop.f32.mrf.mxu0 }
 0x2bd   : > { %v2821_v12 = vadd.f32 %v5042_v53, %v2820_v19  ;;  %v2895_v19 = vpop.f32.mrf.mxu2 }
 0x2c4   : > { %v2822_v33 = vpop.f32.mrf.mxu0 }
 0x2c5   : > { %v2823_v30 = vadd.f32 %v5042_v53, %v2822_v33 }
 0x2cc   : > { %v2849_v7 = vpop.f32.mrf.mxu1 }
 0x2cd   : > { %v2850_v51 = vadd.f32 %v2849_v7, %v2821_v12 }
 0x2cf   : > { %v2879_v44 = vadd.f32 %v2878_v26, %v2850_v51 }
 0x2d1   : > { %v2898_v1 = vmax.f32 %v2879_v44, 0.0 }
 0x2d4   : > { %v2851_v41 = vpop.f32.mrf.mxu1 }
 0x2d5   : > { %v2852_v55 = vadd.f32 %v2851_v41, %v2823_v30 }
 0x2d7   : > { %v2881_v42 = vadd.f32 %v2880_v20, %v2852_v55 }
 0x2d9   : > { %v2899_v45 = vmax.f32 %v2881_v42, 0.0  ;;  %v3284_v42 = vld [vmem:[%s5113_s7 + $0x18] sm:$0xff] }
 0x2da   : > { %3053 = vmatpush.bf16.msrb.mxu3 %v3284_v42 }
 0x2db   : > { %v2906_v34 = vmax.f32 %v2898_v1, %v2899_v45  ;;  %v3283_v1 = vld [vmem:[%s5113_s7 + $0x10] sm:$0xff]  ;;  %v3282_v45 = vld [vmem:[%s5113_s7 + $0x8] sm:$0xff] }
 0x2dc   : > { %v2825_v29 = vpop.f32.mrf.mxu0 }
 0x2dd   : > { %2911 = vst.msk [vmem:[#allocation7] sm:$0xff] %vm2910_vm5, %v2906_v34  ;;  %v2826_v32 = vadd.f32 %v5042_v53, %v2825_v29  ;;  %v3281_v34 = vld [vmem:[%s5113_s7] sm:$0xff] }
 0x2de   : > { %3054 = vmatpush.bf16.msrb.mxu3 %v3283_v1 }
 0x2e2   : > { %3055 = vmatpush.bf16.msrb.mxu3 %v3282_v45 }
 0x2e4   : > { %v2827_v35 = vpop.f32.mrf.mxu0 }
 0x2e5   : > { %v2828_v61 = vadd.f32 %v5042_v53, %v2827_v35 }
 0x2e6   : > { %3056 = vmatpush.bf16.msrb.mxu3 %v3281_v34 }
 0x2ec   : > { %v2854_v62 = vpop.f32.mrf.mxu1 }
 0x2ed   : > { %v2855_v9 = vadd.f32 %v2854_v62, %v2826_v32 }
 0x2ef   : > { %v2884_v38 = vadd.f32 %v2883_v18, %v2855_v9  ;;  %v3316_v18 = vld [vmem:[%s5112_s6] ss:$0 sm:$0xff] }
 0x2f1   : > { %v2900_v24 = vmax.f32 %v2884_v38, 0.0  ;;  %v3317_v38 = vld [vmem:[%s5114_s8] ss:$0 sm:$0xff] }
 0x2f4   : > { %v2856_v15 = vpop.f32.mrf.mxu1 }
 0x2f5   : > { %v2857_v4 = vadd.f32 %v2856_v15, %v2828_v61 }
 0x2f7   : > { %v2886_v63 = vadd.f32 %v2885_v0, %v2857_v4 }
 0x2f9   : > { %v2901_v43 = vmax.f32 %v2886_v63, 0.0 }
 0x2fb   : > { %v2907_v48 = vmax.f32 %v2900_v24, %v2901_v43 }
 0x2fc   : > { %v2830_v46 = vpop.f32.mrf.mxu0 }
 0x2fd   : > { %2912 = vst.msk [vmem:[#allocation7 + $0x8] sm:$0xff] %vm2910_vm5, %v2907_v48  ;;  %v2831_v58 = vadd.f32 %v5042_v53, %v2830_v46 }
 0x304   : > { %v2832_v6 = vpop.f32.mrf.mxu0  ;;  %v2915_v51 = vld [vmem:[#allocation7] ss:$2 sm:$0xff]  ;;  %v2919_v30 = vld [vmem:[#allocation7 + $0x1] ss:$2 sm:$0xff] }
 0x305   : > { %v2833_v39 = vadd.f32 %v5042_v53, %v2832_v6  ;;  %v2922_v44 = vmax.f32 %v2915_v51, %v2919_v30 }
 0x30c   : > { %v2859_v28 = vpop.f32.mrf.mxu1 }
 0x30d   : > { %v2860_v49 = vadd.f32 %v2859_v28, %v2831_v58 }
 0x30f   : > { %v2889_v22 = vadd.f32 %v2888_v31, %v2860_v49 }
 0x311   : > { %v2902_v2 = vmax.f32 %v2889_v22, 0.0 }
 0x314   : > { %v2861_v52 = vpop.f32.mrf.mxu1 }
 0x315   : > { %v2862_v60 = vadd.f32 %v2861_v52, %v2833_v39 }
 0x317   : > { %v2891_v27 = vadd.f32 %v2890_v23, %v2862_v60 }
 0x319   : > { %v2903_v5 = vmax.f32 %v2891_v27, 0.0 }
 0x31b   : > { %v2908_v3 = vmax.f32 %v2902_v2, %v2903_v5 }
 0x31c   : > { %v2835_v8 = vpop.f32.mrf.mxu0 }
 0x31d   : > { %2913 = vst.msk [vmem:[#allocation7 + $0x10] sm:$0xff] %vm2910_vm5, %v2908_v3  ;;  %v2836_v56 = vadd.f32 %v5042_v53, %v2835_v8 }
 0x324   : > { %v2837_v21 = vpop.f32.mrf.mxu0 }
 0x325   : > { %v2838_v36 = vadd.f32 %v5042_v53, %v2837_v21 }
 0x32c   : > { %v2864_v13 = vpop.f32.mrf.mxu1 }
 0x32d   : > { %v2865_v16 = vadd.f32 %v2864_v13, %v2836_v56 }
 0x32f   : > { %v2894_v57 = vadd.f32 %v2893_v59, %v2865_v16 }
 0x331   : > { %v2904_v7 = vmax.f32 %v2894_v57, 0.0 }
 0x334   : > { %v2866_v40 = vpop.f32.mrf.mxu1 }
 0x335   : > { %v2867_v47 = vadd.f32 %v2866_v40, %v2838_v36 }
 0x337   : > { %v2896_v26 = vadd.f32 %v2895_v19, %v2867_v47 }
 0x339   : > { %v2905_v12 = vmax.f32 %v2896_v26, 0.0 }
 0x33b   : > { %v2909_v33 = vmax.f32 %v2904_v7, %v2905_v12 }
 0x33d   : > { %2914 = vst.msk [vmem:[#allocation7 + $0x18] sm:$0xff] %vm2910_vm5, %v2909_v33 }
 0x344   : > { %v2917_v41 = vld [vmem:[#allocation7 + $0x10] ss:$2 sm:$0xff]  ;;  %v2921_v53 = vld [vmem:[#allocation7 + $0x11] ss:$2 sm:$0xff] }
 0x345   : > { %v2923_v55 = vmax.f32 %v2917_v41, %v2921_v53 }
 0x347   : > { %v2924_v20 = vpack.c.bf16 %v2923_v55, %v2922_v44 }
 0x349   : > { %3223 = vmatmul.msk.bf16.vlgmr.msra.gmra.mxu3 %vm2910_vm5, %v2924_v20 }
 0x3cc   : > { %v2973_v29 = vpop.f32.mrf.mxu3 }
 0x3cd   : > { %v2974_v62 = vadd.f32 %v3316_v18, %v2973_v29 }
 0x3cf   : > { %v2978_v9 = vmax.f32 %v2974_v62, 0.0 }
 0x3d4   : > { %v2975_v32 = vpop.f32.mrf.mxu3 }
 0x3d5   : > { %v2976_v35 = vadd.f32 %v3316_v18, %v2975_v32 }
 0x3d7   : > { %v2979_v61 = vmax.f32 %v2976_v35, 0.0 }
 0x3d9   : > { %v2980_v15 = vpack.c.bf16 %v2979_v61, %v2978_v9 }
 0x3db   : > { %3057 = vmatmul.bf16.vlgmr.msrb.gmra.mxu3 %v2980_v15 }
 0x45e   : > { %v3058_v4 = vpop.f32.mrf.mxu3 }
 0x45f   : > { %v3059_v0 = vadd.f32 %v3317_v38, %v3058_v4 }
 0x461   : > { %3064 = vst.msk [vmem:[%s332_s18] sm:$0xff] %vm3063_vm6, %v3059_v0 }
 0x466   : > { %v3060_v63 = vpop.f32.mrf.mxu3 }
 0x467   : > { %v3061_v24 = vadd.f32 %v3317_v38, %v3060_v63 }
 0x469   : > { %3065 = vst.msk [vmem:[%s332_s18 + $0x8] sm:$0xff] %vm3063_vm6, %v3061_v24 }
 0x46a PF: > { %s19_s30 = sadd.s32 1, %s3348_s30  }
 0x46b   : > { %p16_p5 = scmp.ge.s32.totalorder %s19_s30, 4  }
 0x46d   :  { %18 = sbr.rel (!%p16_p5) target bundleno = 1 (0x1), region = 108 }

</bundles_post_ra>
